<compile_context>
chip_gen: v7x
topology: tpu7x:2x2x1
jax: 0.10.0
libtpu: 0.0.40
codegen_flags: <defaults>
</compile_context>

<pallas_src>
import functools

import jax
import jax.numpy as jnp
from jax import lax
from jax.experimental import pallas as pl
from jax.experimental.pallas import tpu as pltpu


def gat_classifier_kernel(x_ref, xdst_ref, xt_ref, w_ref, p_dst_ref, p_src_t_ref,
                          mask_ref, bias_ref, w_cls_ref, b_cls_ref, out_ref,
                          *, num_heads, out_channels, negative_slope, mxu_dtype):
    H, C = num_heads, out_channels
    HC = H * C

    mask_bias = mask_ref[...]                     # [TILE, N_pad], 0 on edges / -1e30

    # Shared linear transform for source messages (MXU).
    xw = jnp.dot(x_ref[...], w_ref[...],
                 preferred_element_type=jnp.float32)            # [N_pad, HC]

    # Attention-score projections via folded weights (MXU, H-wide contractions,
    # no in-kernel transposes: src scores come straight out in [H, N_pad]).
    a_dst_tile = jnp.dot(xdst_ref[...], p_dst_ref[...],
                         preferred_element_type=jnp.float32)    # [TILE, H]
    a_src_t = jnp.dot(p_src_t_ref[...], xt_ref[...],
                      preferred_element_type=jnp.float32)       # [H, N_pad]

    tile_dst = a_dst_tile.shape[0]

    # bf16 message copy (cast hoisted out of the per-head loop).
    xw_bf = xw.astype(mxu_dtype)                                # [N_pad, HC]
    col = lax.broadcasted_iota(jnp.int32, (1, HC), 1)           # hoisted constant

    out_acc = jnp.zeros((tile_dst, HC), jnp.float32)
    for h in range(H):                                          # static, small head count
        # e[d, s] = LeakyReLU(a_dst[d] + a_src[s]) + mask_bias[d, s]
        e = a_dst_tile[:, h:h + 1] + a_src_t[h:h + 1, :]        # [TILE, N_pad]
        e = jnp.where(e > 0, e, negative_slope * e)             # LeakyReLU (VPU)
        e = e + mask_bias                                       # hoisted edge mask

        # Softmax over incoming (source) edges.
        m = jnp.max(e, axis=1, keepdims=True)
        p = jnp.exp(e - m)
        denom = jnp.sum(p, axis=1, keepdims=True)
        attn = (p * pl.reciprocal(denom, approx=True))          # EUP recip + vmul

        # Aggregate head-h messages directly into the head's column slice of the
        # accumulator: zero the other heads' columns (0/1 bf16 mask is exact) and
        # matmul.  With HC <= 128 this is one MXU pass per head and removes any
        # concat / lane-narrow copies.
        sel = ((col >= h * C) & (col < (h + 1) * C)).astype(mxu_dtype)   # [1, HC]
        msg = xw_bf * sel
        out_acc = out_acc + jnp.dot(attn.astype(mxu_dtype), msg,
                                    preferred_element_type=jnp.float32)

    out_acc = out_acc + bias_ref[...]                           # [TILE, HC]

    # Classifier Linear(HC, 1) + Sigmoid, padded to 128 output lanes so the final
    # store is lane-dense (column 0 carries the real probability).
    logits = jnp.dot(out_acc, w_cls_ref[...],
                     preferred_element_type=jnp.float32) + b_cls_ref[...]
    out_ref[...] = jax.nn.sigmoid(logits)                       # [TILE, 128]


def gat_with_classifier(x, adj, params, *, num_heads, hidden_dim,
                        tile_dst=128, mxu_dtype=jnp.bfloat16):
    n, f_in = x.shape
    H, C = num_heads, hidden_dim
    HC = H * C
    assert HC <= 128, "each head is written into a lane slice of one 128-lane block"

    # Pad node count to the dst-tile grain (also satisfies (8,128) alignment).
    n_pad = -(-n // tile_dst) * tile_dst

    x = x.astype(jnp.float32)
    x_pad = jnp.zeros((n_pad, f_in), jnp.float32).at[:n, :].set(x)
    xt_pad = x_pad.T                                  # wrapper-side (XLA), not in-kernel

    # Hoisted edge mask as an additive bias (0 on edges, -1e30 elsewhere).
    # Padded rows/cols are fully masked; padded dst rows degrade to a harmless
    # uniform softmax (no NaN) and are sliced away below.
    mask_bias = jnp.full((n_pad, n_pad), -1e30, jnp.float32)
    mask_bias = mask_bias.at[:n, :n].set(
        jnp.where(adj > 0, 0.0, -1e30).astype(jnp.float32))

    # Fold the attention vectors into the shared weight (parameter-space only):
    #   a_src = (x @ W) @ att_src_pack = x @ P_src,   P_src = W @ att_src_pack  [F, H]
    # so the kernel's score projections are tiny H-wide MXU matmuls and need
    # neither W^T nor a second transform of x.
    w = params["w"].astype(jnp.float32)
    w_hc = w.reshape(f_in, H, C)
    p_dst = jnp.einsum("fhc,hc->fh", w_hc, params["att_dst"].astype(jnp.float32))
    p_src_t = jnp.einsum("fhc,hc->hf", w_hc, params["att_src"].astype(jnp.float32))

    # Classifier weights padded to 128 lanes -> lane-dense output store.
    w_cls_pad = jnp.zeros((HC, 128), jnp.float32).at[:, 0:1].set(params["w_cls"])
    b_cls_pad = jnp.zeros((1, 128), jnp.float32).at[:, 0:1].set(params["b_cls"])

    kernel = functools.partial(
        gat_classifier_kernel,
        num_heads=H, out_channels=C, negative_slope=0.2, mxu_dtype=mxu_dtype)

    full = lambda i: (0, 0)
    out_pad = pl.pallas_call(
        kernel,
        out_shape=jax.ShapeDtypeStruct((n_pad, 128), jnp.float32),
        grid_spec=pltpu.PrefetchScalarGridSpec(
            num_scalar_prefetch=0,
            grid=(n_pad // tile_dst,),
            in_specs=[
                pl.BlockSpec((n_pad, f_in), full),                  # x (all src nodes)
                pl.BlockSpec((tile_dst, f_in), lambda i: (i, 0)),   # x (this dst tile)
                pl.BlockSpec((f_in, n_pad), full),                  # x^T (src on lanes)
                pl.BlockSpec((f_in, HC), full),                     # W
                pl.BlockSpec((f_in, H), full),                      # P_dst (folded)
                pl.BlockSpec((H, f_in), full),                      # P_src^T (folded)
                pl.BlockSpec((tile_dst, n_pad), lambda i: (i, 0)),  # additive edge mask
                pl.BlockSpec((1, HC), full),                        # GAT bias
                pl.BlockSpec((HC, 128), full),                      # classifier W (padded)
                pl.BlockSpec((1, 128), full),                       # classifier b (padded)
            ],
            out_specs=pl.BlockSpec((tile_dst, 128), lambda i: (i, 0)),
        ),
        compiler_params=pltpu.CompilerParams(
            dimension_semantics=("parallel",),
            vmem_limit_bytes=32 * 1024 * 1024),
    )(x_pad, x_pad, xt_pad, w, p_dst, p_src_t,
      mask_bias, params["bias"].astype(jnp.float32), w_cls_pad, b_cls_pad)

    return out_pad[:n, 0:1]


def gat_with_classifier_ref(x, adj, params, *, num_heads, hidden_dim):
    """Pure-JAX (f32) reference implementing the same math."""
    xw = x @ params["w"]
    outs = []
    for h in range(num_heads):
        xw_h = xw[:, h * hidden_dim:(h + 1) * hidden_dim]
        a_src = jnp.sum(xw_h * params["att_src"][h][None, :], axis=-1)
        a_dst = jnp.sum(xw_h * params["att_dst"][h][None, :], axis=-1)
        e = a_dst[:, None] + a_src[None, :]
        e = jnp.where(e > 0, e, 0.2 * e)
        e = jnp.where(adj > 0, e, -1e30)
        attn = jax.nn.softmax(e, axis=1)
        outs.append(attn @ xw_h)
    out = jnp.concatenate(outs, axis=-1) + params["bias"]
    return jax.nn.sigmoid(out @ params["w_cls"] + params["b_cls"])


if __name__ == "__main__":
    # Small graph: N nodes, in_dim features, GATConv(in_dim, hidden, heads).
    N, IN_DIM, HIDDEN, HEADS = 32, 16, 8, 4
    NUM_EDGES = 96

    key = jax.random.PRNGKey(0)
    keys = jax.random.split(key, 10)

    # Node features (analogue of data.x).
    x = jax.random.normal(keys[0], (N, IN_DIM), dtype=jnp.float32)

    # Random edge_index -> dense adjacency mask adj[dst, src]; add self loops.
    src = jax.random.randint(keys[1], (NUM_EDGES,), 0, N)
    dst = jax.random.randint(keys[2], (NUM_EDGES,), 0, N)
    adj = jnp.zeros((N, N), dtype=jnp.float32).at[dst, src].set(1.0)
    adj = adj.at[jnp.arange(N), jnp.arange(N)].set(1.0)

    # edge_attr exists in the PyTorch forward() call but GATConv (edge_dim=None)
    # ignores it, so it is intentionally not fed to the kernel.

    # Deterministic synthetic parameters (glorot-ish scaling).
    params = {
        "w":       0.3 * jax.random.normal(keys[3], (IN_DIM, HEADS * HIDDEN),
                                           dtype=jnp.float32),
        "att_src": 0.3 * jax.random.normal(keys[4], (HEADS, HIDDEN),
                                           dtype=jnp.float32),
        "att_dst": 0.3 * jax.random.normal(keys[5], (HEADS, HIDDEN),
                                           dtype=jnp.float32),
        "bias":    0.1 * jax.random.normal(keys[6], (1, HEADS * HIDDEN),
                                           dtype=jnp.float32),
        "w_cls":   0.3 * jax.random.normal(keys[7], (HEADS * HIDDEN, 1),
                                           dtype=jnp.float32),
        "b_cls":   0.1 * jax.random.normal(keys[8], (1, 1), dtype=jnp.float32),
    }

    # TODO(synk): conv2 / get_node_embedding are not part of forward() and are not
    # implemented; only the forward path (conv1 -> classifier) is kernelized.

    y = gat_with_classifier(x, adj, params, num_heads=HEADS, hidden_dim=HIDDEN)
    y = jax.block_until_ready(y)

    y_ref = gat_with_classifier_ref(x, adj, params,
                                    num_heads=HEADS, hidden_dim=HIDDEN)
    assert y.shape == (N, 1)
    # Tolerance accounts for bf16 MXU operands in the aggregation matmul and the
    # approximate EUP reciprocal (accumulation and everything else is f32).
    assert jnp.allclose(y, y_ref, atol=2e-2, rtol=2e-2), "mismatch vs JAX reference"

    print("KERNEL_OK")
</pallas_src>

<mosaic_0001>
module attributes {stable_mosaic.version = 11 : i64} {
  func.func @gat_classifier_kernel(%arg0: i32, %arg1: memref<128x16xf32, #tpu.memory_space<vmem>>, %arg2: memref<128x16xf32, #tpu.memory_space<vmem>>, %arg3: memref<16x128xf32, #tpu.memory_space<vmem>>, %arg4: memref<16x32xf32, #tpu.memory_space<vmem>>, %arg5: memref<16x4xf32, #tpu.memory_space<vmem>>, %arg6: memref<4x16xf32, #tpu.memory_space<vmem>>, %arg7: memref<128x128xf32, #tpu.memory_space<vmem>>, %arg8: memref<1x32xf32, #tpu.memory_space<vmem>>, %arg9: memref<32x128xf32, #tpu.memory_space<vmem>>, %arg10: memref<1x128xf32, #tpu.memory_space<vmem>>, %arg11: memref<128x128xf32, #tpu.memory_space<vmem>>) attributes {dimension_semantics = [#tpu.dimension_semantics<parallel>], iteration_bounds = array<i64: 1>, scalar_prefetch = 0 : i64, scratch_operands = 0 : i64, tpu.core_type = #tpu.core_type<tc>, window_params = [{pipeline_mode = #tpu.pipeline_mode<synchronous>, transform_indices = @transform_0, window_bounds = array<i64: 128, 16>}, {transform_indices = @transform_1, window_bounds = array<i64: 128, 16>}, {pipeline_mode = #tpu.pipeline_mode<synchronous>, transform_indices = @transform_2, window_bounds = array<i64: 16, 128>}, {pipeline_mode = #tpu.pipeline_mode<synchronous>, transform_indices = @transform_3, window_bounds = array<i64: 16, 32>}, {pipeline_mode = #tpu.pipeline_mode<synchronous>, transform_indices = @transform_4, window_bounds = array<i64: 16, 4>}, {pipeline_mode = #tpu.pipeline_mode<synchronous>, transform_indices = @transform_5, window_bounds = array<i64: 4, 16>}, {transform_indices = @transform_6, window_bounds = array<i64: 128, 128>}, {pipeline_mode = #tpu.pipeline_mode<synchronous>, transform_indices = @transform_7, window_bounds = array<i64: 1, 32>}, {pipeline_mode = #tpu.pipeline_mode<synchronous>, transform_indices = @transform_8, window_bounds = array<i64: 32, 128>}, {pipeline_mode = #tpu.pipeline_mode<synchronous>, transform_indices = @transform_9, window_bounds = array<i64: 1, 128>}, {transform_indices = @transform_10, window_bounds = array<i64: 128, 128>}]} {
    %c0 = arith.constant 0 : index
    %c0_0 = arith.constant 0 : index
    %0 = vector.load %arg7[%c0, %c0_0] : memref<128x128xf32, #tpu.memory_space<vmem>>, vector<128x128xf32>
    %c0_1 = arith.constant 0 : index
    %c0_2 = arith.constant 0 : index
    %1 = vector.load %arg1[%c0_1, %c0_2] : memref<128x16xf32, #tpu.memory_space<vmem>>, vector<128x16xf32>
    %c0_3 = arith.constant 0 : index
    %c0_4 = arith.constant 0 : index
    %2 = vector.load %arg4[%c0_3, %c0_4] : memref<16x32xf32, #tpu.memory_space<vmem>>, vector<16x32xf32>
    %cst = arith.constant dense<0.000000e+00> : vector<128x32xf32>
    %3 = tpu.matmul %1, %2, %cst {dimension_numbers = #tpu.dot_dimension_numbers<[1], [0], [0], [1], [0, 0, 1, 1], [], []>} : vector<128x16xf32>, vector<16x32xf32>, vector<128x32xf32> -> vector<128x32xf32>
    %c0_5 = arith.constant 0 : index
    %c0_6 = arith.constant 0 : index
    %4 = vector.load %arg2[%c0_5, %c0_6] : memref<128x16xf32, #tpu.memory_space<vmem>>, vector<128x16xf32>
    %c0_7 = arith.constant 0 : index
    %c0_8 = arith.constant 0 : index
    %5 = vector.load %arg5[%c0_7, %c0_8] : memref<16x4xf32, #tpu.memory_space<vmem>>, vector<16x4xf32>
    %cst_9 = arith.constant dense<0.000000e+00> : vector<128x4xf32>
    %6 = tpu.matmul %4, %5, %cst_9 {dimension_numbers = #tpu.dot_dimension_numbers<[1], [0], [0], [1], [0, 0, 1, 1], [], []>} : vector<128x16xf32>, vector<16x4xf32>, vector<128x4xf32> -> vector<128x4xf32>
    %c0_10 = arith.constant 0 : index
    %c0_11 = arith.constant 0 : index
    %7 = vector.load %arg6[%c0_10, %c0_11] : memref<4x16xf32, #tpu.memory_space<vmem>>, vector<4x16xf32>
    %c0_12 = arith.constant 0 : index
    %c0_13 = arith.constant 0 : index
    %8 = vector.load %arg3[%c0_12, %c0_13] : memref<16x128xf32, #tpu.memory_space<vmem>>, vector<16x128xf32>
    %cst_14 = arith.constant dense<0.000000e+00> : vector<4x128xf32>
    %9 = tpu.matmul %7, %8, %cst_14 {dimension_numbers = #tpu.dot_dimension_numbers<[1], [0], [0], [1], [0, 0, 1, 1], [], []>} : vector<4x16xf32>, vector<16x128xf32>, vector<4x128xf32> -> vector<4x128xf32>
    %10 = arith.truncf %3 : vector<128x32xf32> to vector<128x32xbf16>
    %11 = tpu.iota {dimensions = array<i32: 1>} : vector<1x32xi32>
    %cst_15 = arith.constant 0.000000e+00 : f32
    %12 = vector.broadcast %cst_15 : f32 to vector<128x32xf32>
    %13 = vector.extract_strided_slice %6 {offsets = [0, 0], sizes = [128, 1], strides = [1, 1]} : vector<128x4xf32> to vector<128x1xf32>
    %14 = vector.extract_strided_slice %9 {offsets = [0, 0], sizes = [1, 128], strides = [1, 1]} : vector<4x128xf32> to vector<1x128xf32>
    %15 = vector.broadcast %13 : vector<128x1xf32> to vector<128x128xf32>
    %16 = vector.broadcast %14 : vector<1x128xf32> to vector<128x128xf32>
    %17 = arith.addf %15, %16 : vector<128x128xf32>
    %cst_16 = arith.constant 0.000000e+00 : f32
    %18 = vector.broadcast %cst_16 : f32 to vector<128x128xf32>
    %19 = arith.cmpf ogt, %17, %18 : vector<128x128xf32>
    %cst_17 = arith.constant 2.000000e-01 : f32
    %20 = vector.broadcast %cst_17 : f32 to vector<128x128xf32>
    %21 = arith.mulf %20, %17 : vector<128x128xf32>
    %22 = arith.select %19, %17, %21 : vector<128x128xi1>, vector<128x128xf32>
    %23 = arith.addf %22, %0 : vector<128x128xf32>
    %cst_18 = arith.constant dense<0xFF800000> : vector<128xf32>
    %24 = vector.multi_reduction <maximumf>, %23, %cst_18 [1] : vector<128x128xf32> to vector<128xf32>
    %25 = vector.shape_cast %24 : vector<128xf32> to vector<128x1xf32>
    %26 = vector.broadcast %25 : vector<128x1xf32> to vector<128x128xf32>
    %27 = arith.subf %23, %26 : vector<128x128xf32>
    %28 = math.exp %27 : vector<128x128xf32>
    %cst_19 = arith.constant dense<0.000000e+00> : vector<128xf32>
    %29 = vector.multi_reduction <add>, %28, %cst_19 [1] : vector<128x128xf32> to vector<128xf32>
    %30 = vector.shape_cast %29 : vector<128xf32> to vector<128x1xf32>
    %31 = tpu.reciprocal %30 {approx = true} : vector<128x1xf32> -> vector<128x1xf32>
    %32 = vector.broadcast %31 : vector<128x1xf32> to vector<128x128xf32>
    %33 = arith.mulf %28, %32 : vector<128x128xf32>
    %c0_i32 = arith.constant 0 : i32
    %34 = vector.broadcast %c0_i32 : i32 to vector<1x32xi32>
    %35 = arith.cmpi sge, %11, %34 : vector<1x32xi32>
    %c8_i32 = arith.constant 8 : i32
    %36 = vector.broadcast %c8_i32 : i32 to vector<1x32xi32>
    %37 = arith.cmpi slt, %11, %36 : vector<1x32xi32>
    %38 = arith.andi %35, %37 : vector<1x32xi1>
    %39 = arith.extui %38 : vector<1x32xi1> to vector<1x32xi32>
    %40 = arith.sitofp %39 : vector<1x32xi32> to vector<1x32xf32>
    %41 = arith.truncf %40 : vector<1x32xf32> to vector<1x32xbf16>
    %42 = vector.broadcast %41 : vector<1x32xbf16> to vector<128x32xbf16>
    %43 = arith.mulf %10, %42 : vector<128x32xbf16>
    %44 = arith.truncf %33 : vector<128x128xf32> to vector<128x128xbf16>
    %cst_20 = arith.constant dense<0.000000e+00> : vector<128x32xf32>
    %45 = tpu.matmul %44, %43, %cst_20 {dimension_numbers = #tpu.dot_dimension_numbers<[1], [0], [0], [1], [0, 0, 1, 1], [], []>} : vector<128x128xbf16>, vector<128x32xbf16>, vector<128x32xf32> -> vector<128x32xf32>
    %46 = arith.addf %12, %45 : vector<128x32xf32>
    %47 = vector.extract_strided_slice %6 {offsets = [0, 1], sizes = [128, 1], strides = [1, 1]} : vector<128x4xf32> to vector<128x1xf32>
    %48 = vector.extract_strided_slice %9 {offsets = [1, 0], sizes = [1, 128], strides = [1, 1]} : vector<4x128xf32> to vector<1x128xf32>
    %49 = vector.broadcast %47 : vector<128x1xf32> to vector<128x128xf32>
    %50 = vector.broadcast %48 : vector<1x128xf32> to vector<128x128xf32>
    %51 = arith.addf %49, %50 : vector<128x128xf32>
    %cst_21 = arith.constant 0.000000e+00 : f32
    %52 = vector.broadcast %cst_21 : f32 to vector<128x128xf32>
    %53 = arith.cmpf ogt, %51, %52 : vector<128x128xf32>
    %cst_22 = arith.constant 2.000000e-01 : f32
    %54 = vector.broadcast %cst_22 : f32 to vector<128x128xf32>
    %55 = arith.mulf %54, %51 : vector<128x128xf32>
    %56 = arith.select %53, %51, %55 : vector<128x128xi1>, vector<128x128xf32>
    %57 = arith.addf %56, %0 : vector<128x128xf32>
    %cst_23 = arith.constant dense<0xFF800000> : vector<128xf32>
    %58 = vector.multi_reduction <maximumf>, %57, %cst_23 [1] : vector<128x128xf32> to vector<128xf32>
    %59 = vector.shape_cast %58 : vector<128xf32> to vector<128x1xf32>
    %60 = vector.broadcast %59 : vector<128x1xf32> to vector<128x128xf32>
    %61 = arith.subf %57, %60 : vector<128x128xf32>
    %62 = math.exp %61 : vector<128x128xf32>
    %cst_24 = arith.constant dense<0.000000e+00> : vector<128xf32>
    %63 = vector.multi_reduction <add>, %62, %cst_24 [1] : vector<128x128xf32> to vector<128xf32>
    %64 = vector.shape_cast %63 : vector<128xf32> to vector<128x1xf32>
    %65 = tpu.reciprocal %64 {approx = true} : vector<128x1xf32> -> vector<128x1xf32>
    %66 = vector.broadcast %65 : vector<128x1xf32> to vector<128x128xf32>
    %67 = arith.mulf %62, %66 : vector<128x128xf32>
    %c8_i32_25 = arith.constant 8 : i32
    %68 = vector.broadcast %c8_i32_25 : i32 to vector<1x32xi32>
    %69 = arith.cmpi sge, %11, %68 : vector<1x32xi32>
    %c16_i32 = arith.constant 16 : i32
    %70 = vector.broadcast %c16_i32 : i32 to vector<1x32xi32>
    %71 = arith.cmpi slt, %11, %70 : vector<1x32xi32>
    %72 = arith.andi %69, %71 : vector<1x32xi1>
    %73 = arith.extui %72 : vector<1x32xi1> to vector<1x32xi32>
    %74 = arith.sitofp %73 : vector<1x32xi32> to vector<1x32xf32>
    %75 = arith.truncf %74 : vector<1x32xf32> to vector<1x32xbf16>
    %76 = vector.broadcast %75 : vector<1x32xbf16> to vector<128x32xbf16>
    %77 = arith.mulf %10, %76 : vector<128x32xbf16>
    %78 = arith.truncf %67 : vector<128x128xf32> to vector<128x128xbf16>
    %cst_26 = arith.constant dense<0.000000e+00> : vector<128x32xf32>
    %79 = tpu.matmul %78, %77, %cst_26 {dimension_numbers = #tpu.dot_dimension_numbers<[1], [0], [0], [1], [0, 0, 1, 1], [], []>} : vector<128x128xbf16>, vector<128x32xbf16>, vector<128x32xf32> -> vector<128x32xf32>
    %80 = arith.addf %46, %79 : vector<128x32xf32>
    %81 = vector.extract_strided_slice %6 {offsets = [0, 2], sizes = [128, 1], strides = [1, 1]} : vector<128x4xf32> to vector<128x1xf32>
    %82 = vector.extract_strided_slice %9 {offsets = [2, 0], sizes = [1, 128], strides = [1, 1]} : vector<4x128xf32> to vector<1x128xf32>
    %83 = vector.broadcast %81 : vector<128x1xf32> to vector<128x128xf32>
    %84 = vector.broadcast %82 : vector<1x128xf32> to vector<128x128xf32>
    %85 = arith.addf %83, %84 : vector<128x128xf32>
    %cst_27 = arith.constant 0.000000e+00 : f32
    %86 = vector.broadcast %cst_27 : f32 to vector<128x128xf32>
    %87 = arith.cmpf ogt, %85, %86 : vector<128x128xf32>
    %cst_28 = arith.constant 2.000000e-01 : f32
    %88 = vector.broadcast %cst_28 : f32 to vector<128x128xf32>
    %89 = arith.mulf %88, %85 : vector<128x128xf32>
    %90 = arith.select %87, %85, %89 : vector<128x128xi1>, vector<128x128xf32>
    %91 = arith.addf %90, %0 : vector<128x128xf32>
    %cst_29 = arith.constant dense<0xFF800000> : vector<128xf32>
    %92 = vector.multi_reduction <maximumf>, %91, %cst_29 [1] : vector<128x128xf32> to vector<128xf32>
    %93 = vector.shape_cast %92 : vector<128xf32> to vector<128x1xf32>
    %94 = vector.broadcast %93 : vector<128x1xf32> to vector<128x128xf32>
    %95 = arith.subf %91, %94 : vector<128x128xf32>
    %96 = math.exp %95 : vector<128x128xf32>
    %cst_30 = arith.constant dense<0.000000e+00> : vector<128xf32>
    %97 = vector.multi_reduction <add>, %96, %cst_30 [1] : vector<128x128xf32> to vector<128xf32>
    %98 = vector.shape_cast %97 : vector<128xf32> to vector<128x1xf32>
    %99 = tpu.reciprocal %98 {approx = true} : vector<128x1xf32> -> vector<128x1xf32>
    %100 = vector.broadcast %99 : vector<128x1xf32> to vector<128x128xf32>
    %101 = arith.mulf %96, %100 : vector<128x128xf32>
    %c16_i32_31 = arith.constant 16 : i32
    %102 = vector.broadcast %c16_i32_31 : i32 to vector<1x32xi32>
    %103 = arith.cmpi sge, %11, %102 : vector<1x32xi32>
    %c24_i32 = arith.constant 24 : i32
    %104 = vector.broadcast %c24_i32 : i32 to vector<1x32xi32>
    %105 = arith.cmpi slt, %11, %104 : vector<1x32xi32>
    %106 = arith.andi %103, %105 : vector<1x32xi1>
    %107 = arith.extui %106 : vector<1x32xi1> to vector<1x32xi32>
    %108 = arith.sitofp %107 : vector<1x32xi32> to vector<1x32xf32>
    %109 = arith.truncf %108 : vector<1x32xf32> to vector<1x32xbf16>
    %110 = vector.broadcast %109 : vector<1x32xbf16> to vector<128x32xbf16>
    %111 = arith.mulf %10, %110 : vector<128x32xbf16>
    %112 = arith.truncf %101 : vector<128x128xf32> to vector<128x128xbf16>
    %cst_32 = arith.constant dense<0.000000e+00> : vector<128x32xf32>
    %113 = tpu.matmul %112, %111, %cst_32 {dimension_numbers = #tpu.dot_dimension_numbers<[1], [0], [0], [1], [0, 0, 1, 1], [], []>} : vector<128x128xbf16>, vector<128x32xbf16>, vector<128x32xf32> -> vector<128x32xf32>
    %114 = arith.addf %80, %113 : vector<128x32xf32>
    %115 = vector.extract_strided_slice %6 {offsets = [0, 3], sizes = [128, 1], strides = [1, 1]} : vector<128x4xf32> to vector<128x1xf32>
    %116 = vector.extract_strided_slice %9 {offsets = [3, 0], sizes = [1, 128], strides = [1, 1]} : vector<4x128xf32> to vector<1x128xf32>
    %117 = vector.broadcast %115 : vector<128x1xf32> to vector<128x128xf32>
    %118 = vector.broadcast %116 : vector<1x128xf32> to vector<128x128xf32>
    %119 = arith.addf %117, %118 : vector<128x128xf32>
    %cst_33 = arith.constant 0.000000e+00 : f32
    %120 = vector.broadcast %cst_33 : f32 to vector<128x128xf32>
    %121 = arith.cmpf ogt, %119, %120 : vector<128x128xf32>
    %cst_34 = arith.constant 2.000000e-01 : f32
    %122 = vector.broadcast %cst_34 : f32 to vector<128x128xf32>
    %123 = arith.mulf %122, %119 : vector<128x128xf32>
    %124 = arith.select %121, %119, %123 : vector<128x128xi1>, vector<128x128xf32>
    %125 = arith.addf %124, %0 : vector<128x128xf32>
    %cst_35 = arith.constant dense<0xFF800000> : vector<128xf32>
    %126 = vector.multi_reduction <maximumf>, %125, %cst_35 [1] : vector<128x128xf32> to vector<128xf32>
    %127 = vector.shape_cast %126 : vector<128xf32> to vector<128x1xf32>
    %128 = vector.broadcast %127 : vector<128x1xf32> to vector<128x128xf32>
    %129 = arith.subf %125, %128 : vector<128x128xf32>
    %130 = math.exp %129 : vector<128x128xf32>
    %cst_36 = arith.constant dense<0.000000e+00> : vector<128xf32>
    %131 = vector.multi_reduction <add>, %130, %cst_36 [1] : vector<128x128xf32> to vector<128xf32>
    %132 = vector.shape_cast %131 : vector<128xf32> to vector<128x1xf32>
    %133 = tpu.reciprocal %132 {approx = true} : vector<128x1xf32> -> vector<128x1xf32>
    %134 = vector.broadcast %133 : vector<128x1xf32> to vector<128x128xf32>
    %135 = arith.mulf %130, %134 : vector<128x128xf32>
    %c24_i32_37 = arith.constant 24 : i32
    %136 = vector.broadcast %c24_i32_37 : i32 to vector<1x32xi32>
    %137 = arith.cmpi sge, %11, %136 : vector<1x32xi32>
    %c32_i32 = arith.constant 32 : i32
    %138 = vector.broadcast %c32_i32 : i32 to vector<1x32xi32>
    %139 = arith.cmpi slt, %11, %138 : vector<1x32xi32>
    %140 = arith.andi %137, %139 : vector<1x32xi1>
    %141 = arith.extui %140 : vector<1x32xi1> to vector<1x32xi32>
    %142 = arith.sitofp %141 : vector<1x32xi32> to vector<1x32xf32>
    %143 = arith.truncf %142 : vector<1x32xf32> to vector<1x32xbf16>
    %144 = vector.broadcast %143 : vector<1x32xbf16> to vector<128x32xbf16>
    %145 = arith.mulf %10, %144 : vector<128x32xbf16>
    %146 = arith.truncf %135 : vector<128x128xf32> to vector<128x128xbf16>
    %cst_38 = arith.constant dense<0.000000e+00> : vector<128x32xf32>
    %147 = tpu.matmul %146, %145, %cst_38 {dimension_numbers = #tpu.dot_dimension_numbers<[1], [0], [0], [1], [0, 0, 1, 1], [], []>} : vector<128x128xbf16>, vector<128x32xbf16>, vector<128x32xf32> -> vector<128x32xf32>
    %148 = arith.addf %114, %147 : vector<128x32xf32>
    %c0_39 = arith.constant 0 : index
    %c0_40 = arith.constant 0 : index
    %149 = vector.load %arg8[%c0_39, %c0_40] : memref<1x32xf32, #tpu.memory_space<vmem>>, vector<1x32xf32>
    %150 = vector.broadcast %149 : vector<1x32xf32> to vector<128x32xf32>
    %151 = arith.addf %148, %150 : vector<128x32xf32>
    %c0_41 = arith.constant 0 : index
    %c0_42 = arith.constant 0 : index
    %152 = vector.load %arg9[%c0_41, %c0_42] : memref<32x128xf32, #tpu.memory_space<vmem>>, vector<32x128xf32>
    %cst_43 = arith.constant dense<0.000000e+00> : vector<128x128xf32>
    %153 = tpu.matmul %151, %152, %cst_43 {dimension_numbers = #tpu.dot_dimension_numbers<[1], [0], [0], [1], [0, 0, 1, 1], [], []>} : vector<128x32xf32>, vector<32x128xf32>, vector<128x128xf32> -> vector<128x128xf32>
    %c0_44 = arith.constant 0 : index
    %c0_45 = arith.constant 0 : index
    %154 = vector.load %arg10[%c0_44, %c0_45] : memref<1x128xf32, #tpu.memory_space<vmem>>, vector<1x128xf32>
    %155 = vector.broadcast %154 : vector<1x128xf32> to vector<128x128xf32>
    %156 = arith.addf %153, %155 : vector<128x128xf32>
    %157 = arith.negf %156 : vector<128x128xf32>
    %158 = math.exp %157 : vector<128x128xf32>
    %cst_46 = arith.constant 1.000000e+00 : f32
    %159 = vector.broadcast %cst_46 : f32 to vector<128x128xf32>
    %160 = arith.addf %159, %158 : vector<128x128xf32>
    %161 = arith.divf %159, %160 : vector<128x128xf32>
    %c0_47 = arith.constant 0 : index
    %c0_48 = arith.constant 0 : index
    %162 = vector.load %arg11[%c0_47, %c0_48] : memref<128x128xf32, #tpu.memory_space<vmem>>, vector<128x128xf32>
    tpu.vector_store %arg11[%c0_47, %c0_48], %161 {strides = array<i32>} : memref<128x128xf32, #tpu.memory_space<vmem>>, vector<128x128xf32>,
    return
  }
  func.func @transform_0(%arg0: i32) -> (i32, i32) {
    %c0_i32 = arith.constant 0 : i32
    %c0_i32_0 = arith.constant 0 : i32
    %c0_i32_1 = arith.constant 0 : i32
    return %c0_i32, %c0_i32_0 : i32, i32
  }
  func.func @transform_1(%arg0: i32) -> (i32, i32) {
    %c0_i32 = arith.constant 0 : i32
    %c0_i32_0 = arith.constant 0 : i32
    return %arg0, %c0_i32 : i32, i32
  }
  func.func @transform_2(%arg0: i32) -> (i32, i32) {
    %c0_i32 = arith.constant 0 : i32
    %c0_i32_0 = arith.constant 0 : i32
    %c0_i32_1 = arith.constant 0 : i32
    return %c0_i32, %c0_i32_0 : i32, i32
  }
  func.func @transform_3(%arg0: i32) -> (i32, i32) {
    %c0_i32 = arith.constant 0 : i32
    %c0_i32_0 = arith.constant 0 : i32
    %c0_i32_1 = arith.constant 0 : i32
    return %c0_i32, %c0_i32_0 : i32, i32
  }
  func.func @transform_4(%arg0: i32) -> (i32, i32) {
    %c0_i32 = arith.constant 0 : i32
    %c0_i32_0 = arith.constant 0 : i32
    %c0_i32_1 = arith.constant 0 : i32
    return %c0_i32, %c0_i32_0 : i32, i32
  }
  func.func @transform_5(%arg0: i32) -> (i32, i32) {
    %c0_i32 = arith.constant 0 : i32
    %c0_i32_0 = arith.constant 0 : i32
    %c0_i32_1 = arith.constant 0 : i32
    return %c0_i32, %c0_i32_0 : i32, i32
  }
  func.func @transform_6(%arg0: i32) -> (i32, i32) {
    %c0_i32 = arith.constant 0 : i32
    %c0_i32_0 = arith.constant 0 : i32
    return %arg0, %c0_i32 : i32, i32
  }
  func.func @transform_7(%arg0: i32) -> (i32, i32) {
    %c0_i32 = arith.constant 0 : i32
    %c0_i32_0 = arith.constant 0 : i32
    %c0_i32_1 = arith.constant 0 : i32
    return %c0_i32, %c0_i32_0 : i32, i32
  }
  func.func @transform_8(%arg0: i32) -> (i32, i32) {
    %c0_i32 = arith.constant 0 : i32
    %c0_i32_0 = arith.constant 0 : i32
    %c0_i32_1 = arith.constant 0 : i32
    return %c0_i32, %c0_i32_0 : i32, i32
  }
  func.func @transform_9(%arg0: i32) -> (i32, i32) {
    %c0_i32 = arith.constant 0 : i32
    %c0_i32_0 = arith.constant 0 : i32
    %c0_i32_1 = arith.constant 0 : i32
    return %c0_i32, %c0_i32_0 : i32, i32
  }
  func.func @transform_10(%arg0: i32) -> (i32, i32) {
    %c0_i32 = arith.constant 0 : i32
    %c0_i32_0 = arith.constant 0 : i32
    return %arg0, %c0_i32 : i32, i32
  }
}

</mosaic_0001>

<bundles_post_ra>
// kernel: tpu_custom_call.1
= control target key start
LH: loop header
LB: loop body
LE: loop exit
PB: predicated region body
PF: predicated region fallthrough
CT: control target
= control target key end

     0   :  { %vm71_vm0 = vcmask 130048   ;;  %v3500_v4 = vmov 2   ;;  %v3501_v5 = vmov 0   ;;  %v560_v12 = vlaneseq  ;;  %s4991_s0 = inlined_call_operand.vmem [shape: f32[128,16], index: 0, kind: input, shape index: {}]   ;;  %s4992_s1 = inlined_call_operand.vmem [shape: f32[128,16], index: 1, kind: input, shape index: {}]   ;;  %s4993_s2 = inlined_call_operand.vmem [shape: f32[16,128], index: 2, kind: input, shape index: {}]   ;;  %s4994_s3 = inlined_call_operand.vmem [shape: f32[16,32], index: 3, kind: input, shape index: {}]   ;;  %s4995_s4 = inlined_call_operand.vmem [shape: f32[16,4], index: 4, kind: input, shape index: {}]   ;;  %s4996_s5 = inlined_call_operand.vmem [shape: f32[4,16], index: 5, kind: input, shape index: {}]   ;;  %s4997_s6 = inlined_call_operand.vmem [shape: f32[128,128], index: 6, kind: input, shape index: {}]   ;;  %s4998_s7 = inlined_call_operand.vmem [shape: f32[1,32], index: 7, kind: input, shape index: {}]   ;;  %s4999_s8 = inlined_call_operand.vmem [shape: f32[32,128], index: 8, kind: input, shape index: {}]   ;;  %s5000_s9 = inlined_call_operand.vmem [shape: f32[1,128], index: 9, kind: input, shape index: {}]   ;;  %s5001_s10 = inlined_call_operand.hbm [shape: f32[128,128], index: 10, kind: output, shape index: {}]  }
   0x1   :  { %v281_v0 = vld [vmem:[%s4995_s4] sm:$0xff]  ;;  %v282_v1 = vld [vmem:[%s4995_s4 + $0x8] sm:$0xff]  ;;  %3105 = vset.pattern.permute.xlu1 %v3500_v4  ;;  %3104 = vset.pattern.permute.xlu0 %v3501_v5  ;;  %v267_v7 = vld [vmem:[%s4992_s1 + $0x10] sm:$0xff]  ;;  %v3502_v18 = vmov 0.0|0.0   ;;  %v3503_v26 = vmov 0.0  }
   0x2   :  { %v265_v2 = vld [vmem:[%s4992_s1] sm:$0xff]  ;;  %v3031_v3 = vpack.c.bf16 %v282_v1, %v281_v0  ;;  %v266_v6 = vld [vmem:[%s4992_s1 + $0x8] sm:$0xff]  ;;  %v268_v13 = vld [vmem:[%s4992_s1 + $0x18] sm:$0xff]  ;;  %v3602_v15 = vand.u32 127, %v560_v12 }
   0x3   :  { %2836 = vmatprep.mubr.msk.f32.mxu1 %vm71_vm0, %v265_v2  ;;  %v69_v8 = vld [vmem:[%s4994_s3] sm:$0xff]  ;;  %v70_v9 = vld [vmem:[%s4994_s3 + $0x8] sm:$0xff]  ;;  %v55_v17 = vld [vmem:[%s4991_s0 + $0x10] sm:$0xff] }
   0x4   :  { %3032 = vmatprep.subr.bf16.mxu1 %v3031_v3  ;;  %v53_v10 = vld [vmem:[%s4991_s0] sm:$0xff]  ;;  %v3027_v11 = vpack.c.bf16 %v70_v9, %v69_v8  ;;  %v54_v16 = vld [vmem:[%s4991_s0 + $0x8] sm:$0xff]  ;;  %vm2119_vm1 = vcmp.ge.s32.totalorder %v3602_v15, 24  ;;  %vm2120_vm2 = vcmp.lt.s32.totalorder %v3602_v15, 32  ;;  %v271_v22 = vld [vmem:[%s4992_s1 + $0x30] sm:$0xff] }
   0x5   :  { %3034 = vmatpush3.bf16.msra.mxu1 %v3031_v3  ;;  %2808 = vmatprep.mubr.msk.f32.mxu0 %vm71_vm0, %v53_v10  ;;  %v269_v14 = vld [vmem:[%s4992_s1 + $0x20] sm:$0xff]  ;;  %v270_v19 = vld [vmem:[%s4992_s1 + $0x28] sm:$0xff]  ;;  %v56_v24 = vld [vmem:[%s4991_s0 + $0x18] sm:$0xff] }
   0x6   :  { %3028 = vmatprep.subr.bf16.mxu0 %v3027_v11  ;;  %v477_v20 = vld [vmem:[%s4993_s2] sm:$0xff]  ;;  %v478_v21 = vld [vmem:[%s4993_s2 + $0x8] sm:$0xff]  ;;  %vm2121_vm3 = vmand %vm2119_vm1, %vm2120_vm2 }
   0x7   :  { %3030 = vmatpush3.bf16.msra.mxu0 %v3027_v11  ;;  %v3036_v23 = vpack.c.bf16 %v478_v21, %v477_v20  ;;  %v57_v25 = vld [vmem:[%s4991_s0 + $0x20] sm:$0xff]  ;;  %v3636_v27 = vsel %vm2121_vm3, 1.0, %v3503_v26 }
   0x8   :  { %2837 = vmatmul.mubr.msk.f32.vlgmr.msra.gmra.mrb[0].mxu1 %vm71_vm0, %v266_v6  ;;  %3035 = vmatprep.subr.bf16.mxu0 %v3502_v18 }
   0x9   :  { %2839 = vmatprep.mubr.msk.f32.mxu1 %vm71_vm0, %v267_v7 }
   0xa   :  { %2809 = vmatmul.mubr.msk.f32.vlgmr.msra.gmra.mrb[0].mxu0 %vm71_vm0, %v54_v16 }
   0xb   :  { %2811 = vmatprep.mubr.msk.f32.mxu0 %vm71_vm0, %v55_v17  ;;  %3037 = vmatpush3.bf16.msra.mxu0 %v3036_v23 }
   0xc   :  { %2840 = vmatmul.mubr.msk.f32.gmra.mrb[2].mxu1 %vm71_vm0, %v268_v13 }
   0xd   :  { %2842 = vmatprep.mubr.msk.f32.mxu1 %vm71_vm0, %v269_v14 }
  0x10   :  { %2843 = vmatmul.mubr.msk.f32.gmra.mrb[4].mxu1 %vm71_vm0, %v270_v19 }
  0x11   :  { %15 = vsyncpa [#allocation3], 0  ;;  %2845 = vmatprep.mubr.msk.f32.mxu1 %vm71_vm0, %v271_v22  ;;  %v272_v28 = vld [vmem:[%s4992_s1 + $0x38] sm:$0xff]  ;;  %v273_v29 = vld [vmem:[%s4992_s1 + $0x40] sm:$0xff]  ;;  %2812 = vmatmul.mubr.msk.f32.gmra.mrb[2].mxu0 %vm71_vm0, %v56_v24  ;;  %vm3504_vm4 = vmmov 0   ;;  %v5002_v52 = vmov 3  }
  0x12   :  { %2814 = vmatprep.mubr.msk.f32.mxu0 %vm71_vm0, %v57_v25  ;;  %v58_v30 = vld [vmem:[%s4991_s0 + $0x28] sm:$0xff]  ;;  %v59_v31 = vld [vmem:[%s4991_s0 + $0x30] sm:$0xff]  ;;  %v60_v34 = vld [vmem:[%s4991_s0 + $0x38] sm:$0xff]  ;;  %v3506_v59 = vmov 1   ;;  %vm871_vm5 = vcmp.lt.s32.totalorder %v3602_v15, 8  ;;  %vm1184_vm6 = vcmp.ge.s32.totalorder %v3602_v15, 8 }
  0x13   :  { %v274_v32 = vld [vmem:[%s4992_s1 + $0x48] sm:$0xff]  ;;  %v275_v33 = vld [vmem:[%s4992_s1 + $0x50] sm:$0xff]  ;;  %v61_v35 = vld [vmem:[%s4991_s0 + $0x40] sm:$0xff]  ;;  %v2643_v21 = vsel %vm871_vm5, 1.0, %v3503_v26  ;;  %vm1185_vm7 = vcmp.lt.s32.totalorder %v3602_v15, 16  ;;  %vm1692_vm8 = vcmp.ge.s32.totalorder %v3602_v15, 16 }
  0x14   :  { %2846 = vmatmul.mubr.msk.f32.gmra.mrb[6].mxu1 %vm71_vm0, %v272_v28  ;;  %v276_v36 = vld [vmem:[%s4992_s1 + $0x58] sm:$0xff]  ;;  %v277_v37 = vld [vmem:[%s4992_s1 + $0x60] sm:$0xff]  ;;  %v62_v38 = vld [vmem:[%s4991_s0 + $0x48] sm:$0xff]  ;;  %v3783_v28 = vpack.c.bf16 %v2643_v21, %v2643_v21  ;;  %vm1693_vm9 = vcmp.lt.s32.totalorder %v3602_v15, 24 }
  0x15   :  { %2848 = vmatprep.mubr.msk.f32.mxu1 %vm71_vm0, %v273_v29  ;;  %2815 = vmatmul.mubr.msk.f32.gmra.mrb[4].mxu0 %vm71_vm0, %v58_v30  ;;  %v63_v39 = vld [vmem:[%s4991_s0 + $0x50] sm:$0xff]  ;;  %v278_v40 = vld [vmem:[%s4992_s1 + $0x68] sm:$0xff]  ;;  %v64_v42 = vld [vmem:[%s4991_s0 + $0x58] sm:$0xff]  ;;  %v643_v30 = vshrl.u32 %v560_v12, 7 }
  0x16   :  { %2817 = vmatprep.mubr.msk.f32.mxu0 %vm71_vm0, %v59_v31  ;;  %v279_v41 = vld [vmem:[%s4992_s1 + $0x70] sm:$0xff]  ;;  %v65_v43 = vld [vmem:[%s4991_s0 + $0x60] sm:$0xff]  ;;  %v280_v44 = vld [vmem:[%s4992_s1 + $0x78] sm:$0xff] }
  0x17   :  { %v66_v45 = vld [vmem:[%s4991_s0 + $0x68] sm:$0xff]  ;;  %v67_v46 = vld [vmem:[%s4991_s0 + $0x70] sm:$0xff]  ;;  %v68_v47 = vld [vmem:[%s4991_s0 + $0x78] sm:$0xff] }
  0x18   :  { %2849 = vmatmul.mubr.msk.f32.gmra.mrb[8].mxu1 %vm71_vm0, %v274_v32  ;;  %v476_v48 = vld [vmem:[%s4996_s5] sm:$0xf]  ;;  %vm1186_vm10 = vmand %vm1184_vm6, %vm1185_vm7 }
  0x19   :  { %2851 = vmatprep.mubr.msk.f32.mxu1 %vm71_vm0, %v275_v33  ;;  %2818 = vmatmul.mubr.msk.f32.gmra.mrb[6].mxu0 %vm71_vm0, %v60_v34  ;;  %vm1694_vm11 = vmand %vm1692_vm8, %vm1693_vm9 }
  0x1a   :  { %2820 = vmatprep.mubr.msk.f32.mxu0 %vm71_vm0, %v61_v35  ;;  %v644_v35 = vsub.s32 0, %v643_v30  ;;  %v2645_v15 = vsel %vm1694_vm11, 1.0, %v3503_v26 }
  0x1c   :  { %2852 = vmatmul.mubr.msk.f32.gmra.mrb[10].mxu1 %vm71_vm0, %v276_v36  ;;  %v958_v36 = vsub.s32 1, %v643_v30 }
  0x1d   :  { %2854 = vmatprep.mubr.msk.f32.mxu1 %vm71_vm0, %v277_v37  ;;  %2821 = vmatmul.mubr.msk.f32.gmra.mrb[8].mxu0 %vm71_vm0, %v62_v38  ;;  %v1466_v37 = vsub.s32 2, %v643_v30  ;;  %v1893_v38 = vsub.s32 3, %v643_v30 }
  0x1e   :  { %2823 = vmatprep.mubr.msk.f32.mxu0 %vm71_vm0, %v63_v39 }
  0x20   :  { %2855 = vmatmul.mubr.msk.f32.gmra.mrb[12].mxu1 %vm71_vm0, %v278_v40 }
  0x21   :  { %2857 = vmatprep.mubr.msk.f32.mxu1 %vm71_vm0, %v279_v41  ;;  %2824 = vmatmul.mubr.msk.f32.gmra.mrb[10].mxu0 %vm71_vm0, %v64_v42 }
  0x22   :  { %2826 = vmatprep.mubr.msk.f32.mxu0 %vm71_vm0, %v65_v43 }
  0x24   :  { %2858 = vmatmul.mubr.msk.f32.gmra.mrb[14].mxu1 %vm71_vm0, %v280_v44 }
  0x25   :  { %2827 = vmatmul.mubr.msk.f32.gmra.mrb[12].mxu0 %vm71_vm0, %v66_v45 }
  0x26   :  { %2829 = vmatprep.mubr.msk.f32.mxu0 %vm71_vm0, %v67_v46 }
  0x29   :  { %2830 = vmatmul.mubr.msk.f32.gmra.mrb[14].mxu0 %vm71_vm0, %v68_v47 }
  0x2a   :  { %2864 = vmatprep.mubr.msk.f32.mxu0 %vm3504_vm4, %v3503_v26 }
  0x2d   :  { %2865 = vmatmul.mubr.msk.f32.vlgmr.msra.gmra.mrb[16].mxu0 %vm71_vm0, %v476_v48 }
  0xdb   :  { %v3726_v49 = vpop.f32.mrb[0].mxu1 }
  0xdc   :  { %1405 = vperm.xlu1 %3105, %v3726_v49   ;;  %569 = vperm.xlu0 %3104, %v3726_v49   ;;  %v397_v50 = vpop.f32.mrb[1].mxu1 }
  0xdd   :  { %v2810_v54 = vpop.f32.mrb[0].mxu0 }
  0xde   :  { %v186_v55 = vpop.f32.mrb[1].mxu0 }
  0xdf   :  { %v2841_v51 = vpop.f32.mrb[2].mxu1  ;;  %v3736_v57 = vpack.c.bf16 %v2810_v54, %v186_v55  ;;  %v2644_v54 = vsel %vm1186_vm10, 1.0, %v3503_v26  ;;  %v3849_v26 = vpack.c.bf16 %v3636_v27, %v3636_v27 }
  0xe0   :  { %3106 = vset.pattern.permute.xlu1 %v5002_v52  ;;  %564 = vperm.xlu0 %3104, %v397_v50   ;;  %v3731_v53 = vpop.f32.mrb[3].mxu1 }
  0xe1   :  { %1832 = vperm.xlu1 %3106, %v3726_v49   ;;  %v876_v34 = vmul.bf16 %v3783_v28, %v3736_v57  ;;  %v3865_v27 = vmul.bf16 %v3849_v26, %v3736_v57 }
  0xe3   :  { %v3734_v56 = vpop.f32.mrb[4].mxu1  ;;  %2899 = vmatprep.subr.bf16.mxu1 %v876_v34  ;;  %5070 = vst [vmem:[#allocation6_spill] sm:$0xff] %v3865_v27 }
  0xe4   :  { %3107 = vset.pattern.permute.xlu0 %v3500_v4  ;;  %v3739_v58 = vpop.f32.mrb[5].mxu1  ;;  %v2813_v60 = vpop.f32.mrb[2].mxu0  ;;  %2900 = vmatpush3.bf16.msra.mxu1 %v876_v34 }
  0xe5   :  { %3108 = vset.pattern.permute.xlu1 %v3506_v59  ;;  %1401 = vperm.xlu0 %3107, %v397_v50   ;;  %v196_v61 = vpop.f32.mrb[3].mxu0 }
  0xe6   :  { %893 = vperm.xlu1 %3108, %v397_v50   ;;  %v3744_v63 = vpack.c.bf16 %v2813_v60, %v196_v61  ;;  %v3840_v60 = vpack.c.bf16 %v2644_v54, %v2644_v54  ;;  %v3843_v61 = vpack.c.bf16 %v2645_v15, %v2645_v15 }
  0xe7   :  { %v3742_v62 = vpop.f32.mrb[6].mxu1 }
  0xe8   :  { %v3746_v0 = vpop.f32.mrb[7].mxu1  ;;  %v2816_v1 = vpop.f32.mrb[4].mxu0  ;;  %v877_v41 = vmul.bf16 %v3783_v28, %v3744_v63 }
  0xe9   :  { %1413 = vperm.xlu0 %3107, %v2841_v51   ;;  %v206_v2 = vpop.f32.mrb[5].mxu0 }
  0xea   :  { %3109 = vset.pattern.permute.xlu1 %v5002_v52  ;;  %v3751_v6 = vpack.c.bf16 %v2816_v1, %v206_v2  ;;  %2901 = vmatprep.subr.bf16.mxu1 %v877_v41  ;;  %v1190_v1 = vmul.bf16 %v3840_v60, %v3736_v57  ;;  %v3859_v2 = vmul.bf16 %v3843_v61, %v3736_v57 }
  0xeb   :  { %1828 = vperm.xlu1 %3109, %v397_v50   ;;  %v3749_v3 = vpop.f32.mrb[8].mxu1  ;;  %2902 = vmatpush3.bf16.msra.mxu1 %v877_v41  ;;  %v3879_v57 = vmul.bf16 %v3849_v26, %v3744_v63 }
  0xec   :  { %v3753_v7 = vpop.f32.mrb[9].mxu1  ;;  %v2819_v8 = vpop.f32.mrb[6].mxu0  ;;  %v878_v47 = vmul.bf16 %v3783_v28, %v3751_v6  ;;  %5069 = vst [vmem:[#allocation5_spill] sm:$0xff] %v3859_v2  ;;  %2867 = vmatprep.subr.bf16.mxu0 %v1190_v1 }
  0xed   :  { %3115 = vset.pattern.permute.xlu0 %v5002_v52  ;;  %v216_v9 = vpop.f32.mrb[7].mxu0  ;;  %2868 = vmatpush3.bf16.msra.mxu0 %v1190_v1  ;;  %5072 = vst [vmem:[#allocation8_spill] sm:$0xff] %v3879_v57 }
  0xee   :  { %1836 = vperm.xlu0 %3115, %v3731_v53   ;;  %v3760_v11 = vpack.c.bf16 %v2819_v8, %v216_v9  ;;  %2903 = vmatprep.subr.bf16.mxu1 %v878_v47  ;;  %v1191_v8 = vmul.bf16 %v3840_v60, %v3744_v63  ;;  %v3875_v9 = vmul.bf16 %v3843_v61, %v3744_v63 }
  0xef   :  { %3110 = vset.pattern.permute.xlu1 %v3501_v5  ;;  %v3758_v10 = vpop.f32.mrb[10].mxu1  ;;  %2904 = vmatpush3.bf16.msra.mxu1 %v878_v47 }
  0xf0   :  { %579 = vperm.xlu1 %3110, %v2841_v51   ;;  %v3762_v13 = vpop.f32.mrb[11].mxu1  ;;  %v2822_v14 = vpop.f32.mrb[8].mxu0  ;;  %v879_v48 = vmul.bf16 %v3783_v28, %v3760_v11  ;;  %2869 = vmatprep.subr.bf16.mxu0 %v1191_v8  ;;  %5071 = vst [vmem:[#allocation7_spill] sm:$0xff] %v3875_v9  ;;  %v1193_v63 = vmul.bf16 %v3840_v60, %v3760_v11 }
  0xf1   :  { %v226_v16 = vpop.f32.mrb[9].mxu0  ;;  %2870 = vmatpush3.bf16.msra.mxu0 %v1191_v8  ;;  %v3901_v21 = vmul.bf16 %v3843_v61, %v3760_v11 }
  0xf2   :  { %3117 = vset.pattern.permute.xlu0 %v3500_v4  ;;  %v3769_v18 = vpack.c.bf16 %v2822_v14, %v226_v16  ;;  %2905 = vmatprep.subr.bf16.mxu1 %v879_v48  ;;  %v1192_v14 = vmul.bf16 %v3840_v60, %v3751_v6  ;;  %v3888_v16 = vmul.bf16 %v3843_v61, %v3751_v6 }
  0xf3   :  { %1421 = vperm.xlu0 %3117, %v3734_v56   ;;  %v3767_v17 = vpop.f32.mrb[12].mxu1  ;;  %2906 = vmatpush3.bf16.msra.mxu1 %v879_v48  ;;  %5075 = vst [vmem:[#allocation11_spill] sm:$0xff] %v3901_v21  ;;  %v4097_v21 = vld [vmem:[%s4997_s6 + $0x40] sm:$0xff] }
  0xf4   :  { %3111 = vset.pattern.permute.xlu1 %v3506_v59  ;;  %v3772_v19 = vpop.f32.mrb[13].mxu1  ;;  %v2825_v20 = vpop.f32.mrb[10].mxu0  ;;  %v880_v50 = vmul.bf16 %v3783_v28, %v3769_v18  ;;  %2871 = vmatprep.subr.bf16.mxu0 %v1192_v14  ;;  %5073 = vst [vmem:[#allocation9_spill] sm:$0xff] %v3888_v16 }
  0xf5   :  { %905 = vperm.xlu1 %3111, %v2841_v51   ;;  %v236_v22 = vpop.f32.mrb[11].mxu0  ;;  %2872 = vmatpush3.bf16.msra.mxu0 %v1192_v14 }
  0xf6   :  { %v3778_v24 = vpack.c.bf16 %v2825_v20, %v236_v22  ;;  %2907 = vmatprep.subr.bf16.mxu1 %v880_v50  ;;  %v3892_v20 = vmul.bf16 %v3849_v26, %v3751_v6  ;;  %2873 = vmatprep.subr.bf16.mxu0 %v1193_v63  ;;  %v3905_v22 = vmul.bf16 %v3849_v26, %v3760_v11 }
  0xf7   :  { %3120 = vset.pattern.permute.xlu0 %v3501_v5  ;;  %v3776_v23 = vpop.f32.mrb[14].mxu1  ;;  %2908 = vmatpush3.bf16.msra.mxu1 %v880_v50  ;;  %v1194_v6 = vmul.bf16 %v3840_v60, %v3769_v18 }
  0xf8   :  { %584 = vperm.xlu0 %3120, %v3739_v58   ;;  %v3781_v25 = vpop.f32.mrb[15].mxu1  ;;  %v2828_v29 = vpop.f32.mrb[12].mxu0  ;;  %5074 = vst [vmem:[#allocation10_spill] sm:$0xff] %v3892_v20  ;;  %5076 = vst [vmem:[#allocation12_spill] sm:$0xff] %v3905_v22  ;;  %v1195_v11 = vmul.bf16 %v3840_v60, %v3778_v24  ;;  %v3928_v30 = vmul.bf16 %v3843_v61, %v3778_v24 }
  0xf9   :  { %3112 = vset.pattern.permute.xlu1 %v5002_v52  ;;  %v246_v31 = vpop.f32.mrb[13].mxu0  ;;  %2874 = vmatpush3.bf16.msra.mxu0 %v1193_v63 }
  0xfa   :  { %1840 = vperm.xlu1 %3112, %v2841_v51   ;;  %v3787_v32 = vpack.c.bf16 %v2828_v29, %v246_v31  ;;  %v881_v51 = vmul.bf16 %v3783_v28, %v3778_v24  ;;  %2875 = vmatprep.subr.bf16.mxu0 %v1194_v6  ;;  %v3918_v29 = vmul.bf16 %v3849_v26, %v3769_v18 }
  0xfb   :  { %5079 = vst [vmem:[#allocation15_spill] sm:$0xff] %v3928_v30 }
  0xfc   :  { %3124 = vset.pattern.permute.xlu0 %v3500_v4  ;;  %v2831_v33 = vpop.f32.mrb[14].mxu0  ;;  %2909 = vmatprep.subr.bf16.mxu1 %v881_v51  ;;  %v882_v55 = vmul.bf16 %v3783_v28, %v3787_v32  ;;  %5078 = vst [vmem:[#allocation14_spill] sm:$0xff] %v3918_v29  ;;  %v1196_v31 = vmul.bf16 %v3840_v60, %v3787_v32 }
  0xfd   :  { %1429 = vperm.xlu0 %3124, %v3742_v62   ;;  %v256_v39 = vpop.f32.mrb[15].mxu0  ;;  %2910 = vmatpush3.bf16.msra.mxu1 %v881_v51  ;;  %v3944_v34 = vmul.bf16 %v3849_v26, %v3787_v32 }
  0xfe   :  { %3113 = vset.pattern.permute.xlu1 %v3501_v5  ;;  %v3795_v12 = vpack.c.bf16 %v2831_v33, %v256_v39  ;;  %2911 = vmatprep.subr.bf16.mxu1 %v882_v55  ;;  %v3940_v33 = vmul.bf16 %v3843_v61, %v3787_v32  ;;  %v3979_v39 = vld [vmem:[%s4997_s6 + $0x8] sm:$0xff] }
  0xff   :  { %574 = vperm.xlu1 %3113, %v3731_v53   ;;  %2876 = vmatpush3.bf16.msra.mxu0 %v1194_v6  ;;  %5082 = vst [vmem:[#allocation18_spill] sm:$0xff] %v3944_v34 }
 0x100   :  { %v548_v40 = vpop.f32.mrb[16].mxu0  ;;  %2877 = vmatprep.subr.bf16.mxu0 %v1195_v11  ;;  %5081 = vst [vmem:[#allocation17_spill] sm:$0xff] %v3940_v33 }
 0x101   :  { %3126 = vset.pattern.permute.xlu0 %v3501_v5  ;;  %v3801_v42 = vrot.slane %v548_v40, %v644_v35  ;;  %v3803_v43 = vrot.slane %v548_v40, %v958_v36  ;;  %v3805_v44 = vrot.slane %v548_v40, %v1466_v37  ;;  %v3807_v45 = vrot.slane %v548_v40, %v1893_v38  ;;  %v2866_v46 = vpop.f32.mrb[17].mxu0 }
 0x102   :  { %594 = vperm.xlu0 %3126, %v3746_v0   ;;  %2912 = vmatpush3.bf16.msra.mxu1 %v882_v55  ;;  %v3951_v35 = vmul.bf16 %v3843_v61, %v3795_v12  ;;  %v3955_v36 = vmul.bf16 %v3849_v26, %v3795_v12 }
 0x103   :  { %3114 = vset.pattern.permute.xlu1 %v3500_v4  ;;  %2878 = vmatpush3.bf16.msra.mxu0 %v1195_v11 }
 0x104   :  { %1409 = vperm.xlu1 %3114, %v3731_v53   ;;  %2879 = vmatprep.subr.bf16.mxu0 %v1196_v31  ;;  %5083 = vst [vmem:[#allocation19_spill] sm:$0xff] %v3951_v35  ;;  %5084 = vst [vmem:[#allocation20_spill] sm:$0xff] %v3955_v36  ;;  %v4084_v35 = vld [vmem:[%s4997_s6 + $0x30] sm:$0xff] }
 0x106   :  { %3131 = vset.pattern.permute.xlu0 %v3500_v4 }
 0x107   :  { %1437 = vperm.xlu0 %3131, %v3749_v3   ;;  %2880 = vmatpush3.bf16.msra.mxu0 %v1196_v31 }
 0x108   :  { %3116 = vset.pattern.permute.xlu1 %v3501_v5 }
 0x109   :  { %589 = vperm.xlu1 %3116, %v3734_v56  }
 0x10b   :  { %3133 = vset.pattern.permute.xlu0 %v3501_v5 }
 0x10c   :  { %604 = vperm.xlu0 %3133, %v3753_v7  }
 0x10d   :  { %3118 = vset.pattern.permute.xlu1 %v3506_v59 }
 0x10e   :  { %913 = vperm.xlu1 %3118, %v3734_v56  }
 0x110   :  { %3137 = vset.pattern.permute.xlu0 %v3500_v4 }
 0x111   :  { %1445 = vperm.xlu0 %3137, %v3758_v10  }
 0x112   :  { %3119 = vset.pattern.permute.xlu1 %v5002_v52 }
 0x113   :  { %1848 = vperm.xlu1 %3119, %v3734_v56   ;;  %v883_v56 = vmul.bf16 %v3783_v28, %v3795_v12  ;;  %v3914_v28 = vmul.bf16 %v3843_v61, %v3769_v18  ;;  %v3932_v18 = vmul.bf16 %v3849_v26, %v3778_v24  ;;  %v1197_v24 = vmul.bf16 %v3840_v60, %v3795_v12 }
 0x115   :  { %3138 = vset.pattern.permute.xlu0 %v5002_v52  ;;  %2913 = vmatprep.subr.bf16.mxu1 %v883_v56  ;;  %5077 = vst [vmem:[#allocation13_spill] sm:$0xff] %v3914_v28  ;;  %5080 = vst [vmem:[#allocation16_spill] sm:$0xff] %v3932_v18 }
 0x116   :  { %1872 = vperm.xlu0 %3138, %v3758_v10   ;;  %2914 = vmatpush3.bf16.msra.mxu1 %v883_v56  ;;  %v4013_v56 = vld [vmem:[%s4997_s6 + $0x18] sm:$0xff] }
 0x117   :  { %3121 = vset.pattern.permute.xlu1 %v3500_v4  ;;  %2931 = vmatprep.subr.bf16.mxu1 %v3859_v2 }
 0x118   :  { %1417 = vperm.xlu1 %3121, %v3739_v58   ;;  %2881 = vmatprep.subr.bf16.mxu0 %v1197_v24 }
 0x119   :  { %2882 = vmatpush3.bf16.msra.mxu0 %v1197_v24 }
 0x11a   :  { %3139 = vset.pattern.permute.xlu0 %v3501_v5 }
 0x11b   :  { %614 = vperm.xlu0 %3139, %v3762_v13  }
 0x11c   :  { %3122 = vset.pattern.permute.xlu1 %v5002_v52 }
 0x11d   :  { %1844 = vperm.xlu1 %3122, %v3739_v58  }
 0x11f   :  { %3143 = vset.pattern.permute.xlu0 %v3500_v4 }
 0x120   :  { %1453 = vperm.xlu0 %3143, %v3767_v17  }
 0x121   :  { %3123 = vset.pattern.permute.xlu1 %v3501_v5 }
 0x122   :  { %599 = vperm.xlu1 %3123, %v3742_v62  }
 0x124   :  { %3145 = vset.pattern.permute.xlu0 %v3501_v5 }
 0x125   :  { %624 = vperm.xlu0 %3145, %v3772_v19  }
 0x126   :  { %3125 = vset.pattern.permute.xlu1 %v5002_v52 }
 0x127   :  { %1856 = vperm.xlu1 %3125, %v3742_v62  }
 0x129   :  { %3149 = vset.pattern.permute.xlu0 %v3500_v4 }
 0x12a   :  { %1461 = vperm.xlu0 %3149, %v3776_v23  }
 0x12b   :  { %3127 = vset.pattern.permute.xlu1 %v3500_v4 }
 0x12c   :  { %1425 = vperm.xlu1 %3127, %v3746_v0  }
 0x12e   :  { %3150 = vset.pattern.permute.xlu0 %v3501_v5 }
 0x12f   :  { %634 = vperm.xlu0 %3150, %v3781_v25  }
 0x130   :  { %3128 = vset.pattern.permute.xlu1 %v3506_v59 }
 0x131   :  { %917 = vperm.xlu1 %3128, %v3746_v0  }
 0x133   :  { %3153 = vset.pattern.permute.xlu0 %v3506_v59 }
 0x135   :  { %3129 = vset.pattern.permute.xlu1 %v5002_v52 }
 0x136   :  { %1852 = vperm.xlu1 %3129, %v3746_v0  }
 0x13a   :  { %3130 = vset.pattern.permute.xlu1 %v3501_v5 }
 0x13b   :  { %609 = vperm.xlu1 %3130, %v3749_v3  }
 0x13f   :  { %3132 = vset.pattern.permute.xlu1 %v5002_v52 }
 0x140   :  { %1864 = vperm.xlu1 %3132, %v3749_v3  }
 0x144   :  { %3134 = vset.pattern.permute.xlu1 %v3500_v4 }
 0x145   :  { %1433 = vperm.xlu1 %3134, %v3753_v7  }
 0x149   :  { %3135 = vset.pattern.permute.xlu1 %v5002_v52 }
 0x14a   :  { %1860 = vperm.xlu1 %3135, %v3753_v7  }
 0x14e   :  { %3136 = vset.pattern.permute.xlu1 %v3501_v5 }
 0x14f   :  { %619 = vperm.xlu1 %3136, %v3758_v10  }
 0x153   :  { %3140 = vset.pattern.permute.xlu1 %v3500_v4 }
 0x154   :  { %1441 = vperm.xlu1 %3140, %v3762_v13  }
 0x158   :  { %3141 = vset.pattern.permute.xlu1 %v5002_v52 }
 0x159   :  { %1868 = vperm.xlu1 %3141, %v3762_v13  }
 0x15b   :  { %v3971_v0 = vpop.permute.xlu1 %1405  ;;  %v570_v32 = vpop.permute.xlu0 %569 }
 0x15c   :  { %v647_v37 = vadd.f32 %v3801_v42, %v570_v32 }
 0x15d   :  { %3142 = vset.pattern.permute.xlu1 %v3501_v5 }
 0x15e   :  { %v679_v38 = vmul.f32 0.2, %v647_v37  ;;  %629 = vperm.xlu1 %3142, %v3767_v17   ;;  %vm663_vm12 = vcmp.gt.f32.partialorder %v647_v37, 0.0 }
 0x15f   :  { %v565_v12 = vpop.permute.xlu0 %564 }
 0x160   :  { %v3981_v40 = vpop.permute.xlu1 %1832  ;;  %v695_v41 = vsel %vm663_vm12, %v647_v37, %v679_v38 }
 0x161   :  { %v3984_v46 = vadd.f32 %v695_v41, %v3979_v39 }
 0x162   :  { %3144 = vset.pattern.permute.xlu1 %v5002_v52 }
 0x163   :  { %5085 = vst [vmem:[#allocation21_spill] sm:$0xff] %v3984_v46  ;;  %1880 = vperm.xlu1 %3144, %v3767_v17   ;;  %728 = vmax.xlane.f32.xlu0 %v3984_v46 }
 0x164   :  { %v3989_v47 = vpop.permute.xlu0 %1401 }
 0x165   :  { %v3991_v48 = vpop.permute.xlu1 %893 }
 0x167   :  { %3146 = vset.pattern.permute.xlu1 %v3500_v4 }
 0x168   :  { %1449 = vperm.xlu1 %3146, %v3772_v19   ;;  %v3995_v50 = vpop.permute.xlu0 %1413 }
 0x16a   :  { %v3997_v51 = vpop.permute.xlu1 %1828 }
 0x16c   :  { %3147 = vset.pattern.permute.xlu1 %v5002_v52 }
 0x16d   :  { %1876 = vperm.xlu1 %3147, %v3772_v19   ;;  %v4001_v54 = vpop.permute.xlu0 %1836 }
 0x16f   :  { %v580_v15 = vpop.permute.xlu1 %579 }
 0x170   :  { %v649_v55 = vadd.f32 %v3801_v42, %v580_v15 }
 0x171   :  { %3148 = vset.pattern.permute.xlu1 %v3501_v5 }
 0x172   :  { %v681_v60 = vmul.f32 0.2, %v649_v55  ;;  %639 = vperm.xlu1 %3148, %v3776_v23   ;;  %vm665_vm13 = vcmp.gt.f32.partialorder %v649_v55, 0.0  ;;  %v4006_v61 = vpop.permute.xlu0 %1421 }
 0x174   :  { %v4008_v26 = vpop.permute.xlu1 %905  ;;  %v697_v1 = vsel %vm665_vm13, %v649_v55, %v681_v60  ;;  %v646_v55 = vadd.f32 %v3801_v42, %v565_v12  ;;  %v4052_v12 = vld [vmem:[%s4997_s6] sm:$0xff] }
 0x175   :  { %v4016_v8 = vadd.f32 %v697_v1, %v4013_v56 }
 0x176   :  { %3151 = vset.pattern.permute.xlu1 %v3500_v4  ;;  %vm662_vm15 = vcmp.gt.f32.partialorder %v646_v55, 0.0 }
 0x177   :  { %5086 = vst [vmem:[#allocation22_spill] sm:$0xff] %v4016_v8  ;;  %1457 = vperm.xlu1 %3151, %v3781_v25   ;;  %732 = vmax.xlane.f32.xlu0 %v4016_v8  ;;  %v585_v5 = vpop.permute.xlu0 %584 }
 0x178   :  { %v650_v18 = vadd.f32 %v3801_v42, %v585_v5 }
 0x179   :  { %v4021_v14 = vpop.permute.xlu1 %1840 }
 0x17a   :  { %v682_v22 = vmul.f32 0.2, %v650_v18  ;;  %vm666_vm1 = vcmp.gt.f32.partialorder %v650_v18, 0.0 }
 0x17b   :  { %3152 = vset.pattern.permute.xlu1 %v3506_v59  ;;  %v4036_v59 = vld [vmem:[%s4997_s6 + $0x28] sm:$0xff] }
 0x17c   :  { %v4024_v63 = vpop.permute.xlu0 %1429 }
 0x17e   :  { %v575_v6 = vpop.permute.xlu1 %574 }
 0x17f   :  { %v648_v52 = vadd.f32 %v3801_v42, %v575_v6 }
 0x181   :  { %v595_v11 = vpop.permute.xlu0 %594  ;;  %v680_v34 = vmul.f32 0.2, %v648_v52  ;;  %vm664_vm0 = vcmp.gt.f32.partialorder %v648_v52, 0.0 }
 0x182   :  { %v652_v29 = vadd.f32 %v3801_v42, %v595_v11 }
 0x183   :  { %v4026_v31 = vpop.permute.xlu1 %1409  ;;  %v696_v20 = vsel %vm664_vm0, %v648_v52, %v680_v34  ;;  %v4077_v52 = vld [vmem:[%s4997_s6 + $0x20] sm:$0xff]  ;;  %v698_v34 = vsel %vm666_vm1, %v650_v18, %v682_v22 }
 0x184   :  { %v684_v5 = vmul.f32 0.2, %v652_v29  ;;  %vm668_vm2 = vcmp.gt.f32.partialorder %v652_v29, 0.0  ;;  %v4087_v30 = vadd.f32 %v698_v34, %v4077_v52 }
 0x186   :  { %v4028_v24 = vpop.permute.xlu0 %1437  ;;  %5091 = vst [vmem:[#allocation27_spill] sm:$0xff] %v4087_v30 }
 0x188   :  { %v590_v32 = vpop.permute.xlu1 %589 }
 0x189   :  { %v651_v4 = vadd.f32 %v3801_v42, %v590_v32  ;;  %v678_v32 = vmul.f32 0.2, %v646_v55 }
 0x18b   :  { %v683_v37 = vmul.f32 0.2, %v651_v4  ;;  %vm667_vm14 = vcmp.gt.f32.partialorder %v651_v4, 0.0  ;;  %v605_v38 = vpop.permute.xlu0 %604 }
 0x18c   :  { %v654_v57 = vadd.f32 %v3801_v42, %v605_v38 }
 0x18d   :  { %v4031_v41 = vpop.permute.xlu1 %913  ;;  %v699_v15 = vsel %vm667_vm14, %v651_v4, %v683_v37  ;;  %v694_v4 = vsel %vm662_vm15, %v646_v55, %v678_v32  ;;  %v4069_v55 = vld [vmem:[%s4997_s6 + $0x10] sm:$0xff] }
 0x18e   :  { %v4040_v60 = vadd.f32 %v699_v15, %v4036_v59  ;;  %v4060_v6 = vadd.f32 %v694_v4, %v4052_v12  ;;  %v4072_v11 = vadd.f32 %v696_v20, %v4069_v55  ;;  %v686_v38 = vmul.f32 0.2, %v654_v57 }
 0x18f   :  { %v700_v20 = vsel %vm668_vm2, %v652_v29, %v684_v5  ;;  %vm670_vm3 = vcmp.gt.f32.partialorder %v654_v57, 0.0 }
 0x190   :  { %5087 = vst [vmem:[#allocation23_spill] sm:$0xff] %v4040_v60  ;;  %736 = vmax.xlane.f32.xlu0 %v4040_v60  ;;  %v4043_v1 = vpop.permute.xlu0 %1445  ;;  %5089 = vst [vmem:[#allocation25_spill] sm:$0xff] %v4060_v6  ;;  %v4092_v22 = vadd.f32 %v700_v20, %v4084_v35  ;;  %v702_v29 = vsel %vm670_vm3, %v654_v57, %v686_v38  ;;  %v4116_v57 = vld [vmem:[%s4997_s6 + $0x50] sm:$0xff] }
 0x191   :  { %5090 = vst [vmem:[#allocation26_spill] sm:$0xff] %v4072_v11  ;;  %v4111_v16 = vadd.f32 %v702_v29, %v4097_v21 }
 0x192   :  { %v4046_v36 = vpop.permute.xlu1 %1848  ;;  %5092 = vst [vmem:[#allocation28_spill] sm:$0xff] %v4092_v22 }
 0x193   :  { %5094 = vst [vmem:[#allocation30_spill] sm:$0xff] %v4111_v16 }
 0x195   :  { %v4056_v15 = vpop.permute.xlu0 %1872 }
 0x196   :  { %5088 = vst [vmem:[#allocation24_spill] sm:$0xff] %v4056_v15 }
 0x197   :  { %v4054_v37 = vpop.permute.xlu1 %1417 }
 0x19a   :  { %v615_v32 = vpop.permute.xlu0 %614 }
 0x19b   :  { %726 = vmax.xlane.f32.xlu1 %v4060_v6  ;;  %v656_v4 = vadd.f32 %v3801_v42, %v615_v32 }
 0x19c   :  { %v4064_v27 = vpop.permute.xlu1 %1844 }
 0x19d   :  { %v688_v32 = vmul.f32 0.2, %v656_v4  ;;  %vm672_vm5 = vcmp.gt.f32.partialorder %v656_v4, 0.0 }
 0x19f   :  { %730 = vmax.xlane.f32.xlu1 %v4072_v11  ;;  %v704_v38 = vsel %vm672_vm5, %v656_v4, %v688_v32  ;;  %v4136_v32 = vld [vmem:[%s4997_s6 + $0x48] sm:$0xff]  ;;  %v4167_v60 = vpop.permute.xlu0 %1453 }
 0x1a1   :  { %v600_v33 = vpop.permute.xlu1 %599 }
 0x1a2   :  { %v653_v28 = vadd.f32 %v3801_v42, %v600_v33  ;;  %v4104_v33 = vld [vmem:[%s4997_s6 + $0x38] sm:$0xff] }
 0x1a3   :  { %734 = vmax.xlane.f32.xlu1 %v4087_v30 }
 0x1a4   :  { %v685_v18 = vmul.f32 0.2, %v653_v28  ;;  %vm669_vm4 = vcmp.gt.f32.partialorder %v653_v28, 0.0  ;;  %v625_v30 = vpop.permute.xlu0 %624 }
 0x1a6   :  { %v4099_v5 = vpop.permute.xlu1 %1856  ;;  %v701_v34 = vsel %vm669_vm4, %v653_v28, %v685_v18  ;;  %v4123_v28 = vadd.f32 %v704_v38, %v4116_v57 }
 0x1a7   :  { %738 = vmax.xlane.f32.xlu1 %v4092_v22  ;;  %v4108_v20 = vadd.f32 %v701_v34, %v4104_v33 }
 0x1a8   :  { %5095 = vst [vmem:[#allocation31_spill] sm:$0xff] %v4123_v28 }
 0x1a9   :  { %5093 = vst [vmem:[#allocation29_spill] sm:$0xff] %v4108_v20  ;;  %740 = vmax.xlane.f32.xlu0 %v4108_v20  ;;  %v4173_v15 = vpop.permute.xlu0 %1461 }
 0x1ab   :  { %v4119_v9 = vpop.permute.xlu1 %1425  ;;  %742 = vmax.xlane.f32.xlu1 %v4111_v16 }
 0x1af   :  { %746 = vmax.xlane.f32.xlu1 %v4123_v28 }
 0x1b0   :  { %v4126_v18 = vpop.permute.xlu1 %917 }
 0x1b5   :  { %v4128_v29 = vpop.permute.xlu1 %1852 }
 0x1ba   :  { %v610_v34 = vpop.permute.xlu1 %609 }
 0x1bb   :  { %v655_v2 = vadd.f32 %v3801_v42, %v610_v34 }
 0x1bd   :  { %v687_v22 = vmul.f32 0.2, %v655_v2  ;;  %vm671_vm6 = vcmp.gt.f32.partialorder %v655_v2, 0.0 }
 0x1bf   :  { %v4131_v4 = vpop.permute.xlu1 %1864  ;;  %v703_v38 = vsel %vm671_vm6, %v655_v2, %v687_v22  ;;  %v5097_v22 = vmov 3  }
 0x1c0   :  { %925 = vperm.xlu1 %3152, %v3753_v7   ;;  %v4140_v28 = vadd.f32 %v703_v38, %v4136_v32 }
 0x1c2   :  { %5096 = vst [vmem:[#allocation32_spill] sm:$0xff] %v4140_v28  ;;  %744 = vmax.xlane.f32.xlu0 %v4140_v28 }
 0x1c4   :  { %v4143_v16 = vpop.permute.xlu1 %1433  ;;  %937 = vperm.xlu1 %3152, %v3758_v10   ;;  %v4158_v10 = vld [vmem:[%s4997_s6 + $0x58] sm:$0xff] }
 0x1c8   :  { %941 = vperm.xlu1 %3152, %v3772_v19  }
 0x1c9   :  { %v4147_v34 = vpop.permute.xlu1 %1860 }
 0x1cc   :  { %949 = vperm.xlu1 %3152, %v3781_v25  }
 0x1ce   :  { %v620_v20 = vpop.permute.xlu1 %619 }
 0x1cf   :  { %v657_v2 = vadd.f32 %v3801_v42, %v620_v20 }
 0x1d0   :  { %3154 = vset.pattern.permute.xlu1 %v5097_v22 }
 0x1d1   :  { %v689_v7 = vmul.f32 0.2, %v657_v2  ;;  %1884 = vperm.xlu1 %3154, %v3781_v25   ;;  %vm673_vm7 = vcmp.gt.f32.partialorder %v657_v2, 0.0 }
 0x1d3   :  { %v4153_v38 = vpop.permute.xlu1 %1441  ;;  %v705_v19 = vsel %vm673_vm7, %v657_v2, %v689_v7  ;;  %v658_v2 = vadd.f32 %v3801_v42, %v625_v30  ;;  %v4188_v30 = vld [vmem:[%s4997_s6 + $0x60] sm:$0xff] }
 0x1d4   :  { %v4161_v28 = vadd.f32 %v705_v19, %v4158_v10  ;;  %v635_v19 = vpop.permute.xlu0 %634 }
 0x1d5   :  { %1888 = vperm.xlu1 %3154, %v3776_v23   ;;  %v660_v46 = vadd.f32 %v3801_v42, %v635_v19  ;;  %vm674_vm8 = vcmp.gt.f32.partialorder %v658_v2, 0.0 }
 0x1d6   :  { %5098 = vst [vmem:[#allocation33_spill] sm:$0xff] %v4161_v28  ;;  %748 = vmax.xlane.f32.xlu0 %v4161_v28  ;;  %v690_v28 = vmul.f32 0.2, %v658_v2 }
 0x1d7   :  { %v692_v6 = vmul.f32 0.2, %v660_v46  ;;  %vm676_vm9 = vcmp.gt.f32.partialorder %v660_v46, 0.0 }
 0x1d8   :  { %v4165_v20 = vpop.permute.xlu1 %1868 }
 0x1d9   :  { %5099 = vst [vmem:[#allocation34_spill] sm:$0xff] %v4165_v20 }
 0x1dd   :  { %v4169_v25 = vpop.permute.xlu1 %629 }
 0x1e2   :  { %v4171_v8 = vpop.permute.xlu1 %1880 }
 0x1e3   :  { %5100 = vst [vmem:[#allocation35_spill] sm:$0xff] %v4171_v8 }
 0x1e7   :  { %v4175_v11 = vpop.permute.xlu1 %1449 }
 0x1ec   :  { %v4178_v7 = vpop.permute.xlu1 %1876  ;;  %897 = vperm.xlu0 %3153, %v3726_v49  }
 0x1ed   :  { %5101 = vst [vmem:[#allocation36_spill] sm:$0xff] %v4178_v7  ;;  %v706_v7 = vsel %vm674_vm8, %v658_v2, %v690_v28 }
 0x1ee   :  { %v4191_v49 = vadd.f32 %v706_v7, %v4188_v30  ;;  %v1471_v7 = vadd.f32 %v3805_v44, %v3995_v50 }
 0x1f0   :  { %901 = vperm.xlu0 %3153, %v3731_v53   ;;  %v1469_v53 = vadd.f32 %v3805_v44, %v3971_v0  ;;  %vm1487_vm12 = vcmp.gt.f32.partialorder %v1471_v7, 0.0 }
 0x1f1   :  { %v640_v20 = vpop.permute.xlu1 %639 }
 0x1f2   :  { %v661_v8 = vadd.f32 %v3801_v42, %v640_v20  ;;  %v708_v20 = vsel %vm676_vm9, %v660_v46, %v692_v6  ;;  %v1501_v2 = vmul.f32 0.2, %v1469_v53  ;;  %vm1485_vm11 = vcmp.gt.f32.partialorder %v1469_v53, 0.0 }
 0x1f3   :  { %v1503_v6 = vmul.f32 0.2, %v1471_v7 }
 0x1f4   :  { %909 = vperm.xlu0 %3153, %v3739_v58   ;;  %v693_v19 = vmul.f32 0.2, %v661_v8  ;;  %v4199_v58 = vld [vmem:[%s4997_s6 + $0x70] sm:$0xff]  ;;  %vm677_vm10 = vcmp.gt.f32.partialorder %v661_v8, 0.0  ;;  %v1517_v50 = vsel %vm1485_vm11, %v1469_v53, %v1501_v2  ;;  %v1477_v53 = vadd.f32 %v3805_v44, %v4028_v24 }
 0x1f5   :  { %v4203_v28 = vadd.f32 %v708_v20, %v4199_v58  ;;  %v1473_v20 = vadd.f32 %v3805_v44, %v4006_v61 }
 0x1f6   :  { %v709_v0 = vsel %vm677_vm10, %v661_v8, %v693_v19  ;;  %v1475_v19 = vadd.f32 %v3805_v44, %v4024_v63  ;;  %vm1493_vm15 = vcmp.gt.f32.partialorder %v1477_v53, 0.0 }
 0x1f7   :  { %v1505_v8 = vmul.f32 0.2, %v1473_v20  ;;  %vm1489_vm13 = vcmp.gt.f32.partialorder %v1473_v20, 0.0 }
 0x1f8   :  { %921 = vperm.xlu0 %3153, %v3742_v62   ;;  %v4212_v62 = vld [vmem:[%s4997_s6 + $0x78] sm:$0xff]  ;;  %vm1491_vm14 = vcmp.gt.f32.partialorder %v1475_v19, 0.0 }
 0x1f9   :  { %750 = vmax.xlane.f32.xlu1 %v4191_v49  ;;  %v4215_v46 = vadd.f32 %v709_v0, %v4212_v62  ;;  %v1519_v0 = vsel %vm1487_vm12, %v1471_v7, %v1503_v6  ;;  %v1521_v2 = vsel %vm1489_vm13, %v1473_v20, %v1505_v8  ;;  %v1479_v7 = vadd.f32 %v3805_v44, %v4043_v1 }
 0x1fa   :  { %v4229_v61 = vadd.f32 %v1519_v0, %v4013_v56  ;;  %v4236_v63 = vadd.f32 %v1521_v2, %v4036_v59  ;;  %v1481_v20 = vadd.f32 %v3805_v44, %v4167_v60  ;;  %v4260_v60 = vld [vmem:[%s4997_s6 + $0x68] sm:$0xff] }
 0x1fb   :  { %vm1495_vm0 = vcmp.gt.f32.partialorder %v1479_v7, 0.0 }
 0x1fc   :  { %929 = vperm.xlu0 %3153, %v3749_v3   ;;  %v4222_v3 = vadd.f32 %v1517_v50, %v3979_v39  ;;  %5102 = vst [vmem:[#allocation37_spill] sm:$0xff] %v4236_v63  ;;  %v1513_v1 = vmul.f32 0.2, %v1481_v20  ;;  %vm1497_vm1 = vcmp.gt.f32.partialorder %v1481_v20, 0.0 }
 0x1fd   :  { %754 = vmax.xlane.f32.xlu1 %v4203_v28 }
 0x200   :  { %933 = vperm.xlu0 %3153, %v3762_v13   ;;  %v1507_v13 = vmul.f32 0.2, %v1475_v19 }
 0x201   :  { %756 = vmax.xlane.f32.xlu1 %v4215_v46 }
 0x202   :  { %v1523_v6 = vsel %vm1491_vm14, %v1475_v19, %v1507_v13 }
 0x203   :  { %v4243_v24 = vadd.f32 %v1523_v6, %v4104_v33 }
 0x204   :  { %945 = vperm.xlu0 %3153, %v3767_v17   ;;  %v1509_v17 = vmul.f32 0.2, %v1477_v53 }
 0x205   :  { %1550 = vmax.xlane.f32.xlu1 %v4222_v3  ;;  %5103 = vst [vmem:[#allocation38_spill] sm:$0xff] %v4243_v24 }
 0x206   :  { %v1525_v50 = vsel %vm1493_vm15, %v1477_v53, %v1509_v17  ;;  %v1529_v53 = vsel %vm1497_vm1, %v1481_v20, %v1513_v1 }
 0x207   :  { %v4249_v8 = vadd.f32 %v1525_v50, %v4136_v32  ;;  %v4266_v2 = vadd.f32 %v1529_v53, %v4260_v60 }
 0x208   :  { %953 = vperm.xlu0 %3153, %v3776_v23   ;;  %v1511_v23 = vmul.f32 0.2, %v1479_v7 }
 0x209   :  { %1554 = vmax.xlane.f32.xlu1 %v4229_v61  ;;  %5104 = vst [vmem:[#allocation39_spill] sm:$0xff] %v4249_v8  ;;  %5106 = vst [vmem:[#allocation41_spill] sm:$0xff] %v4266_v2 }
 0x20a   :  { %v1527_v19 = vsel %vm1495_vm0, %v1479_v7, %v1511_v23  ;;  %v1468_v7 = vadd.f32 %v3805_v44, %v3989_v47  ;;  %v1472_v47 = vadd.f32 %v3805_v44, %v4054_v37  ;;  %v1476_v37 = vadd.f32 %v3805_v44, %v4143_v16 }
 0x20b   :  { %v4255_v0 = vadd.f32 %v1527_v19, %v4158_v10  ;;  %v1480_v16 = vadd.f32 %v3805_v44, %v4175_v11  ;;  %v960_v11 = vadd.f32 %v3803_v43, %v3991_v48 }
 0x20c   :  { %3155 = vset.pattern.permute.xlu0 %v5097_v22  ;;  %v1483_v22 = vadd.f32 %v3805_v44, %v4173_v15  ;;  %v659_v15 = vadd.f32 %v3801_v42, %v4169_v25  ;;  %v1500_v20 = vmul.f32 0.2, %v1468_v7  ;;  %v1470_v42 = vadd.f32 %v3805_v44, %v4026_v31 }
 0x20d   :  { %1558 = vmax.xlane.f32.xlu1 %v4236_v63  ;;  %5105 = vst [vmem:[#allocation40_spill] sm:$0xff] %v4255_v0  ;;  %vm1484_vm4 = vcmp.gt.f32.partialorder %v1468_v7, 0.0  ;;  %v1474_v31 = vadd.f32 %v3805_v44, %v4119_v9  ;;  %vm1488_vm6 = vcmp.gt.f32.partialorder %v1472_v47, 0.0  ;;  %v1478_v9 = vadd.f32 %v3805_v44, %v4153_v38 }
 0x20e   :  { %v1515_v13 = vmul.f32 0.2, %v1483_v22  ;;  %vm1499_vm2 = vcmp.gt.f32.partialorder %v1483_v22, 0.0  ;;  %v691_v6 = vmul.f32 0.2, %v659_v15  ;;  %vm675_vm3 = vcmp.gt.f32.partialorder %v659_v15, 0.0 }
 0x20f   :  { %v1502_v1 = vmul.f32 0.2, %v1470_v42  ;;  %vm1486_vm5 = vcmp.gt.f32.partialorder %v1470_v42, 0.0  ;;  %vm1490_vm7 = vcmp.gt.f32.partialorder %v1474_v31, 0.0  ;;  %vm1492_vm8 = vcmp.gt.f32.partialorder %v1476_v37, 0.0 }
 0x210   :  { %v1531_v17 = vsel %vm1499_vm2, %v1483_v22, %v1515_v13  ;;  %v707_v25 = vsel %vm675_vm3, %v659_v15, %v691_v6  ;;  %v1516_v22 = vsel %vm1484_vm4, %v1468_v7, %v1500_v20  ;;  %v1504_v13 = vmul.f32 0.2, %v1472_v47 }
 0x211   :  { %1562 = vmax.xlane.f32.xlu1 %v4243_v24  ;;  %v4272_v23 = vadd.f32 %v1531_v17, %v4212_v62  ;;  %v4278_v50 = vadd.f32 %v707_v25, %v4260_v60  ;;  %v4284_v19 = vadd.f32 %v1516_v22, %v4052_v12  ;;  %v1518_v53 = vsel %vm1486_vm5, %v1470_v42, %v1502_v1  ;;  %v1458_v22 = vpop.permute.xlu1 %1457 }
 0x212   :  { %v4290_v15 = vadd.f32 %v1518_v53, %v4069_v55  ;;  %v1506_v17 = vmul.f32 0.2, %v1474_v31  ;;  %v1520_v7 = vsel %vm1488_vm6, %v1472_v47, %v1504_v13  ;;  %v1508_v20 = vmul.f32 0.2, %v1476_v37 }
 0x213   :  { %5107 = vst [vmem:[#allocation42_spill] sm:$0xff] %v4272_v23  ;;  %v4296_v6 = vadd.f32 %v1520_v7, %v4077_v52  ;;  %v1510_v1 = vmul.f32 0.2, %v1478_v9  ;;  %vm1494_vm9 = vcmp.gt.f32.partialorder %v1478_v9, 0.0  ;;  %v1512_v38 = vmul.f32 0.2, %v1480_v16 }
 0x214   :  { %v1522_v42 = vsel %vm1490_vm7, %v1474_v31, %v1506_v17  ;;  %v1524_v47 = vsel %vm1492_vm8, %v1476_v37, %v1508_v20  ;;  %v1482_v31 = vadd.f32 %v3805_v44, %v1458_v22  ;;  %vm1496_vm10 = vcmp.gt.f32.partialorder %v1480_v16, 0.0 }
 0x215   :  { %1566 = vmax.xlane.f32.xlu1 %v4249_v8  ;;  %5108 = vst [vmem:[#allocation43_spill] sm:$0xff] %v4296_v6  ;;  %v4302_v25 = vadd.f32 %v1522_v42, %v4084_v35  ;;  %v4308_v13 = vadd.f32 %v1524_v47, %v4097_v21  ;;  %v1526_v53 = vsel %vm1494_vm9, %v1478_v9, %v1510_v1  ;;  %v992_v42 = vmul.f32 0.2, %v960_v11 }
 0x216   :  { %v4313_v17 = vadd.f32 %v1526_v53, %v4116_v57  ;;  %v1514_v37 = vmul.f32 0.2, %v1482_v31  ;;  %v1528_v7 = vsel %vm1496_vm10, %v1480_v16, %v1512_v38  ;;  %vm1498_vm11 = vcmp.gt.f32.partialorder %v1482_v31, 0.0  ;;  %v4336_v38 = vpop.xlane.xlu0 %728 }
 0x217   :  { %5109 = vst [vmem:[#allocation44_spill] sm:$0xff] %v4302_v25  ;;  %5110 = vst [vmem:[#allocation45_spill] sm:$0xff] %v4308_v13  ;;  %v4319_v20 = vadd.f32 %v1528_v7, %v4188_v30  ;;  %v1895_v44 = vadd.f32 %v3807_v45, %v3997_v51  ;;  %vm976_vm12 = vcmp.gt.f32.partialorder %v960_v11, 0.0 }
 0x218   :  { %5111 = vst [vmem:[#allocation46_spill] sm:$0xff] %v4313_v17  ;;  %v1530_v9 = vsel %vm1498_vm11, %v1482_v31, %v1514_v37  ;;  %v1008_v47 = vsel %vm976_vm12, %v960_v11, %v992_v42 }
 0x219   :  { %1570 = vmax.xlane.f32.xlu1 %v4255_v0  ;;  %5112 = vst [vmem:[#allocation47_spill] sm:$0xff] %v4319_v20  ;;  %v4325_v1 = vadd.f32 %v1530_v9, %v4199_v58  ;;  %v1927_v48 = vmul.f32 0.2, %v1895_v44  ;;  %vm1911_vm13 = vcmp.gt.f32.partialorder %v1895_v44, 0.0  ;;  %v4329_v16 = vadd.f32 %v1008_v47, %v4052_v12 }
 0x21a   :  { %v4340_v53 = vpop.xlane.xlu0 %732 }
 0x21b   :  { %5113 = vst [vmem:[#allocation48_spill] sm:$0xff] %v4325_v1  ;;  %5114 = vst [vmem:[#allocation49_spill] sm:$0xff] %v4329_v16  ;;  %v1943_v22 = vsel %vm1911_vm13, %v1895_v44, %v1927_v48  ;;  %v1896_v48 = vadd.f32 %v3807_v45, %v3981_v40 }
 0x21c   :  { %v4333_v51 = vadd.f32 %v1943_v22, %v4052_v12 }
 0x21d   :  { %1574 = vmax.xlane.f32.xlu1 %v4266_v2  ;;  %vm1912_vm14 = vcmp.gt.f32.partialorder %v1896_v48, 0.0 }
 0x21e   :  { %5115 = vst [vmem:[#allocation50_spill] sm:$0xff] %v4333_v51  ;;  %v4342_v11 = vpop.xlane.xlu0 %736 }
 0x221   :  { %1578 = vmax.xlane.f32.xlu1 %v4272_v23  ;;  %v963_v23 = vadd.f32 %v3803_v43, %v4008_v26 }
 0x223   :  { %vm979_vm2 = vcmp.gt.f32.partialorder %v963_v23, 0.0 }
 0x227   :  { %752 = vmax.xlane.f32.xlu0 %v4278_v50 }
 0x228   :  { %v4338_v31 = vpop.xlane.xlu1 %726 }
 0x22b   :  { %1548 = vmax.xlane.f32.xlu0 %v4284_v19 }
 0x22c   :  { %v4344_v37 = vpop.xlane.xlu1 %730 }
 0x22f   :  { %1552 = vmax.xlane.f32.xlu0 %v4290_v15 }
 0x230   :  { %v4348_v42 = vpop.xlane.xlu1 %734 }
 0x233   :  { %1556 = vmax.xlane.f32.xlu0 %v4296_v6 }
 0x234   :  { %v4354_v9 = vpop.xlane.xlu1 %738 }
 0x236   :  { %v4346_v7 = vpop.xlane.xlu0 %740 }
 0x237   :  { %1560 = vmax.xlane.f32.xlu0 %v4302_v25 }
 0x23b   :  { %1564 = vmax.xlane.f32.xlu0 %v4308_v13  ;;  %v995_v13 = vmul.f32 0.2, %v963_v23 }
 0x23d   :  { %v1011_v6 = vsel %vm979_vm2, %v963_v23, %v995_v13  ;;  %v966_v23 = vadd.f32 %v3803_v43, %v4126_v18  ;;  %v1901_v18 = vadd.f32 %v3807_v45, %v4128_v29 }
 0x23f   :  { %1568 = vmax.xlane.f32.xlu0 %v4313_v17  ;;  %vm982_vm8 = vcmp.gt.f32.partialorder %v966_v23, 0.0  ;;  %vm1917_vm10 = vcmp.gt.f32.partialorder %v1901_v18, 0.0 }
 0x243   :  { %1572 = vmax.xlane.f32.xlu0 %v4319_v20 }
 0x247   :  { %1576 = vmax.xlane.f32.xlu0 %v4325_v1  ;;  %v4363_v1 = vpop.xlane.xlu1 %742 }
 0x24b   :  { %1040 = vmax.xlane.f32.xlu0 %v4329_v16  ;;  %v1897_v16 = vadd.f32 %v3807_v45, %v4001_v54  ;;  %v4372_v25 = vpop.xlane.xlu1 %746 }
 0x24d   :  { %v1929_v40 = vmul.f32 0.2, %v1897_v16  ;;  %vm1913_vm1 = vcmp.gt.f32.partialorder %v1897_v16, 0.0 }
 0x24f   :  { %1975 = vmax.xlane.f32.xlu0 %v4333_v51  ;;  %v4350_v44 = vpop.xlane.xlu0 %744  ;;  %v1928_v51 = vmul.f32 0.2, %v1896_v48  ;;  %v926_v13 = vpop.permute.xlu1 %925 }
 0x251   :  { %v1944_v54 = vsel %vm1912_vm14, %v1896_v48, %v1928_v51  ;;  %v1945_v48 = vsel %vm1913_vm1, %v1897_v16, %v1929_v40 }
 0x263   :  { %v4352_v12 = vpop.xlane.xlu0 %748 }
 0x26b   :  { %v898_v47 = vpop.permute.xlu0 %897 }
 0x26c   :  { %v961_v22 = vadd.f32 %v3803_v43, %v898_v47  ;;  %v1898_v47 = vadd.f32 %v3807_v45, %v4021_v14 }
 0x26e   :  { %vm977_vm15 = vcmp.gt.f32.partialorder %v961_v22, 0.0  ;;  %v993_v2 = vmul.f32 0.2, %v961_v22  ;;  %v1930_v14 = vmul.f32 0.2, %v1898_v47  ;;  %vm1914_vm3 = vcmp.gt.f32.partialorder %v1898_v47, 0.0 }
 0x26f   :  { %v902_v20 = vpop.permute.xlu0 %901 }
 0x270   :  { %v962_v0 = vadd.f32 %v3803_v43, %v902_v20  ;;  %v1009_v17 = vsel %vm977_vm15, %v961_v22, %v993_v2  ;;  %v4376_v22 = vadd.f32 %v1944_v54, %v3979_v39  ;;  %v1946_v16 = vsel %vm1914_vm3, %v1898_v47, %v1930_v14 }
 0x271   :  { %v4369_v8 = vadd.f32 %v1009_v17, %v3979_v39  ;;  %v965_v17 = vadd.f32 %v3803_v43, %v4031_v41  ;;  %v4388_v39 = vadd.f32 %v1945_v48, %v4069_v55  ;;  %v1900_v41 = vadd.f32 %v3807_v45, %v4046_v36 }
 0x272   :  { %v994_v24 = vmul.f32 0.2, %v962_v0  ;;  %vm978_vm0 = vcmp.gt.f32.partialorder %v962_v0, 0.0 }
 0x273   :  { %5116 = vst [vmem:[#allocation51_spill] sm:$0xff] %v4369_v8  ;;  %v910_v26 = vpop.permute.xlu0 %909  ;;  %1042 = vmax.xlane.f32.xlu1 %v4369_v8  ;;  %v1899_v8 = vadd.f32 %v3807_v45, %v4064_v27  ;;  %vm981_vm5 = vcmp.gt.f32.partialorder %v965_v17, 0.0  ;;  %vm1916_vm7 = vcmp.gt.f32.partialorder %v1900_v41, 0.0  ;;  %v1932_v36 = vmul.f32 0.2, %v1900_v41 }
 0x274   :  { %v964_v2 = vadd.f32 %v3803_v43, %v910_v26  ;;  %v1010_v20 = vsel %vm978_vm0, %v962_v0, %v994_v24  ;;  %v997_v24 = vmul.f32 0.2, %v965_v17  ;;  %v4393_v0 = vadd.f32 %v1011_v6, %v4013_v56 }
 0x275   :  { %v4381_v51 = vadd.f32 %v1010_v20, %v4069_v55  ;;  %v1931_v27 = vmul.f32 0.2, %v1899_v8  ;;  %vm1915_vm6 = vcmp.gt.f32.partialorder %v1899_v8, 0.0  ;;  %v4400_v55 = vadd.f32 %v1946_v16, %v4013_v56  ;;  %v938_v20 = vpop.permute.xlu1 %937 }
 0x276   :  { %v996_v63 = vmul.f32 0.2, %v964_v2  ;;  %vm980_vm4 = vcmp.gt.f32.partialorder %v964_v2, 0.0  ;;  %v1013_v47 = vsel %vm981_vm5, %v965_v17, %v997_v24  ;;  %v998_v26 = vmul.f32 0.2, %v966_v23 }
 0x277   :  { %1044 = vmax.xlane.f32.xlu0 %v4381_v51  ;;  %1977 = vmax.xlane.f32.xlu1 %v4376_v22  ;;  %v922_v54 = vpop.permute.xlu0 %921  ;;  %v1902_v56 = vadd.f32 %v3807_v45, %v4099_v5  ;;  %v4416_v17 = vadd.f32 %v1013_v47, %v4036_v59  ;;  %v1948_v29 = vsel %vm1916_vm7, %v1900_v41, %v1932_v36  ;;  %v1933_v24 = vmul.f32 0.2, %v1901_v18 }
 0x278   :  { %v1012_v40 = vsel %vm980_vm4, %v964_v2, %v996_v63  ;;  %v967_v63 = vadd.f32 %v3803_v43, %v922_v54  ;;  %v1947_v2 = vsel %vm1915_vm6, %v1899_v8, %v1931_v27  ;;  %v968_v8 = vadd.f32 %v3803_v43, %v926_v13 }
 0x279   :  { %v4403_v6 = vadd.f32 %v1012_v40, %v4077_v52  ;;  %v4413_v48 = vadd.f32 %v1947_v2, %v4077_v52  ;;  %v1014_v27 = vsel %vm982_vm8, %v966_v23, %v998_v26  ;;  %v1934_v5 = vmul.f32 0.2, %v1902_v56  ;;  %v4430_v54 = vpop.permute.xlu1 %941 }
 0x27a   :  { %v999_v16 = vmul.f32 0.2, %v967_v63  ;;  %vm983_vm9 = vcmp.gt.f32.partialorder %v967_v63, 0.0  ;;  %vm1918_vm11 = vcmp.gt.f32.partialorder %v1902_v56, 0.0  ;;  %v1903_v52 = vadd.f32 %v3807_v45, %v4147_v34 }
 0x27b   :  { %1979 = vmax.xlane.f32.xlu0 %v4388_v39  ;;  %1046 = vmax.xlane.f32.xlu1 %v4393_v0  ;;  %v930_v14 = vpop.permute.xlu0 %929  ;;  %v4425_v40 = vadd.f32 %v1014_v27, %v4084_v35  ;;  %v4428_v41 = vadd.f32 %v1948_v29, %v4036_v59  ;;  %v1000_v13 = vmul.f32 0.2, %v968_v8  ;;  %v1949_v36 = vsel %vm1917_vm10, %v1901_v18, %v1933_v24 }
 0x27c   :  { %v969_v23 = vadd.f32 %v3803_v43, %v930_v14  ;;  %v1015_v47 = vsel %vm983_vm9, %v967_v63, %v999_v16  ;;  %vm984_vm12 = vcmp.gt.f32.partialorder %v968_v8, 0.0  ;;  %v1950_v34 = vsel %vm1918_vm11, %v1902_v56, %v1934_v5  ;;  %v5118_v56 = vld [vmem:[#allocation25_spill] sm:$0xff] }
 0x27d   :  { %v1904_v2 = vadd.f32 %v3807_v45, %v4131_v4  ;;  %v1935_v27 = vmul.f32 0.2, %v1903_v52  ;;  %v4438_v59 = vadd.f32 %v1949_v36, %v4084_v35  ;;  %v4441_v29 = vadd.f32 %v1015_v47, %v4104_v33  ;;  %v4448_v24 = vpop.permute.xlu1 %949  ;;  %v5121_v47 = vld [vmem:[#allocation34_spill] sm:$0xff] }
 0x27e   :  { %vm1919_vm13 = vcmp.gt.f32.partialorder %v1903_v52, 0.0  ;;  %v1001_v18 = vmul.f32 0.2, %v969_v23  ;;  %v1016_v14 = vsel %vm984_vm12, %v968_v8, %v1000_v13  ;;  %vm985_vm14 = vcmp.gt.f32.partialorder %v969_v23, 0.0 }
 0x27f   :  { %1048 = vmax.xlane.f32.xlu0 %v4403_v6  ;;  %1981 = vmax.xlane.f32.xlu1 %v4400_v55  ;;  %v934_v26 = vpop.permute.xlu0 %933  ;;  %5117 = vst [vmem:[#allocation52_spill] sm:$0xff] %v4441_v29  ;;  %v758_v4 = vsub.f32 %v5118_v56, %v4338_v31  ;;  %v1936_v35 = vmul.f32 0.2, %v1904_v2  ;;  %v4451_v16 = vadd.f32 %v1950_v34, %v4104_v33  ;;  %vm1920_vm15 = vcmp.gt.f32.partialorder %v1904_v2, 0.0  ;;  %v5122_v31 = vld [vmem:[#allocation21_spill] sm:$0xff]  ;;  %v5123_v34 = vld [vmem:[#allocation26_spill] sm:$0xff] }
 0x280   :  { %v970_v63 = vadd.f32 %v3803_v43, %v934_v26  ;;  %v4454_v5 = vadd.f32 %v1016_v14, %v4097_v21  ;;  %v1951_v36 = vsel %vm1919_vm13, %v1903_v52, %v1935_v27  ;;  %v1905_v8 = vadd.f32 %v3807_v45, %v5121_v47  ;;  %v5124_v27 = vld [vmem:[#allocation24_spill] sm:$0xff] }
 0x281   :  { %5119 = vst [vmem:[#allocation25_spill] sm:$0xff] %v4451_v16  ;;  %v971_v13 = vadd.f32 %v3803_v43, %v938_v20  ;;  %v759_v56 = vsub.f32 %v5122_v31, %v4336_v38  ;;  %v774_v33 = vmul.f32 1.442695, %v758_v4  ;;  %v760_v52 = vsub.f32 %v5123_v34, %v4344_v37  ;;  %v1885_v47 = vpop.permute.xlu1 %1884  ;;  %v5125_v37 = vld [vmem:[#allocation22_spill] sm:$0xff] }
 0x282   :  { %5120 = vst [vmem:[#allocation53_spill] sm:$0xff] %v4454_v5  ;;  %v1002_v26 = vmul.f32 0.2, %v970_v63  ;;  %vm986_vm0 = vcmp.gt.f32.partialorder %v970_v63, 0.0  ;;  %v1906_v14 = vadd.f32 %v3807_v45, %v5124_v27  ;;  %v1952_v31 = vsel %vm1920_vm15, %v1904_v2, %v1936_v35 }
 0x283   :  { %1983 = vmax.xlane.f32.xlu0 %v4413_v48  ;;  %1050 = vmax.xlane.f32.xlu1 %v4416_v17  ;;  %v1003_v38 = vmul.f32 0.2, %v971_v13  ;;  %vm1921_vm1 = vcmp.gt.f32.partialorder %v1905_v8, 0.0  ;;  %vm987_vm2 = vcmp.gt.f32.partialorder %v971_v13, 0.0  ;;  %v761_v4 = vsub.f32 %v5125_v37, %v4340_v53 }
 0x284   :  { %3156 = vpow2.f32 %v774_v33  ;;  %v1938_v2 = vmul.f32 0.2, %v1906_v14  ;;  %vm1922_vm3 = vcmp.gt.f32.partialorder %v1906_v14, 0.0  ;;  %v5126_v33 = vld [vmem:[#allocation36_spill] sm:$0xff]  ;;  %vm2288_vm12 = vcmask 261120  }
 0x285   :  { %v1019_v35 = vsel %vm987_vm2, %v971_v13, %v1003_v38  ;;  %v1889_v53 = vpop.permute.xlu1 %1888  ;;  %v946_v13 = vpop.permute.xlu0 %945  ;;  %v1907_v34 = vadd.f32 %v3807_v45, %v5126_v33 }
 0x287   :  { %1052 = vmax.xlane.f32.xlu0 %v4425_v40  ;;  %1985 = vmax.xlane.f32.xlu1 %v4428_v41  ;;  %vm1923_vm5 = vcmp.gt.f32.partialorder %v1907_v34, 0.0 }
 0x28b   :  { %1987 = vmax.xlane.f32.xlu0 %v4438_v59  ;;  %1054 = vmax.xlane.f32.xlu1 %v4441_v29  ;;  %v1017_v29 = vsel %vm985_vm14, %v969_v23, %v1001_v18  ;;  %v4471_v23 = vadd.f32 %v1951_v36, %v4097_v21  ;;  %v1937_v18 = vmul.f32 0.2, %v1905_v8  ;;  %v4478_v21 = vadd.f32 %v1952_v31, %v4136_v32 }
 0x28c   :  { %v4468_v20 = vadd.f32 %v1017_v29, %v4136_v32  ;;  %v778_v29 = vmul.f32 1.442695, %v760_v52  ;;  %v4489_v32 = vadd.f32 %v1019_v35, %v4158_v10  ;;  %v1939_v31 = vmul.f32 0.2, %v1907_v34  ;;  %v5131_v35 = vld [vmem:[#allocation27_spill] sm:$0xff] }
 0x28e   :  { %v4502_v52 = vpop.eup %3156  ;;  %v1955_v33 = vsel %vm1923_vm5, %v1907_v34, %v1939_v31 }
 0x28f   :  { %1989 = vmax.xlane.f32.xlu1 %v4451_v16  ;;  %1056 = vmax.xlane.f32.xlu0 %v4454_v5  ;;  %v1018_v16 = vsel %vm986_vm0, %v970_v63, %v1002_v26  ;;  %v776_v5 = vmul.f32 1.442695, %v759_v56  ;;  %v1953_v63 = vsel %vm1921_vm1, %v1905_v8, %v1937_v18  ;;  %v780_v26 = vmul.f32 1.442695, %v761_v4  ;;  %5127 = vst [vmem:[#allocation34_spill] sm:$0xff] %v4502_v52  ;;  %v5129_v18 = vld [vmem:[#allocation35_spill] sm:$0xff] }
 0x290   :  { %v4481_v36 = vadd.f32 %v1018_v16, %v4116_v57  ;;  %v4486_v56 = vadd.f32 %v1953_v63, %v4116_v57  ;;  %v972_v16 = vadd.f32 %v3803_v43, %v4430_v54  ;;  %v1954_v8 = vsel %vm1922_vm3, %v1906_v14, %v1938_v2  ;;  %v954_v63 = vpop.permute.xlu0 %953 }
 0x291   :  { %3158 = vpow2.f32 %v776_v5  ;;  %v4495_v5 = vpop.xlane.xlu1 %750  ;;  %v4500_v57 = vadd.f32 %v1954_v8, %v4158_v10  ;;  %v973_v54 = vadd.f32 %v3803_v43, %v946_v13  ;;  %v1908_v38 = vadd.f32 %v3807_v45, %v5129_v18 }
 0x292   :  { %3160 = vpow2.f32 %v778_v29  ;;  %v1004_v27 = vmul.f32 0.2, %v972_v16  ;;  %vm988_vm4 = vcmp.gt.f32.partialorder %v972_v16, 0.0  ;;  %v974_v10 = vadd.f32 %v3803_v43, %v4448_v24 }
 0x293   :  { %1058 = vmax.xlane.f32.xlu1 %v4468_v20  ;;  %1991 = vmax.xlane.f32.xlu0 %v4471_v23  ;;  %3162 = vpow2.f32 %v780_v26  ;;  %v1005_v4 = vmul.f32 0.2, %v973_v54  ;;  %vm989_vm6 = vcmp.gt.f32.partialorder %v973_v54, 0.0  ;;  %v762_v26 = vsub.f32 %v5131_v35, %v4348_v42 }
 0x294   :  { %v1020_v2 = vsel %vm988_vm4, %v972_v16, %v1004_v27  ;;  %vm1924_vm7 = vcmp.gt.f32.partialorder %v1908_v38, 0.0  ;;  %v1940_v8 = vmul.f32 0.2, %v1908_v38  ;;  %v1006_v18 = vmul.f32 0.2, %v974_v10 }
 0x295   :  { %v4515_v29 = vpop.xlane.xlu1 %754  ;;  %v4522_v13 = vadd.f32 %v1020_v2, %v4188_v30  ;;  %v1909_v16 = vadd.f32 %v3807_v45, %v1885_v47  ;;  %v975_v27 = vadd.f32 %v3803_v43, %v954_v63  ;;  %vm990_vm8 = vcmp.gt.f32.partialorder %v974_v10, 0.0  ;;  %v5134_v2 = vld [vmem:[#allocation28_spill] sm:$0xff] }
 0x296   :  { %v782_v42 = vmul.f32 1.442695, %v762_v26  ;;  %v764_v34 = vsub.f32 %v5134_v2, %v4354_v9  ;;  %v4540_v43 = vadd.f32 %v1955_v33, %v4188_v30  ;;  %v1956_v47 = vsel %vm1924_vm7, %v1908_v38, %v1940_v8  ;;  %v5135_v26 = vld [vmem:[#allocation29_spill] sm:$0xff]  ;;  %v5136_v9 = vld [vmem:[#allocation30_spill] sm:$0xff]  ;;  %v5137_v33 = vld [vmem:[#allocation31_spill] sm:$0xff] }
 0x297   :  { %1993 = vmax.xlane.f32.xlu1 %v4478_v21  ;;  %1060 = vmax.xlane.f32.xlu0 %v4481_v36  ;;  %vm1925_vm9 = vcmp.gt.f32.partialorder %v1909_v16, 0.0  ;;  %vm991_vm10 = vcmp.gt.f32.partialorder %v975_v27, 0.0  ;;  %v4551_v38 = vadd.f32 %v1956_v47, %v4260_v60 }
 0x298   :  { %3164 = vpow2.f32 %v782_v42  ;;  %v786_v30 = vmul.f32 1.442695, %v764_v34 }
 0x299   :  { %v4534_v31 = vpop.xlane.xlu1 %756 }
 0x29b   :  { %1995 = vmax.xlane.f32.xlu0 %v4486_v56  ;;  %1062 = vmax.xlane.f32.xlu1 %v4489_v32  ;;  %v4507_v14 = vpop.eup %3158 }
 0x29c   :  { %5128 = vst [vmem:[#allocation21_spill] sm:$0xff] %v4507_v14  ;;  %v4511_v37 = vpop.eup %3160 }
 0x29d   :  { %5130 = vst [vmem:[#allocation26_spill] sm:$0xff] %v4511_v37  ;;  %v4524_v24 = vpop.eup %3162 }
 0x29e   :  { %5132 = vst [vmem:[#allocation24_spill] sm:$0xff] %v4524_v24 }
 0x29f   :  { %806 = vadd.xlane.f32.xlu0 %v4502_v52  ;;  %1997 = vmax.xlane.f32.xlu1 %v4500_v57  ;;  %v1021_v52 = vsel %vm989_vm6, %v973_v54, %v1005_v4  ;;  %v1910_v54 = vadd.f32 %v3807_v45, %v1889_v53  ;;  %v1022_v4 = vsel %vm990_vm8, %v974_v10, %v1006_v18 }
 0x2a0   :  { %v4537_v35 = vadd.f32 %v1021_v52, %v4260_v60  ;;  %v766_v52 = vsub.f32 %v5136_v9, %v4363_v1  ;;  %v4554_v45 = vadd.f32 %v1022_v4, %v4199_v58  ;;  %v768_v18 = vsub.f32 %v5137_v33, %v4372_v25  ;;  %v5138_v1 = vld [vmem:[#allocation32_spill] sm:$0xff]  ;;  %v5139_v25 = vld [vmem:[#allocation33_spill] sm:$0xff] }
 0x2a1   :  { %v1942_v53 = vmul.f32 0.2, %v1910_v54  ;;  %vm1926_vm11 = vcmp.gt.f32.partialorder %v1910_v54, 0.0  ;;  %v767_v42 = vsub.f32 %v5138_v1, %v4350_v44  ;;  %v769_v34 = vsub.f32 %v5139_v25, %v4352_v12 }
 0x2a2   :  { %v790_v60 = vmul.f32 1.442695, %v766_v52  ;;  %v770_v44 = vsub.f32 %v4191_v49, %v4495_v5  ;;  %v772_v12 = vsub.f32 %v4203_v28, %v4515_v29  ;;  %v773_v52 = vsub.f32 %v4215_v46, %v4534_v31 }
 0x2a3   :  { %810 = vadd.xlane.f32.xlu0 %v4511_v37  ;;  %808 = vadd.xlane.f32.xlu1 %v4507_v14  ;;  %v5133_v37 = vld [vmem:[#allocation23_spill] sm:$0xff]  ;;  %v792_v47 = vmul.f32 1.442695, %v767_v42  ;;  %v796_v4 = vmul.f32 1.442695, %v769_v34 }
 0x2a4   :  { %v763_v14 = vsub.f32 %v5133_v37, %v4342_v11  ;;  %v1941_v11 = vmul.f32 0.2, %v1909_v16  ;;  %v1007_v37 = vmul.f32 0.2, %v975_v27  ;;  %v802_v9 = vmul.f32 1.442695, %v772_v12 }
 0x2a6   :  { %v784_v63 = vmul.f32 1.442695, %v763_v14  ;;  %v4556_v14 = vpop.xlane.xlu1 %1550  ;;  %v1957_v10 = vsel %vm1925_vm9, %v1909_v16, %v1941_v11 }
 0x2a7   :  { %812 = vadd.xlane.f32.xlu1 %v4524_v24  ;;  %1064 = vmax.xlane.f32.xlu0 %v4522_v13  ;;  %v765_v24 = vsub.f32 %v5135_v26, %v4346_v7  ;;  %v1023_v7 = vsel %vm991_vm10, %v975_v27, %v1007_v37  ;;  %v4568_v16 = vadd.f32 %v1957_v10, %v4199_v58  ;;  %v794_v27 = vmul.f32 1.442695, %v768_v18 }
 0x2a8   :  { %3166 = vpow2.f32 %v784_v63  ;;  %v4565_v2 = vadd.f32 %v1023_v7, %v4212_v62  ;;  %v798_v63 = vmul.f32 1.442695, %v770_v44  ;;  %v804_v10 = vmul.f32 1.442695, %v773_v52  ;;  %v5141_v44 = vld [vmem:[#allocation37_spill] sm:$0xff] }
 0x2a9   :  { %v788_v8 = vmul.f32 1.442695, %v765_v24  ;;  %3168 = vpow2.f32 %v786_v30  ;;  %v1958_v24 = vsel %vm1926_vm11, %v1910_v54, %v1942_v53  ;;  %v4579_v54 = vpop.eup %3164 }
 0x2aa   :  { %v1555_v11 = vpop.xlane.xlu1 %1554  ;;  %v4577_v58 = vadd.f32 %v1958_v24, %v4212_v62 }
 0x2ab   :  { %1066 = vmax.xlane.f32.xlu1 %v4537_v35  ;;  %1999 = vmax.xlane.f32.xlu0 %v4540_v43  ;;  %3170 = vpow2.f32 %v788_v8  ;;  %v1581_v8 = vsub.f32 %v4222_v3, %v4556_v14  ;;  %v1583_v42 = vsub.f32 %v4229_v61, %v1555_v11  ;;  %v5140_v14 = vld [vmem:[#allocation43_spill] sm:$0xff]  ;;  %v5142_v11 = vld [vmem:[#allocation44_spill] sm:$0xff] }
 0x2ac   :  { %3172 = vpow2.f32 %v790_v60 }
 0x2ad   :  { %3174 = vpow2.f32 %v794_v27  ;;  %v1598_v1 = vmul.f32 1.442695, %v1581_v8 }
 0x2ae   :  { %3176 = vpow2.f32 %v792_v47  ;;  %v1559_v30 = vpop.xlane.xlu1 %1558  ;;  %v1602_v47 = vmul.f32 1.442695, %v1583_v42  ;;  %v5146_v42 = vld [vmem:[#allocation46_spill] sm:$0xff] }
 0x2af   :  { %2001 = vmax.xlane.f32.xlu1 %v4551_v38  ;;  %1068 = vmax.xlane.f32.xlu0 %v4554_v45  ;;  %3178 = vpow2.f32 %v796_v4 }
 0x2b0   :  { %3180 = vpow2.f32 %v798_v63 }
 0x2b1   :  { %3182 = vpow2.f32 %v802_v9  ;;  %v5143_v9 = vld [vmem:[#allocation38_spill] sm:$0xff] }
 0x2b2   :  { %v4586_v26 = vpop.eup %3166  ;;  %v1563_v46 = vpop.xlane.xlu1 %1562 }
 0x2b3   :  { %1070 = vmax.xlane.f32.xlu1 %v4565_v2  ;;  %2003 = vmax.xlane.f32.xlu0 %v4568_v16  ;;  %v4588_v62 = vpop.eup %3168  ;;  %v1587_v52 = vsub.f32 %v5143_v9, %v1563_v46 }
 0x2b4   :  { %v753_v37 = vpop.xlane.xlu0 %752 }
 0x2b5   :  { %v771_v49 = vsub.f32 %v4278_v50, %v753_v37  ;;  %v4595_v53 = vpop.eup %3170  ;;  %v1585_v37 = vsub.f32 %v5141_v44, %v1559_v30 }
 0x2b6   :  { %v4597_v7 = vpop.eup %3172  ;;  %v1567_v34 = vpop.xlane.xlu1 %1566 }
 0x2b7   :  { %814 = vadd.xlane.f32.xlu0 %v4579_v54  ;;  %2005 = vmax.xlane.f32.xlu1 %v4577_v58  ;;  %v800_v28 = vmul.f32 1.442695, %v771_v49  ;;  %v4604_v18 = vpop.eup %3174 }
 0x2b8   :  { %v1549_v5 = vpop.xlane.xlu0 %1548  ;;  %v4606_v60 = vpop.eup %3176 }
 0x2b9   :  { %v1580_v29 = vsub.f32 %v4284_v19, %v1549_v5  ;;  %3184 = vpow2.f32 %v800_v28  ;;  %v4612_v25 = vpop.eup %3178  ;;  %v1606_v5 = vmul.f32 1.442695, %v1585_v37  ;;  %v5147_v37 = vld [vmem:[#allocation40_spill] sm:$0xff] }
 0x2ba   :  { %3186 = vpow2.f32 %v804_v10  ;;  %v1571_v30 = vpop.xlane.xlu1 %1570 }
 0x2bb   :  { %818 = vadd.xlane.f32.xlu0 %v4588_v62  ;;  %816 = vadd.xlane.f32.xlu1 %v4586_v26  ;;  %v1596_v31 = vmul.f32 1.442695, %v1580_v29  ;;  %v5144_v29 = vld [vmem:[#allocation45_spill] sm:$0xff] }
 0x2bc   :  { %v1553_v50 = vpop.xlane.xlu0 %1552 }
 0x2bd   :  { %v1582_v33 = vsub.f32 %v4290_v15, %v1553_v50  ;;  %3188 = vpow2.f32 %v1596_v31  ;;  %v4614_v15 = vpop.eup %3180 }
 0x2be   :  { %3190 = vpow2.f32 %v1598_v1  ;;  %v4620_v63 = vpop.eup %3182 }
 0x2bf   :  { %822 = vadd.xlane.f32.xlu0 %v4597_v7  ;;  %820 = vadd.xlane.f32.xlu1 %v4595_v53  ;;  %v1600_v3 = vmul.f32 1.442695, %v1582_v33  ;;  %v1610_v33 = vmul.f32 1.442695, %v1587_v52 }
 0x2c0   :  { %v1557_v19 = vpop.xlane.xlu0 %1556 }
 0x2c1   :  { %v1584_v24 = vsub.f32 %v5140_v14, %v1557_v19  ;;  %3192 = vpow2.f32 %v1600_v3  ;;  %v5145_v19 = vld [vmem:[#allocation39_spill] sm:$0xff] }
 0x2c2   :  { %3194 = vpow2.f32 %v1602_v47  ;;  %v1589_v1 = vsub.f32 %v5145_v19, %v1567_v34  ;;  %v1575_v47 = vpop.xlane.xlu1 %1574 }
 0x2c3   :  { %826 = vadd.xlane.f32.xlu0 %v4604_v18  ;;  %824 = vadd.xlane.f32.xlu1 %v4606_v60  ;;  %v1604_v61 = vmul.f32 1.442695, %v1584_v24  ;;  %v4622_v49 = vpop.eup %3184 }
 0x2c4   :  { %v1561_v27 = vpop.xlane.xlu0 %1560  ;;  %v4628_v8 = vpop.eup %3186  ;;  %v1614_v44 = vmul.f32 1.442695, %v1589_v1 }
 0x2c5   :  { %v1586_v4 = vsub.f32 %v5142_v11, %v1561_v27  ;;  %3196 = vpow2.f32 %v1604_v61  ;;  %v1591_v61 = vsub.f32 %v5147_v37, %v1571_v30  ;;  %v5148_v11 = vld [vmem:[#allocation47_spill] sm:$0xff] }
 0x2c6   :  { %3198 = vpow2.f32 %v1606_v5  ;;  %v1579_v30 = vpop.xlane.xlu1 %1578 }
 0x2c7   :  { %828 = vadd.xlane.f32.xlu1 %v4612_v25  ;;  %830 = vadd.xlane.f32.xlu0 %v4614_v15  ;;  %v1608_v28 = vmul.f32 1.442695, %v1586_v4  ;;  %v4630_v31 = vpop.eup %3188  ;;  %v1618_v52 = vmul.f32 1.442695, %v1591_v61 }
 0x2c8   :  { %v1565_v12 = vpop.xlane.xlu0 %1564  ;;  %v4636_v24 = vpop.eup %3190 }
 0x2c9   :  { %v1588_v50 = vsub.f32 %v5144_v29, %v1565_v12  ;;  %3200 = vpow2.f32 %v1608_v28  ;;  %v5149_v28 = vld [vmem:[#allocation41_spill] sm:$0xff] }
 0x2ca   :  { %3202 = vpow2.f32 %v1610_v33  ;;  %v1593_v29 = vsub.f32 %v5149_v28, %v1575_v47 }
 0x2cb   :  { %832 = vadd.xlane.f32.xlu1 %v4622_v49  ;;  %834 = vadd.xlane.f32.xlu0 %v4620_v63  ;;  %v1612_v46 = vmul.f32 1.442695, %v1588_v50  ;;  %v4638_v27 = vpop.eup %3192 }
 0x2cc   :  { %v1569_v10 = vpop.xlane.xlu0 %1568  ;;  %v4644_v5 = vpop.eup %3194 }
 0x2cd   :  { %v1590_v3 = vsub.f32 %v5146_v42, %v1569_v10  ;;  %3204 = vpow2.f32 %v1612_v46  ;;  %v5150_v10 = vld [vmem:[#allocation48_spill] sm:$0xff]  ;;  %v1622_v42 = vmul.f32 1.442695, %v1593_v29 }
 0x2ce   :  { %3206 = vpow2.f32 %v1614_v44  ;;  %v5152_v44 = vld [vmem:[#allocation49_spill] sm:$0xff] }
 0x2cf   :  { %1628 = vadd.xlane.f32.xlu0 %v4630_v31  ;;  %836 = vadd.xlane.f32.xlu1 %v4628_v8  ;;  %v1616_v34 = vmul.f32 1.442695, %v1590_v3  ;;  %v4646_v9 = vpop.eup %3196  ;;  %v5151_v3 = vld [vmem:[#allocation42_spill] sm:$0xff] }
 0x2d0   :  { %v1573_v14 = vpop.xlane.xlu0 %1572  ;;  %v4652_v1 = vpop.eup %3198 }
 0x2d1   :  { %v1592_v4 = vsub.f32 %v5148_v11, %v1573_v14  ;;  %3208 = vpow2.f32 %v1616_v34  ;;  %v1595_v14 = vsub.f32 %v5151_v3, %v1579_v30 }
 0x2d2   :  { %3210 = vpow2.f32 %v1618_v52  ;;  %v5153_v52 = vld [vmem:[#allocation50_spill] sm:$0xff] }
 0x2d3   :  { %1632 = vadd.xlane.f32.xlu0 %v4638_v27  ;;  %1630 = vadd.xlane.f32.xlu1 %v4636_v24  ;;  %v1620_v50 = vmul.f32 1.442695, %v1592_v4  ;;  %v4654_v46 = vpop.eup %3200  ;;  %v1626_v4 = vmul.f32 1.442695, %v1595_v14 }
 0x2d4   :  { %v1577_v12 = vpop.xlane.xlu0 %1576  ;;  %v4660_v61 = vpop.eup %3202 }
 0x2d5   :  { %v1594_v33 = vsub.f32 %v5150_v10, %v1577_v12  ;;  %3212 = vpow2.f32 %v1620_v50 }
 0x2d6   :  { %3214 = vpow2.f32 %v1622_v42 }
 0x2d7   :  { %1636 = vadd.xlane.f32.xlu0 %v4646_v9  ;;  %1634 = vadd.xlane.f32.xlu1 %v4644_v5  ;;  %v1624_v47 = vmul.f32 1.442695, %v1594_v33  ;;  %v4662_v11 = vpop.eup %3204 }
 0x2d8   :  { %v1041_v19 = vpop.xlane.xlu0 %1040  ;;  %v4667_v29 = vpop.eup %3206 }
 0x2d9   :  { %v1072_v37 = vsub.f32 %v5152_v44, %v1041_v19  ;;  %3216 = vpow2.f32 %v1624_v47 }
 0x2da   :  { %3218 = vpow2.f32 %v1626_v4 }
 0x2db   :  { %1640 = vadd.xlane.f32.xlu0 %v4654_v46  ;;  %1638 = vadd.xlane.f32.xlu1 %v4652_v1  ;;  %v1088_v12 = vmul.f32 1.442695, %v1072_v37  ;;  %v4669_v30 = vpop.eup %3208  ;;  %v5161_v37 = vld [vmem:[#allocation51_spill] sm:$0xff] }
 0x2dc   :  { %v1976_v34 = vpop.xlane.xlu0 %1975  ;;  %v4673_v10 = vpop.eup %3210 }
 0x2dd   :  { %v2007_v28 = vsub.f32 %v5153_v52, %v1976_v34  ;;  %3220 = vpow2.f32 %v1088_v12  ;;  %5154 = vst [vmem:[#allocation22_spill] sm:$0xff] %v4673_v10 }
 0x2df   :  { %1644 = vadd.xlane.f32.xlu0 %v4662_v11  ;;  %1642 = vadd.xlane.f32.xlu1 %v4660_v61  ;;  %v2023_v50 = vmul.f32 1.442695, %v2007_v28  ;;  %v4675_v33 = vpop.eup %3212 }
 0x2e0   :  { %5155 = vst [vmem:[#allocation36_spill] sm:$0xff] %v4675_v33  ;;  %v4679_v19 = vpop.eup %3214 }
 0x2e1   :  { %3222 = vpow2.f32 %v2023_v50  ;;  %5156 = vst [vmem:[#allocation35_spill] sm:$0xff] %v4679_v19 }
 0x2e3   :  { %1648 = vadd.xlane.f32.xlu0 %v4669_v30  ;;  %1646 = vadd.xlane.f32.xlu1 %v4667_v29  ;;  %v4681_v42 = vpop.eup %3216 }
 0x2e4   :  { %5157 = vst [vmem:[#allocation27_spill] sm:$0xff] %v4681_v42  ;;  %v4685_v3 = vpop.eup %3218 }
 0x2e5   :  { %5158 = vst [vmem:[#allocation23_spill] sm:$0xff] %v4685_v3 }
 0x2e7   :  { %1652 = vadd.xlane.f32.xlu0 %v4675_v33  ;;  %1650 = vadd.xlane.f32.xlu1 %v4673_v10  ;;  %v4687_v14 = vpop.eup %3220 }
 0x2e8   :  { %5159 = vst [vmem:[#allocation28_spill] sm:$0xff] %v4687_v14 }
 0x2eb   :  { %1656 = vadd.xlane.f32.xlu0 %v4681_v42  ;;  %1654 = vadd.xlane.f32.xlu1 %v4679_v19  ;;  %v4691_v47 = vpop.eup %3222 }
 0x2ec   :  { %5160 = vst [vmem:[#allocation29_spill] sm:$0xff] %v4691_v47 }
 0x2ef   :  { %1120 = vadd.xlane.f32.xlu0 %v4687_v14  ;;  %1658 = vadd.xlane.f32.xlu1 %v4685_v3 }
 0x2f3   :  { %2055 = vadd.xlane.f32.xlu0 %v4691_v47 }
 0x300   :  { %v1043_v44 = vpop.xlane.xlu1 %1042 }
 0x301   :  { %v1073_v34 = vsub.f32 %v5161_v37, %v1043_v44 }
 0x303   :  { %v1090_v4 = vmul.f32 1.442695, %v1073_v34 }
 0x304   :  { %v1045_v12 = vpop.xlane.xlu0 %1044  ;;  %v1978_v52 = vpop.xlane.xlu1 %1977 }
 0x305   :  { %3224 = vpow2.f32 %v1090_v4  ;;  %v1074_v28 = vsub.f32 %v4381_v51, %v1045_v12  ;;  %v2008_v50 = vsub.f32 %v4376_v22, %v1978_v52 }
 0x307   :  { %v1092_v42 = vmul.f32 1.442695, %v1074_v28  ;;  %v2025_v19 = vmul.f32 1.442695, %v2008_v50 }
 0x308   :  { %v1980_v14 = vpop.xlane.xlu0 %1979  ;;  %v1047_v33 = vpop.xlane.xlu1 %1046 }
 0x309   :  { %3226 = vpow2.f32 %v1092_v42  ;;  %v2009_v3 = vsub.f32 %v4388_v39, %v1980_v14  ;;  %v1075_v47 = vsub.f32 %v4393_v0, %v1047_v33 }
 0x30a   :  { %3228 = vpow2.f32 %v2025_v19 }
 0x30b   :  { %v2027_v10 = vmul.f32 1.442695, %v2009_v3  ;;  %v1094_v44 = vmul.f32 1.442695, %v1075_v47 }
 0x30c   :  { %v1049_v37 = vpop.xlane.xlu0 %1048  ;;  %v1982_v34 = vpop.xlane.xlu1 %1981 }
 0x30d   :  { %3230 = vpow2.f32 %v2027_v10  ;;  %v1076_v4 = vsub.f32 %v4403_v6, %v1049_v37  ;;  %v2010_v51 = vsub.f32 %v4400_v55, %v1982_v34 }
 0x30e   :  { %3232 = vpow2.f32 %v1094_v44 }
 0x30f   :  { %v4701_v22 = vpop.eup %3224  ;;  %v1096_v12 = vmul.f32 1.442695, %v1076_v4  ;;  %v2029_v52 = vmul.f32 1.442695, %v2010_v51 }
 0x310   :  { %v1984_v42 = vpop.xlane.xlu0 %1983  ;;  %1122 = vadd.xlane.f32.xlu1 %v4701_v22  ;;  %v1051_v39 = vpop.xlane.xlu1 %1050 }
 0x311   :  { %3234 = vpow2.f32 %v1096_v12  ;;  %v2011_v0 = vsub.f32 %v4413_v48, %v1984_v42  ;;  %v1077_v33 = vsub.f32 %v4416_v17, %v1051_v39 }
 0x312   :  { %3236 = vpow2.f32 %v2029_v52 }
 0x313   :  { %v4706_v10 = vpop.eup %3226  ;;  %v2031_v6 = vmul.f32 1.442695, %v2011_v0  ;;  %v1098_v19 = vmul.f32 1.442695, %v1077_v33  ;;  %v5163_v33 = vld [vmem:[#allocation53_spill] sm:$0xff] }
 0x314   :  { %v4708_v55 = vpop.eup %3228  ;;  %v1053_v3 = vpop.xlane.xlu0 %1052  ;;  %1124 = vadd.xlane.f32.xlu0 %v4706_v10 }
 0x315   :  { %v1986_v14 = vpop.xlane.xlu1 %1985  ;;  %3238 = vpow2.f32 %v2031_v6  ;;  %v1078_v47 = vsub.f32 %v4425_v40, %v1053_v3  ;;  %2057 = vadd.xlane.f32.xlu1 %v4708_v55  ;;  %v5162_v40 = vld [vmem:[#allocation52_spill] sm:$0xff] }
 0x316   :  { %v2012_v48 = vsub.f32 %v4428_v41, %v1986_v14  ;;  %3240 = vpow2.f32 %v1098_v19 }
 0x317   :  { %v4714_v17 = vpop.eup %3230  ;;  %v1100_v28 = vmul.f32 1.442695, %v1078_v47 }
 0x318   :  { %v2033_v50 = vmul.f32 1.442695, %v2012_v48  ;;  %v4716_v44 = vpop.eup %3232  ;;  %v1988_v37 = vpop.xlane.xlu0 %1987  ;;  %2059 = vadd.xlane.f32.xlu0 %v4714_v17 }
 0x319   :  { %v1055_v34 = vpop.xlane.xlu1 %1054  ;;  %3242 = vpow2.f32 %v1100_v28  ;;  %v2013_v4 = vsub.f32 %v4438_v59, %v1988_v37  ;;  %1126 = vadd.xlane.f32.xlu1 %v4716_v44  ;;  %v5164_v59 = vld [vmem:[#allocation25_spill] sm:$0xff] }
 0x31a   :  { %v1079_v51 = vsub.f32 %v5162_v40, %v1055_v34  ;;  %3244 = vpow2.f32 %v2033_v50 }
 0x31b   :  { %v4722_v41 = vpop.eup %3234  ;;  %v2035_v12 = vmul.f32 1.442695, %v2013_v4 }
 0x31c   :  { %v1102_v52 = vmul.f32 1.442695, %v1079_v51  ;;  %v4724_v42 = vpop.eup %3236  ;;  %v1057_v39 = vpop.xlane.xlu0 %1056  ;;  %1128 = vadd.xlane.f32.xlu0 %v4722_v41 }
 0x31d   :  { %v1990_v0 = vpop.xlane.xlu1 %1989  ;;  %3246 = vpow2.f32 %v2035_v12  ;;  %v1080_v6 = vsub.f32 %v5163_v33, %v1057_v39  ;;  %2061 = vadd.xlane.f32.xlu1 %v4724_v42 }
 0x31e   :  { %v2014_v19 = vsub.f32 %v5164_v59, %v1990_v0  ;;  %3248 = vpow2.f32 %v1102_v52 }
 0x31f   :  { %v4730_v3 = vpop.eup %3238  ;;  %v1104_v14 = vmul.f32 1.442695, %v1080_v6 }
 0x320   :  { %v2037_v47 = vmul.f32 1.442695, %v2014_v19  ;;  %v4732_v48 = vpop.eup %3240  ;;  %v1992_v28 = vpop.xlane.xlu0 %1991  ;;  %2063 = vadd.xlane.f32.xlu0 %v4730_v3 }
 0x321   :  { %v1059_v50 = vpop.xlane.xlu1 %1058  ;;  %3250 = vpow2.f32 %v1104_v14  ;;  %v2015_v37 = vsub.f32 %v4471_v23, %v1992_v28  ;;  %1130 = vadd.xlane.f32.xlu1 %v4732_v48 }
 0x322   :  { %v1081_v34 = vsub.f32 %v4468_v20, %v1059_v50  ;;  %3252 = vpow2.f32 %v2037_v47 }
 0x323   :  { %v4738_v4 = vpop.eup %3242  ;;  %v2039_v40 = vmul.f32 1.442695, %v2015_v37 }
 0x324   :  { %v1106_v51 = vmul.f32 1.442695, %v1081_v34  ;;  %v4740_v12 = vpop.eup %3244  ;;  %v1061_v52 = vpop.xlane.xlu0 %1060  ;;  %1132 = vadd.xlane.f32.xlu0 %v4738_v4 }
 0x325   :  { %v1994_v39 = vpop.xlane.xlu1 %1993  ;;  %3254 = vpow2.f32 %v2039_v40  ;;  %v1082_v0 = vsub.f32 %v4481_v36, %v1061_v52  ;;  %2065 = vadd.xlane.f32.xlu1 %v4740_v12 }
 0x326   :  { %v2016_v23 = vsub.f32 %v4478_v21, %v1994_v39  ;;  %3256 = vpow2.f32 %v1106_v51 }
 0x327   :  { %v4746_v20 = vpop.eup %3246  ;;  %v1108_v33 = vmul.f32 1.442695, %v1082_v0 }
 0x328   :  { %v2041_v6 = vmul.f32 1.442695, %v2016_v23  ;;  %v4748_v59 = vpop.eup %3248  ;;  %v1996_v19 = vpop.xlane.xlu0 %1995  ;;  %2067 = vadd.xlane.f32.xlu0 %v4746_v20 }
 0x329   :  { %v1063_v14 = vpop.xlane.xlu1 %1062  ;;  %3258 = vpow2.f32 %v1108_v33  ;;  %v2017_v47 = vsub.f32 %v4486_v56, %v1996_v19  ;;  %1134 = vadd.xlane.f32.xlu1 %v4748_v59 }
 0x32a   :  { %v1083_v36 = vsub.f32 %v4489_v32, %v1063_v14  ;;  %3260 = vpow2.f32 %v2041_v6 }
 0x32b   :  { %v4754_v21 = vpop.eup %3250  ;;  %v2043_v28 = vmul.f32 1.442695, %v2017_v47 }
 0x32c   :  { %5165 = vst [vmem:[#allocation30_spill] sm:$0xff] %v4754_v21  ;;  %v1110_v50 = vmul.f32 1.442695, %v1083_v36  ;;  %v4756_v37 = vpop.eup %3252  ;;  %v807_v34 = vpop.xlane.xlu0 %806  ;;  %1136 = vadd.xlane.f32.xlu0 %v4754_v21 }
 0x32d   :  { %5166 = vst [vmem:[#allocation31_spill] sm:$0xff] %v4756_v37  ;;  %v1998_v40 = vpop.xlane.xlu1 %1997  ;;  %3262 = vpow2.f32 %v2043_v28  ;;  %2069 = vadd.xlane.f32.xlu1 %v4756_v37 }
 0x32e   :  { %v2018_v56 = vsub.f32 %v4500_v57, %v1998_v40  ;;  %3264 = vpow2.f32 %v1110_v50 }
 0x32f   :  { %v4761_v51 = vpop.eup %3254  ;;  %3266 = vrcp.f32 %v807_v34 }
 0x330   :  { %5167 = vst [vmem:[#allocation32_spill] sm:$0xff] %v4761_v51  ;;  %v2045_v32 = vmul.f32 1.442695, %v2018_v56  ;;  %v4763_v52 = vpop.eup %3256  ;;  %v811_v39 = vpop.xlane.xlu0 %810  ;;  %2071 = vadd.xlane.f32.xlu0 %v4761_v51  ;;  %v5176_v51 = vld [vmem:[#allocation24_spill] sm:$0xff] }
 0x331   :  { %5168 = vst [vmem:[#allocation33_spill] sm:$0xff] %v4763_v52  ;;  %v809_v0 = vpop.xlane.xlu1 %808  ;;  %1138 = vadd.xlane.f32.xlu1 %v4763_v52 }
 0x332   :  { %3268 = vpow2.f32 %v2045_v32 }
 0x333   :  { %3270 = vrcp.f32 %v811_v39  ;;  %v4767_v23 = vpop.eup %3258 }
 0x334   :  { %5169 = vst [vmem:[#allocation43_spill] sm:$0xff] %v4767_v23  ;;  %3272 = vrcp.f32 %v809_v0  ;;  %v4769_v33 = vpop.eup %3260  ;;  %v1065_v57 = vpop.xlane.xlu0 %1064  ;;  %1140 = vadd.xlane.f32.xlu0 %v4767_v23 }
 0x335   :  { %5170 = vst [vmem:[#allocation37_spill] sm:$0xff] %v4769_v33  ;;  %v813_v6 = vpop.xlane.xlu1 %812  ;;  %v1084_v19 = vsub.f32 %v4522_v13, %v1065_v57  ;;  %2073 = vadd.xlane.f32.xlu1 %v4769_v33 }
 0x336   :  { %3274 = vrcp.f32 %v813_v6 }
 0x337   :  { %v4774_v14 = vpop.eup %3262  ;;  %v1112_v47 = vmul.f32 1.442695, %v1084_v19 }
 0x338   :  { %5171 = vst [vmem:[#allocation44_spill] sm:$0xff] %v4774_v14  ;;  %v4776_v36 = vpop.eup %3264  ;;  %v2000_v28 = vpop.xlane.xlu0 %1999  ;;  %2075 = vadd.xlane.f32.xlu0 %v4774_v14 }
 0x339   :  { %5172 = vst [vmem:[#allocation38_spill] sm:$0xff] %v4776_v36  ;;  %v1067_v50 = vpop.xlane.xlu1 %1066  ;;  %3276 = vpow2.f32 %v1112_v47  ;;  %v2019_v34 = vsub.f32 %v4540_v43, %v2000_v28  ;;  %1142 = vadd.xlane.f32.xlu1 %v4776_v36  ;;  %v3267_v13 = vpop.eup %3266  ;;  %v5173_v47 = vld [vmem:[#allocation34_spill] sm:$0xff] }
 0x33a   :  { %v1085_v40 = vsub.f32 %v4537_v35, %v1067_v50  ;;  %v854_v28 = vmul.f32 %v3267_v13, %v5173_v47  ;;  %v5174_v35 = vld [vmem:[#allocation21_spill] sm:$0xff] }
 0x33b   :  { %v2047_v32 = vmul.f32 1.442695, %v2019_v34 }
 0x33c   :  { %v4782_v56 = vpop.eup %3268  ;;  %v1114_v39 = vmul.f32 1.442695, %v1085_v40  ;;  %v1069_v57 = vpop.xlane.xlu0 %1068  ;;  %v5175_v40 = vld [vmem:[#allocation26_spill] sm:$0xff] }
 0x33d   :  { %v3271_v0 = vpop.eup %3270  ;;  %v2002_v6 = vpop.xlane.xlu1 %2001  ;;  %3278 = vpow2.f32 %v2047_v32  ;;  %v1086_v14 = vsub.f32 %v4554_v45, %v1069_v57  ;;  %2077 = vadd.xlane.f32.xlu1 %v4782_v56 }
 0x33e   :  { %v3273_v19 = vpop.eup %3272  ;;  %v2020_v43 = vsub.f32 %v4551_v38, %v2002_v6  ;;  %3280 = vpow2.f32 %v1114_v39  ;;  %v856_v33 = vmul.f32 %v3271_v0, %v5175_v40  ;;  %v5179_v0 = vld [vmem:[#allocation9_spill] sm:$0xff] }
 0x33f   :  { %v855_v50 = vmul.f32 %v3273_v19, %v5174_v35  ;;  %v1116_v23 = vmul.f32 1.442695, %v1086_v14 }
 0x340   :  { %v3275_v36 = vpop.eup %3274  ;;  %v2049_v34 = vmul.f32 1.442695, %v2020_v43  ;;  %v2004_v21 = vpop.xlane.xlu0 %2003 }
 0x341   :  { %v857_v52 = vmul.f32 %v3275_v36, %v5176_v51  ;;  %v884_v32 = vpack.c.bf16 %v855_v50, %v854_v28  ;;  %v1071_v37 = vpop.xlane.xlu1 %1070  ;;  %3282 = vpow2.f32 %v1116_v23  ;;  %v2021_v45 = vsub.f32 %v4568_v16, %v2004_v21  ;;  %v5177_v36 = vld [vmem:[#allocation5_spill] sm:$0xff]  ;;  %v5178_v16 = vld [vmem:[#allocation7_spill] sm:$0xff] }
 0x342   :  { %v1087_v38 = vsub.f32 %v4565_v2, %v1071_v37  ;;  %3284 = vpow2.f32 %v2049_v34  ;;  %v5180_v28 = vld [vmem:[#allocation11_spill] sm:$0xff] }
 0x343   :  { %2915 = vmatprep.mubr.bf16.mxu1 %v884_v32  ;;  %v885_v13 = vpack.c.bf16 %v857_v52, %v856_v33  ;;  %v4793_v39 = vpop.eup %3276  ;;  %v2051_v57 = vmul.f32 1.442695, %v2021_v45  ;;  %v5181_v45 = vld [vmem:[#allocation13_spill] sm:$0xff] }
 0x344   :  { %v1118_v14 = vmul.f32 1.442695, %v1087_v38  ;;  %v815_v6 = vpop.xlane.xlu0 %814  ;;  %1144 = vadd.xlane.f32.xlu0 %v4793_v39 }
 0x345   :  { %2916 = vmatmul.mubr.bf16.vlgmr.msra.gmra.mrb[16].mxu1 %v885_v13  ;;  %v2006_v51 = vpop.xlane.xlu1 %2005  ;;  %3286 = vpow2.f32 %v2051_v57 }
 0x346   :  { %2932 = vmatpush3.bf16.msra.mxu1 %v5177_v36  ;;  %v2022_v23 = vsub.f32 %v4577_v58, %v2006_v51  ;;  %3288 = vpow2.f32 %v1118_v14  ;;  %v5182_v51 = vld [vmem:[#allocation15_spill] sm:$0xff] }
 0x347   :  { %2933 = vmatprep.subr.bf16.mxu1 %v5178_v16  ;;  %v4799_v2 = vpop.eup %3278  ;;  %3290 = vrcp.f32 %v815_v6 }
 0x348   :  { %v2053_v21 = vmul.f32 1.442695, %v2022_v23  ;;  %v4801_v37 = vpop.eup %3280  ;;  %v819_v52 = vpop.xlane.xlu0 %818  ;;  %2079 = vadd.xlane.f32.xlu0 %v4799_v2 }
 0x349   :  { %v817_v33 = vpop.xlane.xlu1 %816  ;;  %1146 = vadd.xlane.f32.xlu1 %v4801_v37 }
 0x34a   :  { %3292 = vpow2.f32 %v2053_v21  ;;  %2934 = vmatpush3.bf16.msra.mxu1 %v5178_v16 }
 0x34b   :  { %2935 = vmatprep.subr.bf16.mxu1 %v5179_v0  ;;  %v4807_v58 = vpop.eup %3282  ;;  %3294 = vrcp.f32 %v817_v33 }
 0x34c   :  { %v4809_v19 = vpop.eup %3284  ;;  %3296 = vrcp.f32 %v819_v52  ;;  %v823_v43 = vpop.xlane.xlu0 %822  ;;  %1148 = vadd.xlane.f32.xlu0 %v4807_v58 }
 0x34d   :  { %v821_v47 = vpop.xlane.xlu1 %820  ;;  %2081 = vadd.xlane.f32.xlu1 %v4809_v19 }
 0x34e   :  { %2936 = vmatpush3.bf16.msra.mxu1 %v5179_v0  ;;  %3298 = vrcp.f32 %v821_v47 }
 0x34f   :  { %2937 = vmatprep.subr.bf16.mxu1 %v5180_v28  ;;  %v4815_v35 = vpop.eup %3286  ;;  %3300 = vrcp.f32 %v823_v43 }
 0x350   :  { %v4817_v50 = vpop.eup %3288  ;;  %v827_v34 = vpop.xlane.xlu0 %826  ;;  %2083 = vadd.xlane.f32.xlu0 %v4815_v35 }
 0x351   :  { %v825_v40 = vpop.xlane.xlu1 %824  ;;  %1150 = vadd.xlane.f32.xlu1 %v4817_v50  ;;  %v3291_v32 = vpop.eup %3290 }
 0x352   :  { %2938 = vmatpush3.bf16.msra.mxu1 %v5180_v28  ;;  %3302 = vrcp.f32 %v825_v40  ;;  %v858_v36 = vmul.f32 %v3291_v32, %v4579_v54  ;;  %v5183_v28 = vld [vmem:[#allocation17_spill] sm:$0xff] }
 0x353   :  { %2939 = vmatprep.subr.bf16.mxu1 %v5181_v45  ;;  %3304 = vrcp.f32 %v827_v34 }
 0x354   :  { %v4823_v38 = vpop.eup %3292  ;;  %v831_v13 = vpop.xlane.xlu0 %830 }
 0x355   :  { %v829_v57 = vpop.xlane.xlu1 %828  ;;  %v3295_v14 = vpop.eup %3294  ;;  %2085 = vadd.xlane.f32.xlu1 %v4823_v38 }
 0x356   :  { %2940 = vmatpush3.bf16.msra.mxu1 %v5181_v45  ;;  %v3297_v6 = vpop.eup %3296  ;;  %3306 = vrcp.f32 %v829_v57  ;;  %v859_v23 = vmul.f32 %v3295_v14, %v4586_v26 }
 0x357   :  { %2941 = vmatprep.subr.bf16.mxu1 %v5182_v51  ;;  %3308 = vrcp.f32 %v831_v13  ;;  %v860_v0 = vmul.f32 %v3297_v6, %v4588_v62  ;;  %v5184_v62 = vld [vmem:[#allocation19_spill] sm:$0xff] }
 0x358   :  { %v3299_v16 = vpop.eup %3298  ;;  %v835_v21 = vpop.xlane.xlu0 %834  ;;  %v886_v52 = vpack.c.bf16 %v859_v23, %v858_v36 }
 0x359   :  { %v833_v33 = vpop.xlane.xlu1 %832  ;;  %v861_v43 = vmul.f32 %v3299_v16, %v4595_v53  ;;  %v3301_v47 = vpop.eup %3300 }
 0x35a   :  { %2942 = vmatpush3.bf16.msra.mxu1 %v5182_v51  ;;  %2919 = vmatprep.mubr.bf16.mxu1 %v886_v52  ;;  %3310 = vrcp.f32 %v833_v33  ;;  %v862_v32 = vmul.f32 %v3301_v47, %v4597_v7  ;;  %v5185_v7 = vld [vmem:[#allocation6_spill] sm:$0xff] }
 0x35b   :  { %2943 = vmatprep.subr.bf16.mxu1 %v5183_v28  ;;  %v887_v34 = vpack.c.bf16 %v861_v43, %v860_v0  ;;  %3312 = vrcp.f32 %v835_v21 }
 0x35c   :  { %v3303_v54 = vpop.eup %3302  ;;  %v1629_v26 = vpop.xlane.xlu0 %1628 }
 0x35d   :  { %v837_v40 = vpop.xlane.xlu1 %836  ;;  %2920 = vmatmul.mubr.bf16.gmra.mrb[20].mxu1 %v887_v34  ;;  %v863_v45 = vmul.f32 %v3303_v54, %v4606_v60  ;;  %v3305_v13 = vpop.eup %3304 }
 0x35e   :  { %2944 = vmatpush3.bf16.msra.mxu1 %v5183_v28  ;;  %3314 = vrcp.f32 %v837_v40  ;;  %v864_v51 = vmul.f32 %v3305_v13, %v4604_v18 }
 0x35f   :  { %2945 = vmatprep.subr.bf16.mxu1 %v5184_v62  ;;  %v888_v53 = vpack.c.bf16 %v863_v45, %v862_v32  ;;  %3316 = vrcp.f32 %v1629_v26 }
 0x360   :  { %v3307_v57 = vpop.eup %3306  ;;  %v1633_v14 = vpop.xlane.xlu0 %1632 }
 0x361   :  { %v1631_v6 = vpop.xlane.xlu1 %1630  ;;  %2923 = vmatprep.mubr.bf16.mxu1 %v888_v53  ;;  %v865_v36 = vmul.f32 %v3307_v57, %v4612_v25  ;;  %v3309_v23 = vpop.eup %3308 }
 0x362   :  { %2946 = vmatpush3.bf16.msra.mxu1 %v5184_v62  ;;  %3318 = vrcp.f32 %v1631_v6  ;;  %v866_v33 = vmul.f32 %v3309_v23, %v4614_v15 }
 0x363   :  { %2963 = vmatprep.subr.bf16.mxu1 %v5185_v7  ;;  %v889_v60 = vpack.c.bf16 %v865_v36, %v864_v51  ;;  %3320 = vrcp.f32 %v1633_v14 }
 0x364   :  { %v3311_v16 = vpop.eup %3310  ;;  %v1637_v21 = vpop.xlane.xlu0 %1636 }
 0x365   :  { %v1635_v52 = vpop.xlane.xlu1 %1634  ;;  %2924 = vmatmul.mubr.bf16.gmra.mrb[24].mxu1 %v889_v60  ;;  %v867_v0 = vmul.f32 %v3311_v16, %v4622_v49  ;;  %v3313_v43 = vpop.eup %3312 }
 0x366   :  { %3322 = vrcp.f32 %v1635_v52  ;;  %v868_v34 = vmul.f32 %v3313_v43, %v4620_v63 }
 0x367   :  { %v890_v18 = vpack.c.bf16 %v867_v0, %v866_v33  ;;  %3324 = vrcp.f32 %v1637_v21 }
 0x368   :  { %v3315_v25 = vpop.eup %3314  ;;  %v1641_v47 = vpop.xlane.xlu0 %1640 }
 0x369   :  { %v1639_v28 = vpop.xlane.xlu1 %1638  ;;  %2927 = vmatprep.mubr.bf16.mxu1 %v890_v18  ;;  %v869_v54 = vmul.f32 %v3315_v25, %v4628_v8  ;;  %v3317_v26 = vpop.eup %3316 }
 0x36a   :  { %3326 = vrcp.f32 %v1639_v28  ;;  %v1676_v49 = vmul.f32 %v3317_v26, %v4630_v31 }
 0x36b   :  { %v891_v40 = vpack.c.bf16 %v869_v54, %v868_v34  ;;  %3328 = vrcp.f32 %v1641_v47 }
 0x36c   :  { %v3319_v32 = vpop.eup %3318  ;;  %v1645_v15 = vpop.xlane.xlu0 %1644 }
 0x36d   :  { %v1643_v45 = vpop.xlane.xlu1 %1642  ;;  %2928 = vmatmul.mubr.bf16.gmra.mrb[28].mxu1 %v891_v40  ;;  %v1677_v13 = vmul.f32 %v3319_v32, %v4636_v24  ;;  %v3321_v62 = vpop.eup %3320  ;;  %v5189_v32 = vld [vmem:[#allocation22_spill] sm:$0xff] }
 0x36e   :  { %3330 = vrcp.f32 %v1643_v45  ;;  %v1678_v8 = vmul.f32 %v3321_v62, %v4638_v27  ;;  %v5186_v27 = vld [vmem:[#allocation8_spill] sm:$0xff] }
 0x36f   :  { %v1706_v53 = vpack.c.bf16 %v1677_v13, %v1676_v49  ;;  %3332 = vrcp.f32 %v1645_v15  ;;  %v5190_v49 = vld [vmem:[#allocation14_spill] sm:$0xff]  ;;  %v5191_v13 = vld [vmem:[#allocation36_spill] sm:$0xff] }
 0x370   :  { %v3323_v57 = vpop.eup %3322  ;;  %v1649_v63 = vpop.xlane.xlu0 %1648 }
 0x371   :  { %v1647_v14 = vpop.xlane.xlu1 %1646  ;;  %v1679_v6 = vmul.f32 %v3323_v57, %v4644_v5  ;;  %2947 = vmatprep.mubr.bf16.mxu1 %v1706_v53  ;;  %v3325_v51 = vpop.eup %3324  ;;  %v5192_v53 = vld [vmem:[#allocation35_spill] sm:$0xff] }
 0x372   :  { %3334 = vrcp.f32 %v1647_v14  ;;  %v1680_v24 = vmul.f32 %v3325_v51, %v4646_v9  ;;  %v5187_v9 = vld [vmem:[#allocation10_spill] sm:$0xff]  ;;  %v5193_v14 = vld [vmem:[#allocation16_spill] sm:$0xff] }
 0x373   :  { %v1707_v36 = vpack.c.bf16 %v1679_v6, %v1678_v8  ;;  %3336 = vrcp.f32 %v1649_v63  ;;  %v5194_v6 = vld [vmem:[#allocation27_spill] sm:$0xff] }
 0x374   :  { %v3327_v23 = vpop.eup %3326  ;;  %v1653_v31 = vpop.xlane.xlu0 %1652 }
 0x375   :  { %v1651_v60 = vpop.xlane.xlu1 %1650  ;;  %2948 = vmatmul.mubr.bf16.vlgmr.msra.gmra.mrb[16].mxu1 %v1707_v36  ;;  %v1681_v16 = vmul.f32 %v3327_v23, %v4652_v1  ;;  %v3329_v21 = vpop.eup %3328  ;;  %v5195_v36 = vld [vmem:[#allocation23_spill] sm:$0xff] }
 0x376   :  { %2964 = vmatpush3.bf16.msra.mxu1 %v5185_v7  ;;  %3338 = vrcp.f32 %v1651_v60  ;;  %v1682_v43 = vmul.f32 %v3329_v21, %v4654_v46  ;;  %v5188_v46 = vld [vmem:[#allocation12_spill] sm:$0xff] }
 0x377   :  { %2965 = vmatprep.subr.bf16.mxu1 %v5186_v27  ;;  %v1708_v5 = vpack.c.bf16 %v1681_v16, %v1680_v24  ;;  %3340 = vrcp.f32 %v1653_v31  ;;  %v5196_v31 = vld [vmem:[#allocation18_spill] sm:$0xff]  ;;  %v5197_v24 = vld [vmem:[#allocation20_spill] sm:$0xff] }
 0x378   :  { %v3331_v52 = vpop.eup %3330  ;;  %v1657_v0 = vpop.xlane.xlu0 %1656 }
 0x379   :  { %v1655_v33 = vpop.xlane.xlu1 %1654  ;;  %2951 = vmatprep.mubr.bf16.mxu1 %v1708_v5  ;;  %v1683_v18 = vmul.f32 %v3331_v52, %v4660_v61  ;;  %v3333_v25 = vpop.eup %3332 }
 0x37a   :  { %2966 = vmatpush3.bf16.msra.mxu1 %v5186_v27  ;;  %3342 = vrcp.f32 %v1655_v33  ;;  %v1684_v28 = vmul.f32 %v3333_v25, %v4662_v11 }
 0x37b   :  { %2967 = vmatprep.subr.bf16.mxu1 %v5187_v9  ;;  %v1709_v1 = vpack.c.bf16 %v1683_v18, %v1682_v43  ;;  %3344 = vrcp.f32 %v1657_v0 }
 0x37c   :  { %v3335_v7 = vpop.eup %3334  ;;  %v1121_v16 = vpop.xlane.xlu0 %1120 }
 0x37d   :  { %v1659_v47 = vpop.xlane.xlu1 %1658  ;;  %2952 = vmatmul.mubr.bf16.gmra.mrb[20].mxu1 %v1709_v1  ;;  %v1685_v34 = vmul.f32 %v3335_v7, %v4667_v29  ;;  %v3337_v54 = vpop.eup %3336 }
 0x37e   :  { %2968 = vmatpush3.bf16.msra.mxu1 %v5187_v9  ;;  %3346 = vrcp.f32 %v1659_v47  ;;  %v1686_v40 = vmul.f32 %v3337_v54, %v4669_v30  ;;  %v5198_v9 = vld [vmem:[#allocation28_spill] sm:$0xff] }
 0x37f   :  { %2969 = vmatprep.subr.bf16.mxu1 %v5188_v46  ;;  %v1710_v61 = vpack.c.bf16 %v1685_v34, %v1684_v28  ;;  %3348 = vrcp.f32 %v1121_v16 }
 0x380   :  { %v3339_v26 = vpop.eup %3338  ;;  %v2056_v21 = vpop.xlane.xlu0 %2055 }
 0x381   :  { %2955 = vmatprep.mubr.bf16.mxu1 %v1710_v61  ;;  %v1687_v15 = vmul.f32 %v3339_v26, %v5189_v32  ;;  %v3341_v45 = vpop.eup %3340  ;;  %v5199_v26 = vld [vmem:[#allocation29_spill] sm:$0xff] }
 0x382   :  { %2970 = vmatpush3.bf16.msra.mxu1 %v5188_v46  ;;  %v1688_v62 = vmul.f32 %v3341_v45, %v5191_v13 }
 0x383   :  { %2971 = vmatprep.subr.bf16.mxu1 %v5190_v49  ;;  %v1711_v11 = vpack.c.bf16 %v1687_v15, %v1686_v40 }
 0x384   :  { %v3343_v29 = vpop.eup %3342 }
 0x385   :  { %2956 = vmatmul.mubr.bf16.gmra.mrb[24].mxu1 %v1711_v11  ;;  %v1689_v57 = vmul.f32 %v3343_v29, %v5192_v53  ;;  %v3345_v63 = vpop.eup %3344 }
 0x386   :  { %2972 = vmatpush3.bf16.msra.mxu1 %v5190_v49  ;;  %v1690_v51 = vmul.f32 %v3345_v63, %v5194_v6 }
 0x387   :  { %2973 = vmatprep.subr.bf16.mxu1 %v5193_v14  ;;  %v1712_v30 = vpack.c.bf16 %v1689_v57, %v1688_v62 }
 0x388   :  { %v3347_v8 = vpop.eup %3346 }
 0x389   :  { %2959 = vmatprep.mubr.bf16.mxu1 %v1712_v30  ;;  %v1691_v23 = vmul.f32 %v3347_v8, %v5195_v36  ;;  %v3349_v0 = vpop.eup %3348 }
 0x38a   :  { %2974 = vmatpush3.bf16.msra.mxu1 %v5193_v14  ;;  %v1168_v1 = vmul.f32 %v3349_v0, %v5198_v9 }
 0x38b   :  { %2975 = vmatprep.subr.bf16.mxu1 %v5196_v31  ;;  %v1713_v60 = vpack.c.bf16 %v1691_v23, %v1690_v51 }
 0x38d   :  { %2960 = vmatmul.mubr.bf16.gmra.mrb[28].mxu1 %v1713_v60 }
 0x38e   :  { %2976 = vmatpush3.bf16.msra.mxu1 %v5196_v31 }
 0x38f   :  { %2977 = vmatprep.subr.bf16.mxu1 %v5197_v24 }
 0x392   :  { %2978 = vmatpush3.bf16.msra.mxu1 %v5197_v24 }
 0x39d   :  { %v1123_v27 = vpop.xlane.xlu1 %1122 }
 0x39e   :  { %3350 = vrcp.f32 %v1123_v27 }
 0x39f   :  { %3352 = vrcp.f32 %v2056_v21 }
 0x3a1   :  { %v1125_v5 = vpop.xlane.xlu0 %1124 }
 0x3a2   :  { %v2058_v52 = vpop.xlane.xlu1 %2057 }
 0x3a3   :  { %3354 = vrcp.f32 %v2058_v52 }
 0x3a4   :  { %3356 = vrcp.f32 %v1125_v5 }
 0x3a5   :  { %v2060_v33 = vpop.xlane.xlu0 %2059 }
 0x3a6   :  { %v1127_v43 = vpop.xlane.xlu1 %1126 }
 0x3a7   :  { %3358 = vrcp.f32 %v1127_v43 }
 0x3a8   :  { %v3351_v18 = vpop.eup %3350  ;;  %3360 = vrcp.f32 %v2060_v33 }
 0x3a9   :  { %v1129_v25 = vpop.xlane.xlu0 %1128  ;;  %v1169_v7 = vmul.f32 %v3351_v18, %v4701_v22  ;;  %v3353_v28 = vpop.eup %3352 }
 0x3aa   :  { %v2062_v47 = vpop.xlane.xlu1 %2061  ;;  %v2103_v40 = vmul.f32 %v3353_v28, %v5199_v26 }
 0x3ab   :  { %3362 = vrcp.f32 %v2062_v47  ;;  %v1198_v34 = vpack.c.bf16 %v1169_v7, %v1168_v1  ;;  %v5200_v1 = vld [vmem:[#allocation31_spill] sm:$0xff] }
 0x3ac   :  { %3364 = vrcp.f32 %v1129_v25 }
 0x3ad   :  { %v3355_v54 = vpop.eup %3354  ;;  %v2064_v46 = vpop.xlane.xlu0 %2063  ;;  %2883 = vmatprep.mubr.bf16.mxu0 %v1198_v34 }
 0x3ae   :  { %v1131_v61 = vpop.xlane.xlu1 %1130  ;;  %v2104_v32 = vmul.f32 %v3355_v54, %v4708_v55  ;;  %v3357_v15 = vpop.eup %3356 }
 0x3af   :  { %3366 = vrcp.f32 %v1131_v61  ;;  %v1170_v29 = vmul.f32 %v3357_v15, %v4706_v10  ;;  %v5203_v15 = vld [vmem:[#allocation32_spill] sm:$0xff] }
 0x3b0   :  { %v2133_v45 = vpack.c.bf16 %v2104_v32, %v2103_v40  ;;  %3368 = vrcp.f32 %v2064_v46  ;;  %v5202_v46 = vld [vmem:[#allocation33_spill] sm:$0xff] }
 0x3b1   :  { %v3359_v49 = vpop.eup %3358  ;;  %v1133_v11 = vpop.xlane.xlu0 %1132 }
 0x3b2   :  { %2979 = vmatprep.mubr.bf16.mxu1 %v2133_v45  ;;  %v2066_v22 = vpop.xlane.xlu1 %2065  ;;  %v1171_v13 = vmul.f32 %v3359_v49, %v4716_v44  ;;  %v3361_v62 = vpop.eup %3360  ;;  %v5204_v45 = vld [vmem:[#allocation37_spill] sm:$0xff] }
 0x3b3   :  { %3370 = vrcp.f32 %v2066_v22  ;;  %v2105_v55 = vmul.f32 %v3361_v62, %v4714_v17  ;;  %v5205_v62 = vld [vmem:[#allocation43_spill] sm:$0xff] }
 0x3b4   :  { %v1199_v53 = vpack.c.bf16 %v1171_v13, %v1170_v29  ;;  %3372 = vrcp.f32 %v1133_v11 }
 0x3b5   :  { %v3363_v57 = vpop.eup %3362  ;;  %v2068_v63 = vpop.xlane.xlu0 %2067 }
 0x3b6   :  { %v2106_v14 = vmul.f32 %v3363_v57, %v4724_v42  ;;  %2884 = vmatmul.mubr.bf16.vlgmr.msra.gmra.mrb[20].mxu0 %v1199_v53  ;;  %v1135_v30 = vpop.xlane.xlu1 %1134  ;;  %v3365_v8 = vpop.eup %3364  ;;  %v5206_v57 = vld [vmem:[#allocation38_spill] sm:$0xff] }
 0x3b7   :  { %3374 = vrcp.f32 %v1135_v30  ;;  %v1172_v36 = vmul.f32 %v3365_v8, %v4722_v41 }
 0x3b8   :  { %v2134_v6 = vpack.c.bf16 %v2106_v14, %v2105_v55  ;;  %3376 = vrcp.f32 %v2068_v63 }
 0x3b9   :  { %v3367_v51 = vpop.eup %3366  ;;  %v1137_v10 = vpop.xlane.xlu0 %1136 }
 0x3ba   :  { %2980 = vmatmul.mubr.bf16.vlgmr.msra.gmra.mrb[16].mxu1 %v2134_v6  ;;  %v2070_v44 = vpop.xlane.xlu1 %2069  ;;  %v1173_v23 = vmul.f32 %v3367_v51, %v4732_v48  ;;  %v3369_v31 = vpop.eup %3368  ;;  %v5207_v51 = vld [vmem:[#allocation44_spill] sm:$0xff] }
 0x3bb   :  { %3378 = vrcp.f32 %v2070_v44  ;;  %v2107_v16 = vmul.f32 %v3369_v31, %v4730_v3 }
 0x3bc   :  { %v1200_v60 = vpack.c.bf16 %v1173_v23, %v1172_v36  ;;  %3380 = vrcp.f32 %v1137_v10 }
 0x3bd   :  { %v3371_v17 = vpop.eup %3370  ;;  %v2072_v42 = vpop.xlane.xlu0 %2071 }
 0x3be   :  { %2887 = vmatprep.mubr.bf16.mxu0 %v1200_v60  ;;  %v1139_v24 = vpop.xlane.xlu1 %1138  ;;  %v2108_v21 = vmul.f32 %v3371_v17, %v4740_v12  ;;  %v3373_v27 = vpop.eup %3372 }
 0x3bf   :  { %3382 = vrcp.f32 %v1139_v24  ;;  %v1174_v33 = vmul.f32 %v3373_v27, %v4738_v4 }
 0x3c0   :  { %v2135_v5 = vpack.c.bf16 %v2108_v21, %v2107_v16  ;;  %3384 = vrcp.f32 %v2072_v42 }
 0x3c1   :  { %v3375_v52 = vpop.eup %3374  ;;  %v1141_v41 = vpop.xlane.xlu0 %1140 }
 0x3c2   :  { %2983 = vmatprep.mubr.bf16.mxu1 %v2135_v5  ;;  %v2074_v48 = vpop.xlane.xlu1 %2073  ;;  %v1175_v0 = vmul.f32 %v3375_v52, %v4748_v59  ;;  %v3377_v43 = vpop.eup %3376  ;;  %v5201_v59 = vld [vmem:[#allocation30_spill] sm:$0xff] }
 0x3c3   :  { %3386 = vrcp.f32 %v2074_v48  ;;  %v2109_v9 = vmul.f32 %v3377_v43, %v4746_v20 }
 0x3c4   :  { %v1201_v18 = vpack.c.bf16 %v1175_v0, %v1174_v33  ;;  %3388 = vrcp.f32 %v1141_v41 }
 0x3c5   :  { %v3379_v25 = vpop.eup %3378  ;;  %v2076_v3 = vpop.xlane.xlu0 %2075 }
 0x3c6   :  { %2888 = vmatmul.mubr.bf16.gmra.mrb[24].mxu0 %v1201_v18  ;;  %v1143_v12 = vpop.xlane.xlu1 %1142  ;;  %v2110_v7 = vmul.f32 %v3379_v25, %v5200_v1  ;;  %v3381_v47 = vpop.eup %3380 }
 0x3c7   :  { %3390 = vrcp.f32 %v1143_v12  ;;  %v1176_v54 = vmul.f32 %v3381_v47, %v5201_v59 }
 0x3c8   :  { %v2136_v28 = vpack.c.bf16 %v2110_v7, %v2109_v9  ;;  %3392 = vrcp.f32 %v2076_v3 }
 0x3c9   :  { %v3383_v34 = vpop.eup %3382 }
 0x3ca   :  { %2984 = vmatmul.mubr.bf16.gmra.mrb[20].mxu1 %v2136_v28  ;;  %v2078_v4 = vpop.xlane.xlu1 %2077  ;;  %v1177_v61 = vmul.f32 %v3383_v34, %v5202_v46  ;;  %v3385_v26 = vpop.eup %3384 }
 0x3cb   :  { %3394 = vrcp.f32 %v2078_v4  ;;  %v2111_v20 = vmul.f32 %v3385_v26, %v5203_v15 }
 0x3cc   :  { %v1202_v40 = vpack.c.bf16 %v1177_v61, %v1176_v54  ;;  %v4924_v54 = vld [vmem:[%s4998_s7] ss:$0 sm:$0xff] }
 0x3cd   :  { %v3387_v32 = vpop.eup %3386 }
 0x3ce   :  { %2891 = vmatprep.mubr.bf16.mxu0 %v1202_v40  ;;  %v2112_v49 = vmul.f32 %v3387_v32, %v5204_v45  ;;  %v3389_v11 = vpop.eup %3388 }
 0x3cf   :  { %v1178_v53 = vmul.f32 %v3389_v11, %v5205_v62 }
 0x3d0   :  { %v2137_v22 = vpack.c.bf16 %v2112_v49, %v2111_v20 }
 0x3d1   :  { %v3391_v29 = vpop.eup %3390  ;;  %v1145_v13 = vpop.xlane.xlu0 %1144 }
 0x3d2   :  { %2987 = vmatprep.mubr.bf16.mxu1 %v2137_v22  ;;  %v1179_v63 = vmul.f32 %v3391_v29, %v5206_v57  ;;  %v3393_v55 = vpop.eup %3392  ;;  %3396 = vrcp.f32 %v1145_v13 }
 0x3d3   :  { %v2113_v10 = vmul.f32 %v3393_v55, %v5207_v51 }
 0x3d4   :  { %v1203_v14 = vpack.c.bf16 %v1179_v63, %v1178_v53 }
 0x3d5   :  { %v3395_v30 = vpop.eup %3394  ;;  %v2080_v8 = vpop.xlane.xlu0 %2079 }
 0x3d6   :  { %2892 = vmatmul.mubr.bf16.gmra.mrb[28].mxu0 %v1203_v14  ;;  %v1147_v6 = vpop.xlane.xlu1 %1146  ;;  %v2114_v44 = vmul.f32 %v3395_v30, %v4782_v56 }
 0x3d7   :  { %3398 = vrcp.f32 %v1147_v6 }
 0x3d8   :  { %v2138_v36 = vpack.c.bf16 %v2114_v44, %v2113_v10  ;;  %3400 = vrcp.f32 %v2080_v8 }
 0x3d9   :  { %v1149_v23 = vpop.xlane.xlu0 %1148 }
 0x3da   :  { %2988 = vmatmul.mubr.bf16.gmra.mrb[24].mxu1 %v2138_v36  ;;  %v2082_v31 = vpop.xlane.xlu1 %2081 }
 0x3db   :  { %3402 = vrcp.f32 %v2082_v31 }
 0x3dc   :  { %3404 = vrcp.f32 %v1149_v23  ;;  %v3397_v42 = vpop.eup %3396 }
 0x3dd   :  { %v2084_v60 = vpop.xlane.xlu0 %2083  ;;  %v1180_v21 = vmul.f32 %v3397_v42, %v4793_v39 }
 0x3de   :  { %v1151_v17 = vpop.xlane.xlu1 %1150 }
 0x3df   :  { %3406 = vrcp.f32 %v1151_v17 }
 0x3e0   :  { %3408 = vrcp.f32 %v2084_v60 }
 0x3e1   :  { %v3399_v24 = vpop.eup %3398 }
 0x3e2   :  { %v2086_v16 = vpop.xlane.xlu1 %2085  ;;  %v1181_v27 = vmul.f32 %v3399_v24, %v4801_v37  ;;  %v3401_v56 = vpop.eup %3400 }
 0x3e3   :  { %3410 = vrcp.f32 %v2086_v16  ;;  %v2115_v41 = vmul.f32 %v3401_v56, %v4799_v2  ;;  %v2277_v2 = vld [vmem:[%s4999_s8] sm:$0xff] }
 0x3e4   :  { %v1204_v5 = vpack.c.bf16 %v1181_v27, %v1180_v21 }
 0x3e5   :  { %v3403_v52 = vpop.eup %3402 }
 0x3e6   :  { %2895 = vmatprep.mubr.bf16.mxu0 %v1204_v5  ;;  %v2116_v48 = vmul.f32 %v3403_v52, %v4809_v19  ;;  %v3405_v33 = vpop.eup %3404 }
 0x3e7   :  { %v1182_v18 = vmul.f32 %v3405_v33, %v4807_v58  ;;  %v2278_v58 = vld [vmem:[%s4999_s8 + $0x8] sm:$0xff] }
 0x3e8   :  { %v2139_v0 = vpack.c.bf16 %v2116_v48, %v2115_v41  ;;  %v3038_v19 = vpack.c.bf16 %v2278_v58, %v2277_v2 }
 0x3e9   :  { %v3407_v43 = vpop.eup %3406 }
 0x3ea   :  { %2991 = vmatprep.mubr.bf16.mxu1 %v2139_v0  ;;  %v1183_v25 = vmul.f32 %v3407_v43, %v4817_v50  ;;  %v3409_v39 = vpop.eup %3408  ;;  %3039 = vmatprep.subr.bf16.mxu0 %v3038_v19  ;;  %v2279_v50 = vld [vmem:[%s4999_s8 + $0x10] sm:$0xff] }
 0x3eb   :  { %v2117_v12 = vmul.f32 %v3409_v39, %v4815_v35  ;;  %3041 = vmatpush3.bf16.msra.mxu0 %v3038_v19  ;;  %v2280_v35 = vld [vmem:[%s4999_s8 + $0x18] sm:$0xff] }
 0x3ec   :  { %v1205_v3 = vpack.c.bf16 %v1183_v25, %v1182_v18 }
 0x3ed   :  { %v3411_v37 = vpop.eup %3410 }
 0x3ee   :  { %2896 = vmatmul.mubr.bf16.gmra.mrb[32].mxu0 %v1205_v3  ;;  %v2118_v9 = vmul.f32 %v3411_v37, %v4823_v38  ;;  %v3042_v38 = vpack.c.bf16 %v2280_v35, %v2279_v50 }
 0x3f0   :  { %v2140_v1 = vpack.c.bf16 %v2118_v9, %v2117_v12  ;;  %3043 = vmatprep.subr.bf16.mxu0 %v3042_v38 }
 0x3f1   :  { %3045 = vmatpush3.bf16.msra.mxu0 %v3042_v38 }
 0x3f2   :  { %2992 = vmatmul.mubr.bf16.gmra.mrb[28].mxu1 %v2140_v1 }
 0x489   :  { %v2885_v7 = vpop.f32.mrb[20].mxu0 }
 0x48a   :  { %v1240_v47 = vpop.f32.mrb[21].mxu0 }
 0x48b   :  { %v2886_v28 = vpop.f32.mrb[22].mxu0 }
 0x48c   :  { %v1243_v34 = vpop.f32.mrb[23].mxu0 }
 0x48d   :  { %v2981_v4 = vpop.f32.mrb[16].mxu1 }
 0x48e   :  { %v3046_v59 = vadd.f32 %v2981_v4, %v2885_v7  ;;  %v2175_v46 = vpop.f32.mrb[17].mxu1 }
 0x48f   :  { %v3047_v61 = vadd.f32 %v2175_v46, %v1240_v47  ;;  %v2982_v26 = vpop.f32.mrb[18].mxu1  ;;  %v4961_v47 = vld [vmem:[%s5000_s9] ss:$0 sm:$0xff]  ;;  %s3507_s9 = smov [#allocation2]  }
 0x490   :  { %v3048_v40 = vadd.f32 %v2982_v26, %v2886_v28  ;;  %v2178_v32 = vpop.f32.mrb[19].mxu1  ;;  %v2263_v49 = vadd.f32 %v3046_v59, %v4924_v54  ;;  %s2599_s12 = sshll.u32 %s3507_s9, 4  ;;  %s2600_s12 = int_to_ptr.vmem [resolvable:$true] %s2599_s12 }
 0x491   :  { %v2261_v15 = vadd.f32 %v3047_v61, %v4924_v54  ;;  %v3049_v20 = vadd.f32 %v2178_v32, %v1243_v34  ;;  %s3476_s13 = scalar_lea.vmem %s2600_s12, 2048  ;;  %p3481_p1 = scmp.lt.s32.totalorder %s2600_s12, %s2600_s12 }
 0x492   :  { %v2264_v11 = vadd.f32 %v3048_v40, %v4924_v54  ;;  %p3477_p0 = scmp.ne.s32.totalorder %s2600_s12, %s3476_s13  ;;  %p3482_p2 = scmp.lt.s32.totalorder %s3476_s13, %s3476_s13 }
 0x493   :  { %v2262_v45 = vadd.f32 %v3049_v20, %v4924_v54  ;;  %3003 = vmatprep.mubr.msk.f32.mxu0 %vm2288_vm12, %v2261_v15 }
 0x494   :  { %p3483_p3 = por %p3482_p2, %p3481_p1 }
 0x495   :  { %3004 = vmatmul.mubr.msk.f32.vlgmr.msra.gmra.mrb[18].mxu0 %vm2288_vm12, %v2262_v45 }
 0x496   :  { %3006 = vmatprep.mubr.msk.f32.mxu0 %vm2288_vm12, %v2263_v49  ;;  %p3484_p4 = pnand %p3483_p3, %p3477_p0 }
 0x499   :  { %v2889_v22 = vpop.f32.mrb[24].mxu0  ;;  %3007 = vmatmul.mubr.msk.f32.gmra.mrb[36].mxu0 %vm2288_vm12, %v2264_v11 }
 0x49a   :  { %v1256_v29 = vpop.f32.mrb[25].mxu0 }
 0x49b   :  { %v2890_v13 = vpop.f32.mrb[26].mxu0 }
 0x49c   :  { %v1259_v62 = vpop.f32.mrb[27].mxu0 }
 0x49d   :  { %v2985_v53 = vpop.f32.mrb[20].mxu1 }
 0x49e   :  { %v3050_v57 = vadd.f32 %v2985_v53, %v2889_v22  ;;  %v2191_v63 = vpop.f32.mrb[21].mxu1 }
 0x49f   :  { %v3051_v55 = vadd.f32 %v2191_v63, %v1256_v29  ;;  %v2986_v14 = vpop.f32.mrb[22].mxu1 }
 0x4a0   :  { %v3052_v30 = vadd.f32 %v2986_v14, %v2890_v13  ;;  %v2194_v8 = vpop.f32.mrb[23].mxu1  ;;  %v2267_v44 = vadd.f32 %v3050_v57, %v4924_v54 }
 0x4a1   :  { %v2265_v6 = vadd.f32 %v3051_v55, %v4924_v54  ;;  %v3053_v51 = vadd.f32 %v2194_v8, %v1259_v62 }
 0x4a2   :  { %v2268_v36 = vadd.f32 %v3052_v30, %v4924_v54 }
 0x4a3   :  { %v2266_v10 = vadd.f32 %v3053_v51, %v4924_v54  ;;  %3009 = vmatprep.mubr.msk.f32.mxu0 %vm2288_vm12, %v2265_v6 }
 0x4a5   :  { %3010 = vmatmul.mubr.msk.f32.gmra.mrb[38].mxu0 %vm2288_vm12, %v2266_v10 }
 0x4a6   :  { %3012 = vmatprep.mubr.msk.f32.mxu0 %vm2288_vm12, %v2267_v44 }
 0x4a9   :  { %v2893_v23 = vpop.f32.mrb[28].mxu0  ;;  %3013 = vmatmul.mubr.msk.f32.gmra.mrb[40].mxu0 %vm2288_vm12, %v2268_v36 }
 0x4aa   :  { %v1272_v31 = vpop.f32.mrb[29].mxu0 }
 0x4ab   :  { %v2894_v60 = vpop.f32.mrb[30].mxu0 }
 0x4ac   :  { %v1275_v17 = vpop.f32.mrb[31].mxu0 }
 0x4ad   :  { %v2989_v42 = vpop.f32.mrb[24].mxu1 }
 0x4ae   :  { %v3054_v24 = vadd.f32 %v2989_v42, %v2893_v23  ;;  %v2207_v16 = vpop.f32.mrb[25].mxu1 }
 0x4af   :  { %v3055_v21 = vadd.f32 %v2207_v16, %v1272_v31  ;;  %v2990_v27 = vpop.f32.mrb[26].mxu1 }
 0x4b0   :  { %v3056_v56 = vadd.f32 %v2990_v27, %v2894_v60  ;;  %v2210_v5 = vpop.f32.mrb[27].mxu1  ;;  %v2271_v33 = vadd.f32 %v3054_v24, %v4924_v54 }
 0x4b1   :  { %v2269_v52 = vadd.f32 %v3055_v21, %v4924_v54  ;;  %v3057_v41 = vadd.f32 %v2210_v5, %v1275_v17 }
 0x4b2   :  { %v2272_v0 = vadd.f32 %v3056_v56, %v4924_v54 }
 0x4b3   :  { %v2270_v48 = vadd.f32 %v3057_v41, %v4924_v54  ;;  %3015 = vmatprep.mubr.msk.f32.mxu0 %vm2288_vm12, %v2269_v52 }
 0x4b5   :  { %3016 = vmatmul.mubr.msk.f32.gmra.mrb[42].mxu0 %vm2288_vm12, %v2270_v48 }
 0x4b6   :  { %3018 = vmatprep.mubr.msk.f32.mxu0 %vm2288_vm12, %v2271_v33 }
 0x4b9   :  { %3019 = vmatmul.mubr.msk.f32.gmra.mrb[44].mxu0 %vm2288_vm12, %v2272_v0 }
 0x4c1   :  { %v2897_v43 = vpop.f32.mrb[32].mxu0 }
 0x4c2   :  { %v1288_v18 = vpop.f32.mrb[33].mxu0 }
 0x4c3   :  { %v2898_v25 = vpop.f32.mrb[34].mxu0 }
 0x4c4   :  { %v1291_v39 = vpop.f32.mrb[35].mxu0 }
 0x4c5   :  { %v2993_v3 = vpop.f32.mrb[28].mxu1 }
 0x4c6   :  { %v3058_v37 = vadd.f32 %v2993_v3, %v2897_v43  ;;  %v2223_v12 = vpop.f32.mrb[29].mxu1 }
 0x4c7   :  { %v3059_v9 = vadd.f32 %v2223_v12, %v1288_v18  ;;  %v2994_v1 = vpop.f32.mrb[30].mxu1 }
 0x4c8   :  { %v3060_v2 = vadd.f32 %v2994_v1, %v2898_v25  ;;  %v2226_v58 = vpop.f32.mrb[31].mxu1  ;;  %v2275_v38 = vadd.f32 %v3058_v37, %v4924_v54 }
 0x4c9   :  { %v2273_v19 = vadd.f32 %v3059_v9, %v4924_v54  ;;  %v3061_v50 = vadd.f32 %v2226_v58, %v1291_v39 }
 0x4ca   :  { %v2276_v7 = vadd.f32 %v3060_v2, %v4924_v54 }
 0x4cb   :  { %v2274_v35 = vadd.f32 %v3061_v50, %v4924_v54  ;;  %3021 = vmatprep.mubr.msk.f32.mxu0 %vm2288_vm12, %v2273_v19 }
 0x4cd   :  { %3022 = vmatmul.mubr.msk.f32.gmra.mrb[46].mxu0 %vm2288_vm12, %v2274_v35 }
 0x4ce   :  { %3024 = vmatprep.mubr.msk.f32.mxu0 %vm2288_vm12, %v2275_v38 }
 0x4d1   :  { %3025 = vmatmul.mubr.msk.f32.gmra.mrb[48].mxu0 %vm2288_vm12, %v2276_v7 }
 0x568   :  { %v3005_v28 = vpop.f32.mrb[18].mxu0 }
 0x569   :  { %v2409_v34 = vadd.f32 %v3005_v28, %v4961_v47  ;;  %v2403_v4 = vpop.f32.mrb[19].mxu0 }
 0x56a   :  { %v2404_v59 = vadd.f32 %v4961_v47, %v2403_v4 }
 0x56b   :  { %v2666_v46 = vmul.f32 -1.442695, %v2409_v34 }
 0x56c   :  { %v2665_v61 = vmul.f32 -1.442695, %v2404_v59  ;;  %v3008_v26 = vpop.f32.mrb[36].mxu0 }
 0x56d   :  { %3412 = vpow2.f32 %v2666_v46  ;;  %v2419_v40 = vadd.f32 %v3008_v26, %v4961_v47  ;;  %v2413_v54 = vpop.f32.mrb[37].mxu0 }
 0x56e   :  { %3414 = vpow2.f32 %v2665_v61  ;;  %v2414_v32 = vadd.f32 %v4961_v47, %v2413_v54 }
 0x56f   :  { %v2668_v15 = vmul.f32 -1.442695, %v2419_v40 }
 0x570   :  { %v2667_v20 = vmul.f32 -1.442695, %v2414_v32 }
 0x571   :  { %3416 = vpow2.f32 %v2668_v15 }
 0x572   :  { %3418 = vpow2.f32 %v2667_v20 }
 0x577   :  { %v3413_v45 = vpop.eup %3412 }
 0x578   :  { %v3415_v49 = vpop.eup %3414  ;;  %v2531_v11 = vadd.f32 1.0, %v3413_v45  ;;  %v3011_v22 = vpop.f32.mrb[38].mxu0 }
 0x579   :  { %v2530_v29 = vadd.f32 1.0, %v3415_v49  ;;  %v2429_v13 = vadd.f32 %v3011_v22, %v4961_v47  ;;  %v2423_v62 = vpop.f32.mrb[39].mxu0 }
 0x57a   :  { %3420 = vrcp.f32 %v2531_v11  ;;  %v2424_v53 = vadd.f32 %v4961_v47, %v2423_v62 }
 0x57b   :  { %v3417_v57 = vpop.eup %3416  ;;  %3422 = vrcp.f32 %v2530_v29  ;;  %v2670_v63 = vmul.f32 -1.442695, %v2429_v13 }
 0x57c   :  { %v3419_v55 = vpop.eup %3418  ;;  %v2533_v14 = vadd.f32 1.0, %v3417_v57  ;;  %v2669_v30 = vmul.f32 -1.442695, %v2424_v53  ;;  %v3014_v8 = vpop.f32.mrb[40].mxu0 }
 0x57d   :  { %v2532_v6 = vadd.f32 1.0, %v3419_v55  ;;  %3424 = vpow2.f32 %v2670_v63  ;;  %v2439_v51 = vadd.f32 %v3014_v8, %v4961_v47  ;;  %v2433_v10 = vpop.f32.mrb[41].mxu0 }
 0x57e   :  { %3426 = vrcp.f32 %v2533_v14  ;;  %v2434_v44 = vadd.f32 %v4961_v47, %v2433_v10 }
 0x57f   :  { %3428 = vrcp.f32 %v2532_v6  ;;  %v2672_v36 = vmul.f32 -1.442695, %v2439_v51 }
 0x580   :  { %3430 = vpow2.f32 %v2669_v30  ;;  %v2671_v23 = vmul.f32 -1.442695, %v2434_v44 }
 0x581   :  { %3432 = vpow2.f32 %v2672_v36 }
 0x582   :  { %3434 = vpow2.f32 %v2671_v23 }
 0x584   :  { %v3421_v31 = vpop.eup %3420 }
 0x585   :  { %v3423_v60 = vpop.eup %3422  ;;  %2579 = vst [vmem:[#allocation2 + $0x8] sm:$0xff] %v3421_v31 }
 0x586   :  { %2578 = vst [vmem:[#allocation2] sm:$0xff] %v3423_v60 }
 0x587   :  { %v3425_v17 = vpop.eup %3424 }
 0x588   :  { %v3427_v42 = vpop.eup %3426  ;;  %v2535_v24 = vadd.f32 1.0, %v3425_v17  ;;  %v3017_v16 = vpop.f32.mrb[42].mxu0 }
 0x589   :  { %v3429_v21 = vpop.eup %3428  ;;  %2581 = vst [vmem:[#allocation2 + $0x18] sm:$0xff] %v3427_v42  ;;  %v2449_v27 = vadd.f32 %v3017_v16, %v4961_v47  ;;  %v2443_v56 = vpop.f32.mrb[43].mxu0 }
 0x58a   :  { %v3431_v5 = vpop.eup %3430  ;;  %2580 = vst [vmem:[#allocation2 + $0x10] sm:$0xff] %v3429_v21  ;;  %3436 = vrcp.f32 %v2535_v24  ;;  %v2444_v52 = vadd.f32 %v4961_v47, %v2443_v56 }
 0x58b   :  { %v3433_v41 = vpop.eup %3432  ;;  %v2534_v48 = vadd.f32 1.0, %v3431_v5  ;;  %v2674_v43 = vmul.f32 -1.442695, %v2449_v27 }
 0x58c   :  { %v3435_v33 = vpop.eup %3434  ;;  %v2537_v0 = vadd.f32 1.0, %v3433_v41  ;;  %v3020_v18 = vpop.f32.mrb[44].mxu0  ;;  %v2673_v39 = vmul.f32 -1.442695, %v2444_v52 }
 0x58d   :  { %3438 = vrcp.f32 %v2534_v48  ;;  %v2536_v25 = vadd.f32 1.0, %v3435_v33  ;;  %v2459_v3 = vadd.f32 %v3020_v18, %v4961_v47  ;;  %v2453_v37 = vpop.f32.mrb[45].mxu0 }
 0x58e   :  { %3440 = vrcp.f32 %v2537_v0  ;;  %v2454_v12 = vadd.f32 %v4961_v47, %v2453_v37 }
 0x58f   :  { %3442 = vrcp.f32 %v2536_v25  ;;  %v2676_v9 = vmul.f32 -1.442695, %v2459_v3 }
 0x590   :  { %3444 = vpow2.f32 %v2674_v43  ;;  %v2675_v1 = vmul.f32 -1.442695, %v2454_v12 }
 0x591   :  { %3446 = vpow2.f32 %v2673_v39 }
 0x592   :  { %3448 = vpow2.f32 %v2676_v9 }
 0x593   :  { %3450 = vpow2.f32 %v2675_v1 }
 0x594   :  { %v3437_v2 = vpop.eup %3436 }
 0x595   :  { %2583 = vst [vmem:[#allocation2 + $0x28] sm:$0xff] %v3437_v2 }
 0x597   :  { %v3439_v58 = vpop.eup %3438 }
 0x598   :  { %v3441_v19 = vpop.eup %3440  ;;  %2582 = vst [vmem:[#allocation2 + $0x20] sm:$0xff] %v3439_v58 }
 0x599   :  { %v3443_v50 = vpop.eup %3442  ;;  %2585 = vst [vmem:[#allocation2 + $0x38] sm:$0xff] %v3441_v19 }
 0x59a   :  { %v3445_v35 = vpop.eup %3444  ;;  %2584 = vst [vmem:[#allocation2 + $0x30] sm:$0xff] %v3443_v50 }
 0x59b   :  { %v3447_v38 = vpop.eup %3446  ;;  %v2539_v7 = vadd.f32 1.0, %v3445_v35 }
 0x59c   :  { %v3449_v28 = vpop.eup %3448  ;;  %v2538_v34 = vadd.f32 1.0, %v3447_v38 }
 0x59d   :  { %v3451_v4 = vpop.eup %3450  ;;  %3452 = vrcp.f32 %v2539_v7  ;;  %v2541_v59 = vadd.f32 1.0, %v3449_v28 }
 0x59e   :  { %3454 = vrcp.f32 %v2538_v34  ;;  %v2540_v46 = vadd.f32 1.0, %v3451_v4 }
 0x59f   :  { %3456 = vrcp.f32 %v2541_v59 }
 0x5a0   :  { %3458 = vrcp.f32 %v2540_v46  ;;  %v3023_v61 = vpop.f32.mrb[46].mxu0 }
 0x5a1   :  { %v2469_v26 = vadd.f32 %v3023_v61, %v4961_v47  ;;  %v2463_v40 = vpop.f32.mrb[47].mxu0 }
 0x5a2   :  { %v2464_v54 = vadd.f32 %v4961_v47, %v2463_v40 }
 0x5a3   :  { %v2678_v32 = vmul.f32 -1.442695, %v2469_v26 }
 0x5a4   :  { %v2677_v15 = vmul.f32 -1.442695, %v2464_v54  ;;  %v3026_v20 = vpop.f32.mrb[48].mxu0 }
 0x5a5   :  { %3460 = vpow2.f32 %v2678_v32  ;;  %v2479_v45 = vadd.f32 %v3026_v20, %v4961_v47  ;;  %v2473_v49 = vpop.f32.mrb[49].mxu0 }
 0x5a6   :  { %3462 = vpow2.f32 %v2677_v15  ;;  %v2474_v11 = vadd.f32 %v4961_v47, %v2473_v49 }
 0x5a7   :  { %v3453_v22 = vpop.eup %3452  ;;  %v2680_v29 = vmul.f32 -1.442695, %v2479_v45 }
 0x5a8   :  { %v3455_v13 = vpop.eup %3454  ;;  %2587 = vst [vmem:[#allocation2 + $0x48] sm:$0xff] %v3453_v22  ;;  %v2679_v62 = vmul.f32 -1.442695, %v2474_v11 }
 0x5a9   :  { %v3457_v53 = vpop.eup %3456  ;;  %2586 = vst [vmem:[#allocation2 + $0x40] sm:$0xff] %v3455_v13  ;;  %3464 = vpow2.f32 %v2680_v29 }
 0x5aa   :  { %v3459_v57 = vpop.eup %3458  ;;  %2589 = vst [vmem:[#allocation2 + $0x58] sm:$0xff] %v3457_v53  ;;  %3466 = vpow2.f32 %v2679_v62 }
 0x5ab   :  { %2588 = vst [vmem:[#allocation2 + $0x50] sm:$0xff] %v3459_v57 }
 0x5af   :  { %v3461_v63 = vpop.eup %3460 }
 0x5b0   :  { %v3463_v55 = vpop.eup %3462  ;;  %v2543_v14 = vadd.f32 1.0, %v3461_v63 }
 0x5b1   :  { %v2542_v30 = vadd.f32 1.0, %v3463_v55 }
 0x5b2   :  { %3468 = vrcp.f32 %v2543_v14 }
 0x5b3   :  { %v3465_v8 = vpop.eup %3464  ;;  %3470 = vrcp.f32 %v2542_v30 }
 0x5b4   :  { %v3467_v47 = vpop.eup %3466  ;;  %v2545_v6 = vadd.f32 1.0, %v3465_v8 }
 0x5b5   :  { %v2544_v51 = vadd.f32 1.0, %v3467_v47 }
 0x5b6   :  { %3472 = vrcp.f32 %v2545_v6 }
 0x5b7   :  { %3474 = vrcp.f32 %v2544_v51 }
 0x5bc   :  { %v3469_v10 = vpop.eup %3468 }
 0x5bd   :  { %v3471_v44 = vpop.eup %3470  ;;  %2591 = vst [vmem:[#allocation2 + $0x68] sm:$0xff] %v3469_v10 }
 0x5be   :  { %2590 = vst [vmem:[#allocation2 + $0x60] sm:$0xff] %v3471_v44 }
 0x5c0   :  { %v3473_v36 = vpop.eup %3472 }
 0x5c1   :  { %v3475_v23 = vpop.eup %3474  ;;  %2593 = vst [vmem:[#allocation2 + $0x78] sm:$0xff] %v3473_v36 }
 0x5c2   :  { %2592 = vst [vmem:[#allocation2 + $0x70] sm:$0xff] %v3475_v23 }
 0x5c3   :  { %3487 = shalt.err (!%p3484_p4)
}
 0x5c4   :  { %s3488_s16 = scalar_lea.hbm %s5001_s10, 2048 }
 0x5c5   :  { %p3489_p5 = scmp.ne.s32.totalorder %s5001_s10, %s3488_s16  ;;  %p3492_p6 = scmp.lt.u32.totalorder %s3488_s16, %s5001_s10 }
 0x5c7   :  { %p3494_p7 = pnand %p3492_p6, %p3489_p5 }
 0x5c9   :  { %3497 = shalt.err (!%p3494_p7)
}
 0x5ca   :  { %s3508_s20 = smov 128   ;;  %s3509_s4 = smov 8  }
 0x5cb   :  { %2605 = dma.vmem_to_hbm [thread:$0]  %s2600_s12, 2048, %s5001_s10, [#allocation3], %s3508_s20, %s3508_s20, %s3509_s4  }
 0x5cc   :  { %3498 = dma.done.wait [#allocation3], 2048  }
 0x5cd   :  { %3499 = vsyncadd [#allocation3], 4294965248 }
 0x5ce   :  { %2609 = vsyncpa [#allocation3], 1 }

</bundles_post_ra>
